<compile_context>
chip_gen: v6e
topology: v6e:2x2x1
jax: 0.10.0
libtpu: 0.0.40
codegen_flags: <defaults>
</compile_context>

<pallas_src>
import functools

import jax
import jax.numpy as jnp
from jax import lax
from jax.experimental import pallas as pl
from jax.experimental.pallas import tpu as pltpu

LN_EPS = 1e-5                      # PyTorch nn.LayerNorm default
VMEM_LIMIT = 64 * 1024 * 1024      # explicit scoped-VMEM request
DEFAULT_TILE_M = 256               # row (token) tile for the matmul/LN kernels


# ----------------------------------------------------------------------------
# Pallas kernels
# ----------------------------------------------------------------------------
def _matmul_bias_kernel(x_ref, w_ref, b_ref, o_ref):
    # o = x @ w + b ; x:(tm,K) f32, w:(K,N) bf16, b:(1,N) f32 -> o:(tm,N) f32
    x = x_ref[...].astype(jnp.bfloat16)
    o_ref[...] = (
        jnp.dot(x, w_ref[...], preferred_element_type=jnp.float32) + b_ref[...]
    )


def _linear_add_ln_kernel(x_ref, res_ref, w_ref, b_ref, g_ref, beta_ref, o_ref):
    # o = LayerNorm((x @ w + b) + res) * g + beta   (fused matmul epilogue)
    x = x_ref[...].astype(jnp.bfloat16)
    y = jnp.dot(x, w_ref[...], preferred_element_type=jnp.float32) + b_ref[...]
    z = y + res_ref[...]
    mu = jnp.mean(z, axis=-1, keepdims=True)
    var = jnp.mean((z - mu) * (z - mu), axis=-1, keepdims=True)
    zn = (z - mu) * lax.rsqrt(var + LN_EPS)
    o_ref[...] = zn * g_ref[...] + beta_ref[...]


def _ffn_add_ln_kernel(x_ref, w1_ref, b1_ref, w2_ref, b2_ref, g_ref, beta_ref, o_ref):
    # PositionwiseFeedForward + residual + LayerNorm, all fused.
    # TODO(synk): tile the d_ff axis ("arbitrary" grid dim + f32 accumulator
    # scratch) for very large d_ff on v7x's 64 MiB VMEM; weights fully resident here.
    x = x_ref[...]                                            # f32 residual
    h = (
        jnp.dot(x.astype(jnp.bfloat16), w1_ref[...],
                preferred_element_type=jnp.float32)
        + b1_ref[...]
    )
    h = jnp.maximum(h, 0.0)                                   # ReLU (dropout = id)
    y = (
        jnp.dot(h.astype(jnp.bfloat16), w2_ref[...],
                preferred_element_type=jnp.float32)
        + b2_ref[...]
    )
    z = y + x
    mu = jnp.mean(z, axis=-1, keepdims=True)
    var = jnp.mean((z - mu) * (z - mu), axis=-1, keepdims=True)
    zn = (z - mu) * lax.rsqrt(var + LN_EPS)
    o_ref[...] = zn * g_ref[...] + beta_ref[...]


def _mha_kernel(q_ref, k_ref, v_ref, mask_ref, o_ref, *, num_heads, causal, scale):
    # One batch element per grid step.
    # q_ref:(1,Sq,D) k_ref/v_ref:(1,Sk,D) mask_ref:(1,1,Sk) o_ref:(1,Sq,D)
    # TODO(synk): for long sequences convert to a flash-style Sk-tiled
    # online-softmax kernel (grid (B, q_tile, k_tile)) instead of the full
    # (Sq, Sk) score matrix per batch.
    Sq = q_ref.shape[1]
    Sk = k_ref.shape[1]
    d_model = q_ref.shape[2]
    dh = d_model // num_heads

    neg = jnp.float32(-1e9)
    # key padding mask: nonzero = attend, 0 = masked.
    bias = jnp.where(mask_ref[0] > 0.5, 0.0, neg)             # (1, Sk)
    bias = jnp.broadcast_to(bias, (Sq, Sk))
    if causal:
        r = lax.broadcasted_iota(jnp.int32, (Sq, Sk), 0)
        c = lax.broadcasted_iota(jnp.int32, (Sq, Sk), 1)
        bias = jnp.where(c <= r, bias, neg)

    outs = []
    for h in range(num_heads):                                # static unroll
        lo = h * dh
        qh = (q_ref[0, :, lo:lo + dh] * scale).astype(jnp.bfloat16)   # (Sq,dh)
        kh = k_ref[0, :, lo:lo + dh].astype(jnp.bfloat16)             # (Sk,dh)
        vh = v_ref[0, :, lo:lo + dh].astype(jnp.bfloat16)             # (Sk,dh)
        # q @ k^T without materializing the transpose: contract last dims.
        s = lax.dot_general(qh, kh, (((1,), (1,)), ((), ())),
                            preferred_element_type=jnp.float32)       # (Sq,Sk)
        s = s + bias
        m = jnp.max(s, axis=-1, keepdims=True)
        p = jnp.exp(s - m)
        l = jnp.sum(p, axis=-1, keepdims=True)
        ctx = jnp.dot(p.astype(jnp.bfloat16), vh,
                      preferred_element_type=jnp.float32)             # (Sq,dh)
        outs.append(ctx * pl.reciprocal(l, approx=True))
    o_ref[0] = jnp.concatenate(outs, axis=-1)                 # lane-dense store


# ----------------------------------------------------------------------------
# pallas_call wrappers
# ----------------------------------------------------------------------------
def matmul_bias(x2d, w, b, *, tile_m=DEFAULT_TILE_M):
    M, K = x2d.shape
    N = w.shape[1]
    tm = min(tile_m, M)
    cost = pl.CostEstimate(
        flops=2 * M * K * N, transcendentals=0,
        bytes_accessed=M * K * 4 + K * N * 2 + N * 4 + M * N * 4)
    return pl.pallas_call(
        _matmul_bias_kernel,
        out_shape=jax.ShapeDtypeStruct((M, N), jnp.float32),
        grid=(pl.cdiv(M, tm),),
        in_specs=[
            pl.BlockSpec((tm, K), lambda i: (i, 0)),
            pl.BlockSpec((K, N), lambda i: (0, 0)),
            pl.BlockSpec((1, N), lambda i: (0, 0)),
        ],
        out_specs=pl.BlockSpec((tm, N), lambda i: (i, 0)),
        compiler_params=pltpu.CompilerParams(
            dimension_semantics=("parallel",), vmem_limit_bytes=VMEM_LIMIT),
        cost_estimate=cost,
    )(x2d, w, b.reshape(1, N))


def linear_add_ln(x2d, res2d, w, b, gamma, beta, *, tile_m=DEFAULT_TILE_M):
    M, K = x2d.shape
    N = w.shape[1]
    tm = min(tile_m, M)
    cost = pl.CostEstimate(
        flops=2 * M * K * N + 10 * M * N, transcendentals=M,
        bytes_accessed=M * K * 4 + M * N * 4 + K * N * 2 + 3 * N * 4 + M * N * 4)
    return pl.pallas_call(
        _linear_add_ln_kernel,
        out_shape=jax.ShapeDtypeStruct((M, N), jnp.float32),
        grid=(pl.cdiv(M, tm),),
        in_specs=[
            pl.BlockSpec((tm, K), lambda i: (i, 0)),
            pl.BlockSpec((tm, N), lambda i: (i, 0)),
            pl.BlockSpec((K, N), lambda i: (0, 0)),
            pl.BlockSpec((1, N), lambda i: (0, 0)),
            pl.BlockSpec((1, N), lambda i: (0, 0)),
            pl.BlockSpec((1, N), lambda i: (0, 0)),
        ],
        out_specs=pl.BlockSpec((tm, N), lambda i: (i, 0)),
        compiler_params=pltpu.CompilerParams(
            dimension_semantics=("parallel",), vmem_limit_bytes=VMEM_LIMIT),
        cost_estimate=cost,
    )(x2d, res2d, w, b.reshape(1, N), gamma.reshape(1, N), beta.reshape(1, N))


def ffn_add_ln(x2d, w1, b1, w2, b2, gamma, beta, *, tile_m=DEFAULT_TILE_M):
    M, D = x2d.shape
    F = w1.shape[1]
    tm = min(tile_m, M)
    cost = pl.CostEstimate(
        flops=4 * M * D * F + 10 * M * D, transcendentals=M,
        bytes_accessed=2 * M * D * 4 + 2 * D * F * 2 + (F + 3 * D) * 4)
    return pl.pallas_call(
        _ffn_add_ln_kernel,
        out_shape=jax.ShapeDtypeStruct((M, D), jnp.float32),
        grid=(pl.cdiv(M, tm),),
        in_specs=[
            pl.BlockSpec((tm, D), lambda i: (i, 0)),
            pl.BlockSpec((D, F), lambda i: (0, 0)),
            pl.BlockSpec((1, F), lambda i: (0, 0)),
            pl.BlockSpec((F, D), lambda i: (0, 0)),
            pl.BlockSpec((1, D), lambda i: (0, 0)),
            pl.BlockSpec((1, D), lambda i: (0, 0)),
            pl.BlockSpec((1, D), lambda i: (0, 0)),
        ],
        out_specs=pl.BlockSpec((tm, D), lambda i: (i, 0)),
        compiler_params=pltpu.CompilerParams(
            dimension_semantics=("parallel",), vmem_limit_bytes=VMEM_LIMIT),
        cost_estimate=cost,
    )(x2d, w1, b1.reshape(1, F), w2, b2.reshape(1, D),
      gamma.reshape(1, D), beta.reshape(1, D))


def _attention_context(q_src, kv_src, key_mask, *, d_model, num_heads, causal,
                       q_idx, k_idx, v_idx):
    # q_src:(B,Sq,nq*D) kv_src:(B,Sk,nk*D); q/k/v selected via lane-block index,
    # so no head/qkv split transposes ever touch HBM.
    B, Sq = q_src.shape[0], q_src.shape[1]
    Sk = kv_src.shape[1]
    dh = d_model // num_heads
    scale = 1.0 / (dh ** 0.5)

    if key_mask is None:
        mask3d = jnp.ones((B, 1, Sk), jnp.float32)
    else:
        mask3d = key_mask.astype(jnp.float32).reshape(B, 1, Sk)

    kernel = functools.partial(_mha_kernel, num_heads=num_heads,
                               causal=causal, scale=scale)
    cost = pl.CostEstimate(
        flops=4 * B * Sq * Sk * d_model,
        transcendentals=B * num_heads * Sq * Sk,
        bytes_accessed=4 * B * (2 * Sq * d_model + 2 * Sk * d_model + Sk))
    return pl.pallas_call(
        kernel,
        out_shape=jax.ShapeDtypeStruct((B, Sq, d_model), jnp.float32),
        grid=(B,),
        in_specs=[
            pl.BlockSpec((1, Sq, d_model), lambda b: (b, 0, q_idx)),
            pl.BlockSpec((1, Sk, d_model), lambda b: (b, 0, k_idx)),
            pl.BlockSpec((1, Sk, d_model), lambda b: (b, 0, v_idx)),
            pl.BlockSpec((1, 1, Sk), lambda b: (b, 0, 0)),
        ],
        out_specs=pl.BlockSpec((1, Sq, d_model), lambda b: (b, 0, 0)),
        compiler_params=pltpu.CompilerParams(
            dimension_semantics=("parallel",), vmem_limit_bytes=VMEM_LIMIT),
        cost_estimate=cost,
    )(q_src, kv_src, kv_src, mask3d)


# ----------------------------------------------------------------------------
# Module-level forward (composition)
# ----------------------------------------------------------------------------
def multi_head_attention_context(x_q, x_kv, p, num_heads, *, causal, key_mask,
                                 self_attention):
    """Attention context (before the output projection, which is fused with
    the residual-add + LayerNorm by the caller)."""
    B, Sq, D = x_q.shape
    Sk = x_kv.shape[1]
    if self_attention:
        # fused Q/K/V projection: one matmul, x read from HBM once
        qkv = matmul_bias(x_q.reshape(B * Sq, D), p["w_qkv"], p["b_qkv"])
        qkv = qkv.reshape(B, Sq, 3 * D)
        return _attention_context(qkv, qkv, key_mask, d_model=D,
                                  num_heads=num_heads, causal=causal,
                                  q_idx=0, k_idx=1, v_idx=2)
    q = matmul_bias(x_q.reshape(B * Sq, D), p["wq"], p["bq"]).reshape(B, Sq, D)
    kv = matmul_bias(x_kv.reshape(B * Sk, D), p["w_kv"], p["b_kv"])
    kv = kv.reshape(B, Sk, 2 * D)
    return _attention_context(q, kv, key_mask, d_model=D, num_heads=num_heads,
                              causal=causal, q_idx=0, k_idx=0, v_idx=1)


def transformer_decoder_layer(x, encoder_output, params, num_heads,
                              encoder_attention_mask=None,
                              self_attention_mask=None):
    # Masks (if given) are key-padding masks of shape (B, S_key); nonzero=attend.
    B, S, D = x.shape
    x2d = x.reshape(B * S, D)

    # 1) causal self-attention; out-proj fused with residual-add + LN1
    p_sa = params["self_attn"]
    ctx1 = multi_head_attention_context(
        x, x, p_sa, num_heads, causal=True,
        key_mask=self_attention_mask, self_attention=True)
    x1 = linear_add_ln(ctx1.reshape(B * S, D), x2d, p_sa["wo"], p_sa["bo"],
                       params["ln1_g"], params["ln1_b"])

    # 2) cross-attention; out-proj fused with residual-add + LN2
    p_ca = params["cross_attn"]
    ctx2 = multi_head_attention_context(
        x1.reshape(B, S, D), encoder_output, p_ca, num_heads, causal=False,
        key_mask=encoder_attention_mask, self_attention=False)
    x2 = linear_add_ln(ctx2.reshape(B * S, D), x1, p_ca["wo"], p_ca["bo"],
                       params["ln2_g"], params["ln2_b"])

    # 3) positionwise FFN fused with residual-add + LN3
    out = ffn_add_ln(x2, params["ff_w1"], params["ff_b1"],
                     params["ff_w2"], params["ff_b2"],
                     params["ln3_g"], params["ln3_b"])
    return out.reshape(B, S, D)


# ----------------------------------------------------------------------------
# Deterministic parameter initialization (PyTorch-style uniform bounds)
# Weights are stored bf16 (MXU inputs); biases / LN params stay f32.
# ----------------------------------------------------------------------------
def _init_linear(key, fan_in, fan_out):
    kw, kb = jax.random.split(key)
    bound = 1.0 / (fan_in ** 0.5)
    w = jax.random.uniform(kw, (fan_in, fan_out), jnp.float32, -bound, bound)
    b = jax.random.uniform(kb, (fan_out,), jnp.float32, -bound, bound)
    return w, b


def init_params(key, d_model, d_ff):
    k_self, k_cross, k_ff1, k_ff2 = jax.random.split(key, 4)

    def mha_params(k, fuse_qkv):
        ks = jax.random.split(k, 4)
        wq, bq = _init_linear(ks[0], d_model, d_model)
        wk, bk = _init_linear(ks[1], d_model, d_model)
        wv, bv = _init_linear(ks[2], d_model, d_model)
        wo, bo = _init_linear(ks[3], d_model, d_model)
        if fuse_qkv:
            return dict(
                w_qkv=jnp.concatenate([wq, wk, wv], axis=1).astype(jnp.bfloat16),
                b_qkv=jnp.concatenate([bq, bk, bv]),
                wo=wo.astype(jnp.bfloat16), bo=bo)
        return dict(
            wq=wq.astype(jnp.bfloat16), bq=bq,
            w_kv=jnp.concatenate([wk, wv], axis=1).astype(jnp.bfloat16),
            b_kv=jnp.concatenate([bk, bv]),
            wo=wo.astype(jnp.bfloat16), bo=bo)

    ff_w1, ff_b1 = _init_linear(k_ff1, d_model, d_ff)
    ff_w2, ff_b2 = _init_linear(k_ff2, d_ff, d_model)

    return dict(
        self_attn=mha_params(k_self, True),
        cross_attn=mha_params(k_cross, False),
        ff_w1=ff_w1.astype(jnp.bfloat16), ff_b1=ff_b1,
        ff_w2=ff_w2.astype(jnp.bfloat16), ff_b2=ff_b2,
        ln1_g=jnp.ones((d_model,), jnp.float32),
        ln1_b=jnp.zeros((d_model,), jnp.float32),
        ln2_g=jnp.ones((d_model,), jnp.float32),
        ln2_b=jnp.zeros((d_model,), jnp.float32),
        ln3_g=jnp.ones((d_model,), jnp.float32),
        ln3_b=jnp.zeros((d_model,), jnp.float32),
    )


if __name__ == "__main__":
    # Small but TPU-friendly demo shapes: d_model multiple of 128, d_head = 128.
    B, S, S_ENC = 2, 8, 8
    D_MODEL, N_HEADS, D_FF = 256, 2, 512

    key = jax.random.PRNGKey(0)
    k_p, k_x, k_enc = jax.random.split(key, 3)

    params = init_params(k_p, D_MODEL, D_FF)
    x = jax.random.normal(k_x, (B, S, D_MODEL), jnp.float32)
    enc = jax.random.normal(k_enc, (B, S_ENC, D_MODEL), jnp.float32)

    fwd = jax.jit(functools.partial(transformer_decoder_layer, num_heads=N_HEADS))
    out = fwd(x, enc, params)
    out = jax.block_until_ready(out)

    assert out.shape == (B, S, D_MODEL)
    assert bool(jnp.all(jnp.isfinite(out)))
    print("KERNEL_OK")
</pallas_src>

<mosaic_0001>
module attributes {stable_mosaic.version = 11 : i64} {
  func.func @_matmul_bias_kernel(%arg0: i32, %arg1: memref<16x256xf32, #tpu.memory_space<vmem>>, %arg2: memref<256x768xbf16, #tpu.memory_space<vmem>>, %arg3: memref<1x768xf32, #tpu.memory_space<vmem>>, %arg4: memref<16x768xf32, #tpu.memory_space<vmem>>) attributes {dimension_semantics = [#tpu.dimension_semantics<parallel>], iteration_bounds = array<i64: 1>, scalar_prefetch = 0 : i64, scratch_operands = 0 : i64, tpu.core_type = #tpu.core_type<tc>, window_params = [{transform_indices = @transform_0, window_bounds = array<i64: 16, 256>}, {pipeline_mode = #tpu.pipeline_mode<synchronous>, transform_indices = @transform_1, window_bounds = array<i64: 256, 768>}, {pipeline_mode = #tpu.pipeline_mode<synchronous>, transform_indices = @transform_2, window_bounds = array<i64: 1, 768>}, {transform_indices = @transform_3, window_bounds = array<i64: 16, 768>}]} {
    %c0 = arith.constant 0 : index
    %c0_0 = arith.constant 0 : index
    %0 = vector.load %arg1[%c0, %c0_0] : memref<16x256xf32, #tpu.memory_space<vmem>>, vector<16x256xf32>
    %1 = arith.truncf %0 : vector<16x256xf32> to vector<16x256xbf16>
    %c0_1 = arith.constant 0 : index
    %c0_2 = arith.constant 0 : index
    %2 = vector.load %arg2[%c0_1, %c0_2] : memref<256x768xbf16, #tpu.memory_space<vmem>>, vector<256x768xbf16>
    %cst = arith.constant dense<0.000000e+00> : vector<16x768xf32>
    %3 = tpu.matmul %1, %2, %cst {dimension_numbers = #tpu.dot_dimension_numbers<[1], [0], [0], [1], [0, 0, 1, 1], [], []>} : vector<16x256xbf16>, vector<256x768xbf16>, vector<16x768xf32> -> vector<16x768xf32>
    %c0_3 = arith.constant 0 : index
    %c0_4 = arith.constant 0 : index
    %4 = vector.load %arg3[%c0_3, %c0_4] : memref<1x768xf32, #tpu.memory_space<vmem>>, vector<1x768xf32>
    %5 = vector.broadcast %4 : vector<1x768xf32> to vector<16x768xf32>
    %6 = arith.addf %3, %5 : vector<16x768xf32>
    %c0_5 = arith.constant 0 : index
    %c0_6 = arith.constant 0 : index
    %7 = vector.load %arg4[%c0_5, %c0_6] : memref<16x768xf32, #tpu.memory_space<vmem>>, vector<16x768xf32>
    tpu.vector_store %arg4[%c0_5, %c0_6], %6 {strides = array<i32>} : memref<16x768xf32, #tpu.memory_space<vmem>>, vector<16x768xf32>,
    return
  }
  func.func @transform_0(%arg0: i32) -> (i32, i32) {
    %c0_i32 = arith.constant 0 : i32
    %c0_i32_0 = arith.constant 0 : i32
    return %arg0, %c0_i32 : i32, i32
  }
  func.func @transform_1(%arg0: i32) -> (i32, i32) {
    %c0_i32 = arith.constant 0 : i32
    %c0_i32_0 = arith.constant 0 : i32
    %c0_i32_1 = arith.constant 0 : i32
    return %c0_i32, %c0_i32_0 : i32, i32
  }
  func.func @transform_2(%arg0: i32) -> (i32, i32) {
    %c0_i32 = arith.constant 0 : i32
    %c0_i32_0 = arith.constant 0 : i32
    %c0_i32_1 = arith.constant 0 : i32
    return %c0_i32, %c0_i32_0 : i32, i32
  }
  func.func @transform_3(%arg0: i32) -> (i32, i32) {
    %c0_i32 = arith.constant 0 : i32
    %c0_i32_0 = arith.constant 0 : i32
    return %arg0, %c0_i32 : i32, i32
  }
}

module attributes {stable_mosaic.version = 11 : i64} {
  func.func @_linear_add_ln_kernel(%arg0: i32, %arg1: memref<16x256xf32, #tpu.memory_space<vmem>>, %arg2: memref<16x256xf32, #tpu.memory_space<vmem>>, %arg3: memref<256x256xbf16, #tpu.memory_space<vmem>>, %arg4: memref<1x256xf32, #tpu.memory_space<vmem>>, %arg5: memref<1x256xf32, #tpu.memory_space<vmem>>, %arg6: memref<1x256xf32, #tpu.memory_space<vmem>>, %arg7: memref<16x256xf32, #tpu.memory_space<vmem>>) attributes {dimension_semantics = [#tpu.dimension_semantics<parallel>], iteration_bounds = array<i64: 1>, scalar_prefetch = 0 : i64, scratch_operands = 0 : i64, tpu.core_type = #tpu.core_type<tc>, window_params = [{transform_indices = @transform_0, window_bounds = array<i64: 16, 256>}, {transform_indices = @transform_1, window_bounds = array<i64: 16, 256>}, {pipeline_mode = #tpu.pipeline_mode<synchronous>, transform_indices = @transform_2, window_bounds = array<i64: 256, 256>}, {pipeline_mode = #tpu.pipeline_mode<synchronous>, transform_indices = @transform_3, window_bounds = array<i64: 1, 256>}, {pipeline_mode = #tpu.pipeline_mode<synchronous>, transform_indices = @transform_4, window_bounds = array<i64: 1, 256>}, {pipeline_mode = #tpu.pipeline_mode<synchronous>, transform_indices = @transform_5, window_bounds = array<i64: 1, 256>}, {transform_indices = @transform_6, window_bounds = array<i64: 16, 256>}]} {
    %c0 = arith.constant 0 : index
    %c0_0 = arith.constant 0 : index
    %0 = vector.load %arg1[%c0, %c0_0] : memref<16x256xf32, #tpu.memory_space<vmem>>, vector<16x256xf32>
    %1 = arith.truncf %0 : vector<16x256xf32> to vector<16x256xbf16>
    %c0_1 = arith.constant 0 : index
    %c0_2 = arith.constant 0 : index
    %2 = vector.load %arg3[%c0_1, %c0_2] : memref<256x256xbf16, #tpu.memory_space<vmem>>, vector<256x256xbf16>
    %cst = arith.constant dense<0.000000e+00> : vector<16x256xf32>
    %3 = tpu.matmul %1, %2, %cst {dimension_numbers = #tpu.dot_dimension_numbers<[1], [0], [0], [1], [0, 0, 1, 1], [], []>} : vector<16x256xbf16>, vector<256x256xbf16>, vector<16x256xf32> -> vector<16x256xf32>
    %c0_3 = arith.constant 0 : index
    %c0_4 = arith.constant 0 : index
    %4 = vector.load %arg4[%c0_3, %c0_4] : memref<1x256xf32, #tpu.memory_space<vmem>>, vector<1x256xf32>
    %5 = vector.broadcast %4 : vector<1x256xf32> to vector<16x256xf32>
    %6 = arith.addf %3, %5 : vector<16x256xf32>
    %c0_5 = arith.constant 0 : index
    %c0_6 = arith.constant 0 : index
    %7 = vector.load %arg2[%c0_5, %c0_6] : memref<16x256xf32, #tpu.memory_space<vmem>>, vector<16x256xf32>
    %8 = arith.addf %6, %7 : vector<16x256xf32>
    %cst_7 = arith.constant dense<0.000000e+00> : vector<16xf32>
    %9 = vector.multi_reduction <add>, %8, %cst_7 [1] : vector<16x256xf32> to vector<16xf32>
    %10 = vector.shape_cast %9 : vector<16xf32> to vector<16x1xf32>
    %cst_8 = arith.constant 2.560000e+02 : f32
    %11 = vector.broadcast %cst_8 : f32 to vector<16x1xf32>
    %12 = arith.divf %10, %11 : vector<16x1xf32>
    %13 = vector.broadcast %12 : vector<16x1xf32> to vector<16x256xf32>
    %14 = arith.subf %8, %13 : vector<16x256xf32>
    %15 = vector.broadcast %12 : vector<16x1xf32> to vector<16x256xf32>
    %16 = arith.subf %8, %15 : vector<16x256xf32>
    %17 = arith.mulf %14, %16 : vector<16x256xf32>
    %cst_9 = arith.constant dense<0.000000e+00> : vector<16xf32>
    %18 = vector.multi_reduction <add>, %17, %cst_9 [1] : vector<16x256xf32> to vector<16xf32>
    %19 = vector.shape_cast %18 : vector<16xf32> to vector<16x1xf32>
    %cst_10 = arith.constant 2.560000e+02 : f32
    %20 = vector.broadcast %cst_10 : f32 to vector<16x1xf32>
    %21 = arith.divf %19, %20 : vector<16x1xf32>
    %22 = vector.broadcast %12 : vector<16x1xf32> to vector<16x256xf32>
    %23 = arith.subf %8, %22 : vector<16x256xf32>
    %cst_11 = arith.constant 9.99999974E-6 : f32
    %24 = vector.broadcast %cst_11 : f32 to vector<16x1xf32>
    %25 = arith.addf %21, %24 : vector<16x1xf32>
    %26 = math.rsqrt %25 : vector<16x1xf32>
    %27 = vector.broadcast %26 : vector<16x1xf32> to vector<16x256xf32>
    %28 = arith.mulf %23, %27 : vector<16x256xf32>
    %c0_12 = arith.constant 0 : index
    %c0_13 = arith.constant 0 : index
    %29 = vector.load %arg5[%c0_12, %c0_13] : memref<1x256xf32, #tpu.memory_space<vmem>>, vector<1x256xf32>
    %30 = vector.broadcast %29 : vector<1x256xf32> to vector<16x256xf32>
    %31 = arith.mulf %28, %30 : vector<16x256xf32>
    %c0_14 = arith.constant 0 : index
    %c0_15 = arith.constant 0 : index
    %32 = vector.load %arg6[%c0_14, %c0_15] : memref<1x256xf32, #tpu.memory_space<vmem>>, vector<1x256xf32>
    %33 = vector.broadcast %32 : vector<1x256xf32> to vector<16x256xf32>
    %34 = arith.addf %31, %33 : vector<16x256xf32>
    %c0_16 = arith.constant 0 : index
    %c0_17 = arith.constant 0 : index
    %35 = vector.load %arg7[%c0_16, %c0_17] : memref<16x256xf32, #tpu.memory_space<vmem>>, vector<16x256xf32>
    tpu.vector_store %arg7[%c0_16, %c0_17], %34 {strides = array<i32>} : memref<16x256xf32, #tpu.memory_space<vmem>>, vector<16x256xf32>,
    return
  }
  func.func @transform_0(%arg0: i32) -> (i32, i32) {
    %c0_i32 = arith.constant 0 : i32
    %c0_i32_0 = arith.constant 0 : i32
    return %arg0, %c0_i32 : i32, i32
  }
  func.func @transform_1(%arg0: i32) -> (i32, i32) {
    %c0_i32 = arith.constant 0 : i32
    %c0_i32_0 = arith.constant 0 : i32
    return %arg0, %c0_i32 : i32, i32
  }
  func.func @transform_2(%arg0: i32) -> (i32, i32) {
    %c0_i32 = arith.constant 0 : i32
    %c0_i32_0 = arith.constant 0 : i32
    %c0_i32_1 = arith.constant 0 : i32
    return %c0_i32, %c0_i32_0 : i32, i32
  }
  func.func @transform_3(%arg0: i32) -> (i32, i32) {
    %c0_i32 = arith.constant 0 : i32
    %c0_i32_0 = arith.constant 0 : i32
    %c0_i32_1 = arith.constant 0 : i32
    return %c0_i32, %c0_i32_0 : i32, i32
  }
  func.func @transform_4(%arg0: i32) -> (i32, i32) {
    %c0_i32 = arith.constant 0 : i32
    %c0_i32_0 = arith.constant 0 : i32
    %c0_i32_1 = arith.constant 0 : i32
    return %c0_i32, %c0_i32_0 : i32, i32
  }
  func.func @transform_5(%arg0: i32) -> (i32, i32) {
    %c0_i32 = arith.constant 0 : i32
    %c0_i32_0 = arith.constant 0 : i32
    %c0_i32_1 = arith.constant 0 : i32
    return %c0_i32, %c0_i32_0 : i32, i32
  }
  func.func @transform_6(%arg0: i32) -> (i32, i32) {
    %c0_i32 = arith.constant 0 : i32
    %c0_i32_0 = arith.constant 0 : i32
    return %arg0, %c0_i32 : i32, i32
  }
}

module attributes {stable_mosaic.version = 11 : i64} {
  func.func @_mha_kernel(%arg0: i32, %arg1: memref<1x8x256xf32, #tpu.memory_space<vmem>>, %arg2: memref<1x8x256xf32, #tpu.memory_space<vmem>>, %arg3: memref<1x8x256xf32, #tpu.memory_space<vmem>>, %arg4: memref<1x1x8xf32, #tpu.memory_space<vmem>>, %arg5: memref<1x8x256xf32, #tpu.memory_space<vmem>>) attributes {dimension_semantics = [#tpu.dimension_semantics<parallel>], iteration_bounds = array<i64: 2>, scalar_prefetch = 0 : i64, scratch_operands = 0 : i64, tpu.core_type = #tpu.core_type<tc>, window_params = [{transform_indices = @transform_0, window_bounds = array<i64: 1, 8, 256>}, {transform_indices = @transform_1, window_bounds = array<i64: 1, 8, 256>}, {transform_indices = @transform_2, window_bounds = array<i64: 1, 8, 256>}, {transform_indices = @transform_3, window_bounds = array<i64: 1, 1, 8>}, {transform_indices = @transform_4, window_bounds = array<i64: 1, 8, 256>}]} {
    %c0 = arith.constant 0 : index
    %c0_0 = arith.constant 0 : index
    %c0_1 = arith.constant 0 : index
    %0 = vector.load %arg4[%c0, %c0_0, %c0_1] : memref<1x1x8xf32, #tpu.memory_space<vmem>>, vector<1x1x8xf32>
    %1 = vector.shape_cast %0 : vector<1x1x8xf32> to vector<1x8xf32>
    %cst = arith.constant 5.000000e-01 : f32
    %2 = vector.broadcast %cst : f32 to vector<1x8xf32>
    %3 = arith.cmpf ogt, %1, %2 : vector<1x8xf32>
    %cst_2 = arith.constant 0.000000e+00 : f32
    %cst_3 = arith.constant -1.000000e+09 : f32
    %4 = vector.broadcast %cst_2 : f32 to vector<1x8xf32>
    %5 = vector.broadcast %cst_3 : f32 to vector<1x8xf32>
    %6 = arith.select %3, %4, %5 : vector<1x8xi1>, vector<1x8xf32>
    %7 = vector.shape_cast %6 : vector<1x8xf32> to vector<1x8xf32>
    %8 = vector.broadcast %7 : vector<1x8xf32> to vector<8x8xf32>
    %9 = tpu.iota {dimensions = array<i32: 0>} : vector<8x8xi32>
    %10 = tpu.iota {dimensions = array<i32: 1>} : vector<8x8xi32>
    %11 = arith.cmpi sle, %10, %9 : vector<8x8xi32>
    %cst_4 = arith.constant -1.000000e+09 : f32
    %12 = vector.broadcast %cst_4 : f32 to vector<8x8xf32>
    %13 = arith.select %11, %8, %12 : vector<8x8xi1>, vector<8x8xf32>
    %c0_5 = arith.constant 0 : index
    %c0_6 = arith.constant 0 : index
    %c0_7 = arith.constant 0 : index
    %14 = vector.load %arg1[%c0_5, %c0_6, %c0_7] : memref<1x8x256xf32, #tpu.memory_space<vmem>>, vector<1x8x128xf32>
    %15 = vector.shape_cast %14 : vector<1x8x128xf32> to vector<8x128xf32>
    %cst_8 = arith.constant 0.0883883461 : f32
    %16 = vector.broadcast %cst_8 : f32 to vector<8x128xf32>
    %17 = arith.mulf %15, %16 : vector<8x128xf32>
    %18 = arith.truncf %17 : vector<8x128xf32> to vector<8x128xbf16>
    %c0_9 = arith.constant 0 : index
    %c0_10 = arith.constant 0 : index
    %c0_11 = arith.constant 0 : index
    %19 = vector.load %arg2[%c0_9, %c0_10, %c0_11] : memref<1x8x256xf32, #tpu.memory_space<vmem>>, vector<1x8x128xf32>
    %20 = vector.shape_cast %19 : vector<1x8x128xf32> to vector<8x128xf32>
    %21 = arith.truncf %20 : vector<8x128xf32> to vector<8x128xbf16>
    %c0_12 = arith.constant 0 : index
    %c0_13 = arith.constant 0 : index
    %c0_14 = arith.constant 0 : index
    %22 = vector.load %arg3[%c0_12, %c0_13, %c0_14] : memref<1x8x256xf32, #tpu.memory_space<vmem>>, vector<1x8x128xf32>
    %23 = vector.shape_cast %22 : vector<1x8x128xf32> to vector<8x128xf32>
    %24 = arith.truncf %23 : vector<8x128xf32> to vector<8x128xbf16>
    %cst_15 = arith.constant dense<0.000000e+00> : vector<8x8xf32>
    %25 = tpu.matmul %18, %21, %cst_15 {dimension_numbers = #tpu.dot_dimension_numbers<[1], [1], [0], [0], [0, 0, 1, 0], [], []>} : vector<8x128xbf16>, vector<8x128xbf16>, vector<8x8xf32> -> vector<8x8xf32>
    %26 = arith.addf %25, %13 : vector<8x8xf32>
    %cst_16 = arith.constant dense<0xFF800000> : vector<8xf32>
    %27 = vector.multi_reduction <maximumf>, %26, %cst_16 [1] : vector<8x8xf32> to vector<8xf32>
    %28 = vector.shape_cast %27 : vector<8xf32> to vector<8x1xf32>
    %29 = vector.broadcast %28 : vector<8x1xf32> to vector<8x8xf32>
    %30 = arith.subf %26, %29 : vector<8x8xf32>
    %31 = math.exp %30 : vector<8x8xf32>
    %cst_17 = arith.constant dense<0.000000e+00> : vector<8xf32>
    %32 = vector.multi_reduction <add>, %31, %cst_17 [1] : vector<8x8xf32> to vector<8xf32>
    %33 = vector.shape_cast %32 : vector<8xf32> to vector<8x1xf32>
    %34 = arith.truncf %31 : vector<8x8xf32> to vector<8x8xbf16>
    %cst_18 = arith.constant dense<0.000000e+00> : vector<8x128xf32>
    %35 = tpu.matmul %34, %24, %cst_18 {dimension_numbers = #tpu.dot_dimension_numbers<[1], [0], [0], [1], [0, 0, 1, 1], [], []>} : vector<8x8xbf16>, vector<8x128xbf16>, vector<8x128xf32> -> vector<8x128xf32>
    %36 = tpu.reciprocal %33 {approx = true} : vector<8x1xf32> -> vector<8x1xf32>
    %37 = vector.broadcast %36 : vector<8x1xf32> to vector<8x128xf32>
    %38 = arith.mulf %35, %37 : vector<8x128xf32>
    %c0_19 = arith.constant 0 : index
    %c0_20 = arith.constant 0 : index
    %c128 = arith.constant 128 : index
    %39 = vector.load %arg1[%c0_19, %c0_20, %c128] : memref<1x8x256xf32, #tpu.memory_space<vmem>>, vector<1x8x128xf32>
    %40 = vector.shape_cast %39 : vector<1x8x128xf32> to vector<8x128xf32>
    %cst_21 = arith.constant 0.0883883461 : f32
    %41 = vector.broadcast %cst_21 : f32 to vector<8x128xf32>
    %42 = arith.mulf %40, %41 : vector<8x128xf32>
    %43 = arith.truncf %42 : vector<8x128xf32> to vector<8x128xbf16>
    %c0_22 = arith.constant 0 : index
    %c0_23 = arith.constant 0 : index
    %c128_24 = arith.constant 128 : index
    %44 = vector.load %arg2[%c0_22, %c0_23, %c128_24] : memref<1x8x256xf32, #tpu.memory_space<vmem>>, vector<1x8x128xf32>
    %45 = vector.shape_cast %44 : vector<1x8x128xf32> to vector<8x128xf32>
    %46 = arith.truncf %45 : vector<8x128xf32> to vector<8x128xbf16>
    %c0_25 = arith.constant 0 : index
    %c0_26 = arith.constant 0 : index
    %c128_27 = arith.constant 128 : index
    %47 = vector.load %arg3[%c0_25, %c0_26, %c128_27] : memref<1x8x256xf32, #tpu.memory_space<vmem>>, vector<1x8x128xf32>
    %48 = vector.shape_cast %47 : vector<1x8x128xf32> to vector<8x128xf32>
    %49 = arith.truncf %48 : vector<8x128xf32> to vector<8x128xbf16>
    %cst_28 = arith.constant dense<0.000000e+00> : vector<8x8xf32>
    %50 = tpu.matmul %43, %46, %cst_28 {dimension_numbers = #tpu.dot_dimension_numbers<[1], [1], [0], [0], [0, 0, 1, 0], [], []>} : vector<8x128xbf16>, vector<8x128xbf16>, vector<8x8xf32> -> vector<8x8xf32>
    %51 = arith.addf %50, %13 : vector<8x8xf32>
    %cst_29 = arith.constant dense<0xFF800000> : vector<8xf32>
    %52 = vector.multi_reduction <maximumf>, %51, %cst_29 [1] : vector<8x8xf32> to vector<8xf32>
    %53 = vector.shape_cast %52 : vector<8xf32> to vector<8x1xf32>
    %54 = vector.broadcast %53 : vector<8x1xf32> to vector<8x8xf32>
    %55 = arith.subf %51, %54 : vector<8x8xf32>
    %56 = math.exp %55 : vector<8x8xf32>
    %cst_30 = arith.constant dense<0.000000e+00> : vector<8xf32>
    %57 = vector.multi_reduction <add>, %56, %cst_30 [1] : vector<8x8xf32> to vector<8xf32>
    %58 = vector.shape_cast %57 : vector<8xf32> to vector<8x1xf32>
    %59 = arith.truncf %56 : vector<8x8xf32> to vector<8x8xbf16>
    %cst_31 = arith.constant dense<0.000000e+00> : vector<8x128xf32>
    %60 = tpu.matmul %59, %49, %cst_31 {dimension_numbers = #tpu.dot_dimension_numbers<[1], [0], [0], [1], [0, 0, 1, 1], [], []>} : vector<8x8xbf16>, vector<8x128xbf16>, vector<8x128xf32> -> vector<8x128xf32>
    %61 = tpu.reciprocal %58 {approx = true} : vector<8x1xf32> -> vector<8x1xf32>
    %62 = vector.broadcast %61 : vector<8x1xf32> to vector<8x128xf32>
    %63 = arith.mulf %60, %62 : vector<8x128xf32>
    %64 = tpu.concatenate %38, %63 in 1 : vector<8x128xf32>, vector<8x128xf32> -> vector<8x256xf32>
    %c0_32 = arith.constant 0 : index
    %c0_33 = arith.constant 0 : index
    %c0_34 = arith.constant 0 : index
    %65 = vector.load %arg5[%c0_32, %c0_33, %c0_34] : memref<1x8x256xf32, #tpu.memory_space<vmem>>, vector<1x8x256xf32>
    %66 = vector.shape_cast %65 : vector<1x8x256xf32> to vector<8x256xf32>
    %67 = vector.shape_cast %64 : vector<8x256xf32> to vector<1x8x256xf32>
    tpu.vector_store %arg5[%c0_32, %c0_33, %c0_34], %67 {strides = array<i32>} : memref<1x8x256xf32, #tpu.memory_space<vmem>>, vector<1x8x256xf32>,
    return
  }
  func.func @transform_0(%arg0: i32) -> (i32, i32, i32) {
    %c0_i32 = arith.constant 0 : i32
    %c0_i32_0 = arith.constant 0 : i32
    %c0_i32_1 = arith.constant 0 : i32
    return %arg0, %c0_i32, %c0_i32_0 : i32, i32, i32
  }
  func.func @transform_1(%arg0: i32) -> (i32, i32, i32) {
    %c0_i32 = arith.constant 0 : i32
    %c1_i32 = arith.constant 1 : i32
    %c0_i32_0 = arith.constant 0 : i32
    return %arg0, %c0_i32, %c1_i32 : i32, i32, i32
  }
  func.func @transform_2(%arg0: i32) -> (i32, i32, i32) {
    %c0_i32 = arith.constant 0 : i32
    %c2_i32 = arith.constant 2 : i32
    %c0_i32_0 = arith.constant 0 : i32
    return %arg0, %c0_i32, %c2_i32 : i32, i32, i32
  }
  func.func @transform_3(%arg0: i32) -> (i32, i32, i32) {
    %c0_i32 = arith.constant 0 : i32
    %c0_i32_0 = arith.constant 0 : i32
    %c0_i32_1 = arith.constant 0 : i32
    return %arg0, %c0_i32, %c0_i32_0 : i32, i32, i32
  }
  func.func @transform_4(%arg0: i32) -> (i32, i32, i32) {
    %c0_i32 = arith.constant 0 : i32
    %c0_i32_0 = arith.constant 0 : i32
    %c0_i32_1 = arith.constant 0 : i32
    return %arg0, %c0_i32, %c0_i32_0 : i32, i32, i32
  }
}

module attributes {stable_mosaic.version = 11 : i64} {
  func.func @_matmul_bias_kernel(%arg0: i32, %arg1: memref<16x256xf32, #tpu.memory_space<vmem>>, %arg2: memref<256x256xbf16, #tpu.memory_space<vmem>>, %arg3: memref<1x256xf32, #tpu.memory_space<vmem>>, %arg4: memref<16x256xf32, #tpu.memory_space<vmem>>) attributes {dimension_semantics = [#tpu.dimension_semantics<parallel>], iteration_bounds = array<i64: 1>, scalar_prefetch = 0 : i64, scratch_operands = 0 : i64, tpu.core_type = #tpu.core_type<tc>, window_params = [{transform_indices = @transform_0, window_bounds = array<i64: 16, 256>}, {pipeline_mode = #tpu.pipeline_mode<synchronous>, transform_indices = @transform_1, window_bounds = array<i64: 256, 256>}, {pipeline_mode = #tpu.pipeline_mode<synchronous>, transform_indices = @transform_2, window_bounds = array<i64: 1, 256>}, {transform_indices = @transform_3, window_bounds = array<i64: 16, 256>}]} {
    %c0 = arith.constant 0 : index
    %c0_0 = arith.constant 0 : index
    %0 = vector.load %arg1[%c0, %c0_0] : memref<16x256xf32, #tpu.memory_space<vmem>>, vector<16x256xf32>
    %1 = arith.truncf %0 : vector<16x256xf32> to vector<16x256xbf16>
    %c0_1 = arith.constant 0 : index
    %c0_2 = arith.constant 0 : index
    %2 = vector.load %arg2[%c0_1, %c0_2] : memref<256x256xbf16, #tpu.memory_space<vmem>>, vector<256x256xbf16>
    %cst = arith.constant dense<0.000000e+00> : vector<16x256xf32>
    %3 = tpu.matmul %1, %2, %cst {dimension_numbers = #tpu.dot_dimension_numbers<[1], [0], [0], [1], [0, 0, 1, 1], [], []>} : vector<16x256xbf16>, vector<256x256xbf16>, vector<16x256xf32> -> vector<16x256xf32>
    %c0_3 = arith.constant 0 : index
    %c0_4 = arith.constant 0 : index
    %4 = vector.load %arg3[%c0_3, %c0_4] : memref<1x256xf32, #tpu.memory_space<vmem>>, vector<1x256xf32>
    %5 = vector.broadcast %4 : vector<1x256xf32> to vector<16x256xf32>
    %6 = arith.addf %3, %5 : vector<16x256xf32>
    %c0_5 = arith.constant 0 : index
    %c0_6 = arith.constant 0 : index
    %7 = vector.load %arg4[%c0_5, %c0_6] : memref<16x256xf32, #tpu.memory_space<vmem>>, vector<16x256xf32>
    tpu.vector_store %arg4[%c0_5, %c0_6], %6 {strides = array<i32>} : memref<16x256xf32, #tpu.memory_space<vmem>>, vector<16x256xf32>,
    return
  }
  func.func @transform_0(%arg0: i32) -> (i32, i32) {
    %c0_i32 = arith.constant 0 : i32
    %c0_i32_0 = arith.constant 0 : i32
    return %arg0, %c0_i32 : i32, i32
  }
  func.func @transform_1(%arg0: i32) -> (i32, i32) {
    %c0_i32 = arith.constant 0 : i32
    %c0_i32_0 = arith.constant 0 : i32
    %c0_i32_1 = arith.constant 0 : i32
    return %c0_i32, %c0_i32_0 : i32, i32
  }
  func.func @transform_2(%arg0: i32) -> (i32, i32) {
    %c0_i32 = arith.constant 0 : i32
    %c0_i32_0 = arith.constant 0 : i32
    %c0_i32_1 = arith.constant 0 : i32
    return %c0_i32, %c0_i32_0 : i32, i32
  }
  func.func @transform_3(%arg0: i32) -> (i32, i32) {
    %c0_i32 = arith.constant 0 : i32
    %c0_i32_0 = arith.constant 0 : i32
    return %arg0, %c0_i32 : i32, i32
  }
}

module attributes {stable_mosaic.version = 11 : i64} {
  func.func @_ffn_add_ln_kernel(%arg0: i32, %arg1: memref<16x256xf32, #tpu.memory_space<vmem>>, %arg2: memref<256x512xbf16, #tpu.memory_space<vmem>>, %arg3: memref<1x512xf32, #tpu.memory_space<vmem>>, %arg4: memref<512x256xbf16, #tpu.memory_space<vmem>>, %arg5: memref<1x256xf32, #tpu.memory_space<vmem>>, %arg6: memref<1x256xf32, #tpu.memory_space<vmem>>, %arg7: memref<1x256xf32, #tpu.memory_space<vmem>>, %arg8: memref<16x256xf32, #tpu.memory_space<vmem>>) attributes {dimension_semantics = [#tpu.dimension_semantics<parallel>], iteration_bounds = array<i64: 1>, scalar_prefetch = 0 : i64, scratch_operands = 0 : i64, tpu.core_type = #tpu.core_type<tc>, window_params = [{transform_indices = @transform_0, window_bounds = array<i64: 16, 256>}, {pipeline_mode = #tpu.pipeline_mode<synchronous>, transform_indices = @transform_1, window_bounds = array<i64: 256, 512>}, {pipeline_mode = #tpu.pipeline_mode<synchronous>, transform_indices = @transform_2, window_bounds = array<i64: 1, 512>}, {pipeline_mode = #tpu.pipeline_mode<synchronous>, transform_indices = @transform_3, window_bounds = array<i64: 512, 256>}, {pipeline_mode = #tpu.pipeline_mode<synchronous>, transform_indices = @transform_4, window_bounds = array<i64: 1, 256>}, {pipeline_mode = #tpu.pipeline_mode<synchronous>, transform_indices = @transform_5, window_bounds = array<i64: 1, 256>}, {pipeline_mode = #tpu.pipeline_mode<synchronous>, transform_indices = @transform_6, window_bounds = array<i64: 1, 256>}, {transform_indices = @transform_7, window_bounds = array<i64: 16, 256>}]} {
    %c0 = arith.constant 0 : index
    %c0_0 = arith.constant 0 : index
    %0 = vector.load %arg1[%c0, %c0_0] : memref<16x256xf32, #tpu.memory_space<vmem>>, vector<16x256xf32>
    %1 = arith.truncf %0 : vector<16x256xf32> to vector<16x256xbf16>
    %c0_1 = arith.constant 0 : index
    %c0_2 = arith.constant 0 : index
    %2 = vector.load %arg2[%c0_1, %c0_2] : memref<256x512xbf16, #tpu.memory_space<vmem>>, vector<256x512xbf16>
    %cst = arith.constant dense<0.000000e+00> : vector<16x512xf32>
    %3 = tpu.matmul %1, %2, %cst {dimension_numbers = #tpu.dot_dimension_numbers<[1], [0], [0], [1], [0, 0, 1, 1], [], []>} : vector<16x256xbf16>, vector<256x512xbf16>, vector<16x512xf32> -> vector<16x512xf32>
    %c0_3 = arith.constant 0 : index
    %c0_4 = arith.constant 0 : index
    %4 = vector.load %arg3[%c0_3, %c0_4] : memref<1x512xf32, #tpu.memory_space<vmem>>, vector<1x512xf32>
    %5 = vector.broadcast %4 : vector<1x512xf32> to vector<16x512xf32>
    %6 = arith.addf %3, %5 : vector<16x512xf32>
    %cst_5 = arith.constant 0.000000e+00 : f32
    %7 = vector.broadcast %cst_5 : f32 to vector<16x512xf32>
    %8 = arith.maximumf %6, %7 : vector<16x512xf32>
    %9 = arith.truncf %8 : vector<16x512xf32> to vector<16x512xbf16>
    %c0_6 = arith.constant 0 : index
    %c0_7 = arith.constant 0 : index
    %10 = vector.load %arg4[%c0_6, %c0_7] : memref<512x256xbf16, #tpu.memory_space<vmem>>, vector<512x256xbf16>
    %cst_8 = arith.constant dense<0.000000e+00> : vector<16x256xf32>
    %11 = tpu.matmul %9, %10, %cst_8 {dimension_numbers = #tpu.dot_dimension_numbers<[1], [0], [0], [1], [0, 0, 1, 1], [], []>} : vector<16x512xbf16>, vector<512x256xbf16>, vector<16x256xf32> -> vector<16x256xf32>
    %c0_9 = arith.constant 0 : index
    %c0_10 = arith.constant 0 : index
    %12 = vector.load %arg5[%c0_9, %c0_10] : memref<1x256xf32, #tpu.memory_space<vmem>>, vector<1x256xf32>
    %13 = vector.broadcast %12 : vector<1x256xf32> to vector<16x256xf32>
    %14 = arith.addf %11, %13 : vector<16x256xf32>
    %15 = arith.addf %14, %0 : vector<16x256xf32>
    %cst_11 = arith.constant dense<0.000000e+00> : vector<16xf32>
    %16 = vector.multi_reduction <add>, %15, %cst_11 [1] : vector<16x256xf32> to vector<16xf32>
    %17 = vector.shape_cast %16 : vector<16xf32> to vector<16x1xf32>
    %cst_12 = arith.constant 2.560000e+02 : f32
    %18 = vector.broadcast %cst_12 : f32 to vector<16x1xf32>
    %19 = arith.divf %17, %18 : vector<16x1xf32>
    %20 = vector.broadcast %19 : vector<16x1xf32> to vector<16x256xf32>
    %21 = arith.subf %15, %20 : vector<16x256xf32>
    %22 = vector.broadcast %19 : vector<16x1xf32> to vector<16x256xf32>
    %23 = arith.subf %15, %22 : vector<16x256xf32>
    %24 = arith.mulf %21, %23 : vector<16x256xf32>
    %cst_13 = arith.constant dense<0.000000e+00> : vector<16xf32>
    %25 = vector.multi_reduction <add>, %24, %cst_13 [1] : vector<16x256xf32> to vector<16xf32>
    %26 = vector.shape_cast %25 : vector<16xf32> to vector<16x1xf32>
    %cst_14 = arith.constant 2.560000e+02 : f32
    %27 = vector.broadcast %cst_14 : f32 to vector<16x1xf32>
    %28 = arith.divf %26, %27 : vector<16x1xf32>
    %29 = vector.broadcast %19 : vector<16x1xf32> to vector<16x256xf32>
    %30 = arith.subf %15, %29 : vector<16x256xf32>
    %cst_15 = arith.constant 9.99999974E-6 : f32
    %31 = vector.broadcast %cst_15 : f32 to vector<16x1xf32>
    %32 = arith.addf %28, %31 : vector<16x1xf32>
    %33 = math.rsqrt %32 : vector<16x1xf32>
    %34 = vector.broadcast %33 : vector<16x1xf32> to vector<16x256xf32>
    %35 = arith.mulf %30, %34 : vector<16x256xf32>
    %c0_16 = arith.constant 0 : index
    %c0_17 = arith.constant 0 : index
    %36 = vector.load %arg6[%c0_16, %c0_17] : memref<1x256xf32, #tpu.memory_space<vmem>>, vector<1x256xf32>
    %37 = vector.broadcast %36 : vector<1x256xf32> to vector<16x256xf32>
    %38 = arith.mulf %35, %37 : vector<16x256xf32>
    %c0_18 = arith.constant 0 : index
    %c0_19 = arith.constant 0 : index
    %39 = vector.load %arg7[%c0_18, %c0_19] : memref<1x256xf32, #tpu.memory_space<vmem>>, vector<1x256xf32>
    %40 = vector.broadcast %39 : vector<1x256xf32> to vector<16x256xf32>
    %41 = arith.addf %38, %40 : vector<16x256xf32>
    %c0_20 = arith.constant 0 : index
    %c0_21 = arith.constant 0 : index
    %42 = vector.load %arg8[%c0_20, %c0_21] : memref<16x256xf32, #tpu.memory_space<vmem>>, vector<16x256xf32>
    tpu.vector_store %arg8[%c0_20, %c0_21], %41 {strides = array<i32>} : memref<16x256xf32, #tpu.memory_space<vmem>>, vector<16x256xf32>,
    return
  }
  func.func @transform_0(%arg0: i32) -> (i32, i32) {
    %c0_i32 = arith.constant 0 : i32
    %c0_i32_0 = arith.constant 0 : i32
    return %arg0, %c0_i32 : i32, i32
  }
  func.func @transform_1(%arg0: i32) -> (i32, i32) {
    %c0_i32 = arith.constant 0 : i32
    %c0_i32_0 = arith.constant 0 : i32
    %c0_i32_1 = arith.constant 0 : i32
    return %c0_i32, %c0_i32_0 : i32, i32
  }
  func.func @transform_2(%arg0: i32) -> (i32, i32) {
    %c0_i32 = arith.constant 0 : i32
    %c0_i32_0 = arith.constant 0 : i32
    %c0_i32_1 = arith.constant 0 : i32
    return %c0_i32, %c0_i32_0 : i32, i32
  }
  func.func @transform_3(%arg0: i32) -> (i32, i32) {
    %c0_i32 = arith.constant 0 : i32
    %c0_i32_0 = arith.constant 0 : i32
    %c0_i32_1 = arith.constant 0 : i32
    return %c0_i32, %c0_i32_0 : i32, i32
  }
  func.func @transform_4(%arg0: i32) -> (i32, i32) {
    %c0_i32 = arith.constant 0 : i32
    %c0_i32_0 = arith.constant 0 : i32
    %c0_i32_1 = arith.constant 0 : i32
    return %c0_i32, %c0_i32_0 : i32, i32
  }
  func.func @transform_5(%arg0: i32) -> (i32, i32) {
    %c0_i32 = arith.constant 0 : i32
    %c0_i32_0 = arith.constant 0 : i32
    %c0_i32_1 = arith.constant 0 : i32
    return %c0_i32, %c0_i32_0 : i32, i32
  }
  func.func @transform_6(%arg0: i32) -> (i32, i32) {
    %c0_i32 = arith.constant 0 : i32
    %c0_i32_0 = arith.constant 0 : i32
    %c0_i32_1 = arith.constant 0 : i32
    return %c0_i32, %c0_i32_0 : i32, i32
  }
  func.func @transform_7(%arg0: i32) -> (i32, i32) {
    %c0_i32 = arith.constant 0 : i32
    %c0_i32_0 = arith.constant 0 : i32
    return %arg0, %c0_i32 : i32, i32
  }
}

module attributes {stable_mosaic.version = 11 : i64} {
  func.func @_matmul_bias_kernel(%arg0: i32, %arg1: memref<16x256xf32, #tpu.memory_space<vmem>>, %arg2: memref<256x512xbf16, #tpu.memory_space<vmem>>, %arg3: memref<1x512xf32, #tpu.memory_space<vmem>>, %arg4: memref<16x512xf32, #tpu.memory_space<vmem>>) attributes {dimension_semantics = [#tpu.dimension_semantics<parallel>], iteration_bounds = array<i64: 1>, scalar_prefetch = 0 : i64, scratch_operands = 0 : i64, tpu.core_type = #tpu.core_type<tc>, window_params = [{transform_indices = @transform_0, window_bounds = array<i64: 16, 256>}, {pipeline_mode = #tpu.pipeline_mode<synchronous>, transform_indices = @transform_1, window_bounds = array<i64: 256, 512>}, {pipeline_mode = #tpu.pipeline_mode<synchronous>, transform_indices = @transform_2, window_bounds = array<i64: 1, 512>}, {transform_indices = @transform_3, window_bounds = array<i64: 16, 512>}]} {
    %c0 = arith.constant 0 : index
    %c0_0 = arith.constant 0 : index
    %0 = vector.load %arg1[%c0, %c0_0] : memref<16x256xf32, #tpu.memory_space<vmem>>, vector<16x256xf32>
    %1 = arith.truncf %0 : vector<16x256xf32> to vector<16x256xbf16>
    %c0_1 = arith.constant 0 : index
    %c0_2 = arith.constant 0 : index
    %2 = vector.load %arg2[%c0_1, %c0_2] : memref<256x512xbf16, #tpu.memory_space<vmem>>, vector<256x512xbf16>
    %cst = arith.constant dense<0.000000e+00> : vector<16x512xf32>
    %3 = tpu.matmul %1, %2, %cst {dimension_numbers = #tpu.dot_dimension_numbers<[1], [0], [0], [1], [0, 0, 1, 1], [], []>} : vector<16x256xbf16>, vector<256x512xbf16>, vector<16x512xf32> -> vector<16x512xf32>
    %c0_3 = arith.constant 0 : index
    %c0_4 = arith.constant 0 : index
    %4 = vector.load %arg3[%c0_3, %c0_4] : memref<1x512xf32, #tpu.memory_space<vmem>>, vector<1x512xf32>
    %5 = vector.broadcast %4 : vector<1x512xf32> to vector<16x512xf32>
    %6 = arith.addf %3, %5 : vector<16x512xf32>
    %c0_5 = arith.constant 0 : index
    %c0_6 = arith.constant 0 : index
    %7 = vector.load %arg4[%c0_5, %c0_6] : memref<16x512xf32, #tpu.memory_space<vmem>>, vector<16x512xf32>
    tpu.vector_store %arg4[%c0_5, %c0_6], %6 {strides = array<i32>} : memref<16x512xf32, #tpu.memory_space<vmem>>, vector<16x512xf32>,
    return
  }
  func.func @transform_0(%arg0: i32) -> (i32, i32) {
    %c0_i32 = arith.constant 0 : i32
    %c0_i32_0 = arith.constant 0 : i32
    return %arg0, %c0_i32 : i32, i32
  }
  func.func @transform_1(%arg0: i32) -> (i32, i32) {
    %c0_i32 = arith.constant 0 : i32
    %c0_i32_0 = arith.constant 0 : i32
    %c0_i32_1 = arith.constant 0 : i32
    return %c0_i32, %c0_i32_0 : i32, i32
  }
  func.func @transform_2(%arg0: i32) -> (i32, i32) {
    %c0_i32 = arith.constant 0 : i32
    %c0_i32_0 = arith.constant 0 : i32
    %c0_i32_1 = arith.constant 0 : i32
    return %c0_i32, %c0_i32_0 : i32, i32
  }
  func.func @transform_3(%arg0: i32) -> (i32, i32) {
    %c0_i32 = arith.constant 0 : i32
    %c0_i32_0 = arith.constant 0 : i32
    return %arg0, %c0_i32 : i32, i32
  }
}

module attributes {stable_mosaic.version = 11 : i64} {
  func.func @_mha_kernel(%arg0: i32, %arg1: memref<1x8x256xf32, #tpu.memory_space<vmem>>, %arg2: memref<1x8x256xf32, #tpu.memory_space<vmem>>, %arg3: memref<1x8x256xf32, #tpu.memory_space<vmem>>, %arg4: memref<1x1x8xf32, #tpu.memory_space<vmem>>, %arg5: memref<1x8x256xf32, #tpu.memory_space<vmem>>) attributes {dimension_semantics = [#tpu.dimension_semantics<parallel>], iteration_bounds = array<i64: 2>, scalar_prefetch = 0 : i64, scratch_operands = 0 : i64, tpu.core_type = #tpu.core_type<tc>, window_params = [{transform_indices = @transform_0, window_bounds = array<i64: 1, 8, 256>}, {transform_indices = @transform_1, window_bounds = array<i64: 1, 8, 256>}, {transform_indices = @transform_2, window_bounds = array<i64: 1, 8, 256>}, {transform_indices = @transform_3, window_bounds = array<i64: 1, 1, 8>}, {transform_indices = @transform_4, window_bounds = array<i64: 1, 8, 256>}]} {
    %c0 = arith.constant 0 : index
    %c0_0 = arith.constant 0 : index
    %c0_1 = arith.constant 0 : index
    %0 = vector.load %arg4[%c0, %c0_0, %c0_1] : memref<1x1x8xf32, #tpu.memory_space<vmem>>, vector<1x1x8xf32>
    %1 = vector.shape_cast %0 : vector<1x1x8xf32> to vector<1x8xf32>
    %cst = arith.constant 5.000000e-01 : f32
    %2 = vector.broadcast %cst : f32 to vector<1x8xf32>
    %3 = arith.cmpf ogt, %1, %2 : vector<1x8xf32>
    %cst_2 = arith.constant 0.000000e+00 : f32
    %cst_3 = arith.constant -1.000000e+09 : f32
    %4 = vector.broadcast %cst_2 : f32 to vector<1x8xf32>
    %5 = vector.broadcast %cst_3 : f32 to vector<1x8xf32>
    %6 = arith.select %3, %4, %5 : vector<1x8xi1>, vector<1x8xf32>
    %7 = vector.shape_cast %6 : vector<1x8xf32> to vector<1x8xf32>
    %8 = vector.broadcast %7 : vector<1x8xf32> to vector<8x8xf32>
    %c0_4 = arith.constant 0 : index
    %c0_5 = arith.constant 0 : index
    %c0_6 = arith.constant 0 : index
    %9 = vector.load %arg1[%c0_4, %c0_5, %c0_6] : memref<1x8x256xf32, #tpu.memory_space<vmem>>, vector<1x8x128xf32>
    %10 = vector.shape_cast %9 : vector<1x8x128xf32> to vector<8x128xf32>
    %cst_7 = arith.constant 0.0883883461 : f32
    %11 = vector.broadcast %cst_7 : f32 to vector<8x128xf32>
    %12 = arith.mulf %10, %11 : vector<8x128xf32>
    %13 = arith.truncf %12 : vector<8x128xf32> to vector<8x128xbf16>
    %c0_8 = arith.constant 0 : index
    %c0_9 = arith.constant 0 : index
    %c0_10 = arith.constant 0 : index
    %14 = vector.load %arg2[%c0_8, %c0_9, %c0_10] : memref<1x8x256xf32, #tpu.memory_space<vmem>>, vector<1x8x128xf32>
    %15 = vector.shape_cast %14 : vector<1x8x128xf32> to vector<8x128xf32>
    %16 = arith.truncf %15 : vector<8x128xf32> to vector<8x128xbf16>
    %c0_11 = arith.constant 0 : index
    %c0_12 = arith.constant 0 : index
    %c0_13 = arith.constant 0 : index
    %17 = vector.load %arg3[%c0_11, %c0_12, %c0_13] : memref<1x8x256xf32, #tpu.memory_space<vmem>>, vector<1x8x128xf32>
    %18 = vector.shape_cast %17 : vector<1x8x128xf32> to vector<8x128xf32>
    %19 = arith.truncf %18 : vector<8x128xf32> to vector<8x128xbf16>
    %cst_14 = arith.constant dense<0.000000e+00> : vector<8x8xf32>
    %20 = tpu.matmul %13, %16, %cst_14 {dimension_numbers = #tpu.dot_dimension_numbers<[1], [1], [0], [0], [0, 0, 1, 0], [], []>} : vector<8x128xbf16>, vector<8x128xbf16>, vector<8x8xf32> -> vector<8x8xf32>
    %21 = arith.addf %20, %8 : vector<8x8xf32>
    %cst_15 = arith.constant dense<0xFF800000> : vector<8xf32>
    %22 = vector.multi_reduction <maximumf>, %21, %cst_15 [1] : vector<8x8xf32> to vector<8xf32>
    %23 = vector.shape_cast %22 : vector<8xf32> to vector<8x1xf32>
    %24 = vector.broadcast %23 : vector<8x1xf32> to vector<8x8xf32>
    %25 = arith.subf %21, %24 : vector<8x8xf32>
    %26 = math.exp %25 : vector<8x8xf32>
    %cst_16 = arith.constant dense<0.000000e+00> : vector<8xf32>
    %27 = vector.multi_reduction <add>, %26, %cst_16 [1] : vector<8x8xf32> to vector<8xf32>
    %28 = vector.shape_cast %27 : vector<8xf32> to vector<8x1xf32>
    %29 = arith.truncf %26 : vector<8x8xf32> to vector<8x8xbf16>
    %cst_17 = arith.constant dense<0.000000e+00> : vector<8x128xf32>
    %30 = tpu.matmul %29, %19, %cst_17 {dimension_numbers = #tpu.dot_dimension_numbers<[1], [0], [0], [1], [0, 0, 1, 1], [], []>} : vector<8x8xbf16>, vector<8x128xbf16>, vector<8x128xf32> -> vector<8x128xf32>
    %31 = tpu.reciprocal %28 {approx = true} : vector<8x1xf32> -> vector<8x1xf32>
    %32 = vector.broadcast %31 : vector<8x1xf32> to vector<8x128xf32>
    %33 = arith.mulf %30, %32 : vector<8x128xf32>
    %c0_18 = arith.constant 0 : index
    %c0_19 = arith.constant 0 : index
    %c128 = arith.constant 128 : index
    %34 = vector.load %arg1[%c0_18, %c0_19, %c128] : memref<1x8x256xf32, #tpu.memory_space<vmem>>, vector<1x8x128xf32>
    %35 = vector.shape_cast %34 : vector<1x8x128xf32> to vector<8x128xf32>
    %cst_20 = arith.constant 0.0883883461 : f32
    %36 = vector.broadcast %cst_20 : f32 to vector<8x128xf32>
    %37 = arith.mulf %35, %36 : vector<8x128xf32>
    %38 = arith.truncf %37 : vector<8x128xf32> to vector<8x128xbf16>
    %c0_21 = arith.constant 0 : index
    %c0_22 = arith.constant 0 : index
    %c128_23 = arith.constant 128 : index
    %39 = vector.load %arg2[%c0_21, %c0_22, %c128_23] : memref<1x8x256xf32, #tpu.memory_space<vmem>>, vector<1x8x128xf32>
    %40 = vector.shape_cast %39 : vector<1x8x128xf32> to vector<8x128xf32>
    %41 = arith.truncf %40 : vector<8x128xf32> to vector<8x128xbf16>
    %c0_24 = arith.constant 0 : index
    %c0_25 = arith.constant 0 : index
    %c128_26 = arith.constant 128 : index
    %42 = vector.load %arg3[%c0_24, %c0_25, %c128_26] : memref<1x8x256xf32, #tpu.memory_space<vmem>>, vector<1x8x128xf32>
    %43 = vector.shape_cast %42 : vector<1x8x128xf32> to vector<8x128xf32>
    %44 = arith.truncf %43 : vector<8x128xf32> to vector<8x128xbf16>
    %cst_27 = arith.constant dense<0.000000e+00> : vector<8x8xf32>
    %45 = tpu.matmul %38, %41, %cst_27 {dimension_numbers = #tpu.dot_dimension_numbers<[1], [1], [0], [0], [0, 0, 1, 0], [], []>} : vector<8x128xbf16>, vector<8x128xbf16>, vector<8x8xf32> -> vector<8x8xf32>
    %46 = arith.addf %45, %8 : vector<8x8xf32>
    %cst_28 = arith.constant dense<0xFF800000> : vector<8xf32>
    %47 = vector.multi_reduction <maximumf>, %46, %cst_28 [1] : vector<8x8xf32> to vector<8xf32>
    %48 = vector.shape_cast %47 : vector<8xf32> to vector<8x1xf32>
    %49 = vector.broadcast %48 : vector<8x1xf32> to vector<8x8xf32>
    %50 = arith.subf %46, %49 : vector<8x8xf32>
    %51 = math.exp %50 : vector<8x8xf32>
    %cst_29 = arith.constant dense<0.000000e+00> : vector<8xf32>
    %52 = vector.multi_reduction <add>, %51, %cst_29 [1] : vector<8x8xf32> to vector<8xf32>
    %53 = vector.shape_cast %52 : vector<8xf32> to vector<8x1xf32>
    %54 = arith.truncf %51 : vector<8x8xf32> to vector<8x8xbf16>
    %cst_30 = arith.constant dense<0.000000e+00> : vector<8x128xf32>
    %55 = tpu.matmul %54, %44, %cst_30 {dimension_numbers = #tpu.dot_dimension_numbers<[1], [0], [0], [1], [0, 0, 1, 1], [], []>} : vector<8x8xbf16>, vector<8x128xbf16>, vector<8x128xf32> -> vector<8x128xf32>
    %56 = tpu.reciprocal %53 {approx = true} : vector<8x1xf32> -> vector<8x1xf32>
    %57 = vector.broadcast %56 : vector<8x1xf32> to vector<8x128xf32>
    %58 = arith.mulf %55, %57 : vector<8x128xf32>
    %59 = tpu.concatenate %33, %58 in 1 : vector<8x128xf32>, vector<8x128xf32> -> vector<8x256xf32>
    %c0_31 = arith.constant 0 : index
    %c0_32 = arith.constant 0 : index
    %c0_33 = arith.constant 0 : index
    %60 = vector.load %arg5[%c0_31, %c0_32, %c0_33] : memref<1x8x256xf32, #tpu.memory_space<vmem>>, vector<1x8x256xf32>
    %61 = vector.shape_cast %60 : vector<1x8x256xf32> to vector<8x256xf32>
    %62 = vector.shape_cast %59 : vector<8x256xf32> to vector<1x8x256xf32>
    tpu.vector_store %arg5[%c0_31, %c0_32, %c0_33], %62 {strides = array<i32>} : memref<1x8x256xf32, #tpu.memory_space<vmem>>, vector<1x8x256xf32>,
    return
  }
  func.func @transform_0(%arg0: i32) -> (i32, i32, i32) {
    %c0_i32 = arith.constant 0 : i32
    %c0_i32_0 = arith.constant 0 : i32
    %c0_i32_1 = arith.constant 0 : i32
    return %arg0, %c0_i32, %c0_i32_0 : i32, i32, i32
  }
  func.func @transform_1(%arg0: i32) -> (i32, i32, i32) {
    %c0_i32 = arith.constant 0 : i32
    %c0_i32_0 = arith.constant 0 : i32
    %c0_i32_1 = arith.constant 0 : i32
    return %arg0, %c0_i32, %c0_i32_0 : i32, i32, i32
  }
  func.func @transform_2(%arg0: i32) -> (i32, i32, i32) {
    %c0_i32 = arith.constant 0 : i32
    %c1_i32 = arith.constant 1 : i32
    %c0_i32_0 = arith.constant 0 : i32
    return %arg0, %c0_i32, %c1_i32 : i32, i32, i32
  }
  func.func @transform_3(%arg0: i32) -> (i32, i32, i32) {
    %c0_i32 = arith.constant 0 : i32
    %c0_i32_0 = arith.constant 0 : i32
    %c0_i32_1 = arith.constant 0 : i32
    return %arg0, %c0_i32, %c0_i32_0 : i32, i32, i32
  }
  func.func @transform_4(%arg0: i32) -> (i32, i32, i32) {
    %c0_i32 = arith.constant 0 : i32
    %c0_i32_0 = arith.constant 0 : i32
    %c0_i32_1 = arith.constant 0 : i32
    return %arg0, %c0_i32, %c0_i32_0 : i32, i32, i32
  }
}

</mosaic_0001>

<bundles_post_ra>
// kernel: transformer_decoder_layer.9
= control target key start
LH: loop header
LB: loop body
LE: loop exit
PB: predicated region body
PF: predicated region fallthrough
CT: control target
= control target key end

     0   :  { %s695_s15 = smov 0   ;;  %s757_s0 = inlined_call_operand.vmem [shape: f32[2,8,768], index: 0, kind: input, shape index: {}, may-alias: {0,1,2}]   ;;  %s758_s1 = inlined_call_operand.vmem [shape: f32[2,8,768], index: 1, kind: input, shape index: {}, may-alias: {0,1,2}]   ;;  %s759_s2 = inlined_call_operand.vmem [shape: f32[2,8,768], index: 2, kind: input, shape index: {}, may-alias: {0,1,2}]   ;;  %s760_s3 = inlined_call_operand.vmem [shape: f32[2,1,8], index: 3, kind: input, shape index: {}]   ;;  %s761_s4 = inlined_call_operand.vmem [shape: f32[2,8,256], index: 4, kind: output, shape index: {}]  }
   0x1 LB: > { %s588_s16 = sadd.s32 4294967295, %s665_s15   ;;  %p592_p0 = scmp.ge.s32.totalorder %s665_s15, 1  ;;  %s665_s15 = sphi %s695_s15, %s14_s15  }
   0x2   : > { %p192_p1 = scmp.lt.s32.totalorder %s665_s15, 3 }
   0x4   : > { %p193_p2 = pnand %p592_p0, %p192_p1 }
   0x5   : > { %p233_p3 = scmp.lt.s32.totalorder (!%p193_p2), %s588_s16, 1 }
   0x6   : > { %196 = sbr.rel (%p193_p2) target bundleno = 940 (0x3ac), region = 36 }
   0xb   : > { %v667_v0 = vmov 0.0   ;;  %vm668_vm0 = vmmov 0   ;;  %s763_s16 = smov (!%p233_p3, %s588_s16), 1  ;;  %v263_v6 = vlaneseq  ;;  %v669_v10 = vmov -1e+09  }
   0xc   : > { %615 = vmatprep.subr.bf16.mxu0 %v667_v0  ;;  %617 = vmatprep.mubr.msk.bf16.mxu0 %vm668_vm0, %v667_v0  ;;  %s712_s17 = smul.u32 48, %s763_s16  ;;  %s252_s26 = scalar_lea.vmem %s760_s3, %s763_s16  ;;  %vm321_vm3 = vcmask 64512   ;;  %vm335_vm4 = vcmask 1043456  }
   0xd   : > { %621 = vmatprep.subr.bf16.mxu1 %v667_v0  ;;  %623 = vmatprep.mubr.msk.bf16.mxu1 %vm668_vm0, %v667_v0  ;;  %v259_v7 = vld [vmem:[%s252_s26] sm:$0x1]  ;;  %v264_v8 = vshrl.u32 %v263_v6, 7  ;;  %v271_v12 = vand.u32 127, %v263_v6  ;;  %s606_s30 = sshll.u32 %s763_s16, 4 }
   0xe   : > { %s718_s20 = scalar_lea.vmem %s758_s1, %s712_s17  ;;  %s724_s23 = scalar_lea.vmem %s757_s0, %s712_s17  ;;  %vm260_vm1 = vcmp.gt.f32.partialorder %v259_v7, 0.5 }
   0xf   : > { %v598_v1 = vld [vmem:[%s718_s20 + $0x10] sm:$0xff]  ;;  %v274_v2 = vld [vmem:[%s724_s23] sm:$0xff]  ;;  %v265_v9 = vsub.s32 0, %v264_v8  ;;  %v261_v11 = vsel %vm260_vm1, 0.0, %v669_v10  ;;  %vm272_vm2 = vcmp.le.s32.totalorder %v271_v12, %v264_v8  ;;  %s541_s29 = scalar_lea.vmem %s759_s2, %s712_s17  ;;  %v601_v30 = vld [vmem:[%s718_s20 + $0x18] sm:$0xff]  ;;  %s257_s7 = scalar_lea.vmem %s761_s4, %s606_s30 }
  0x10   : > { %v278_v3 = vpack.c.bf16 %v598_v1, %v598_v1  ;;  %v275_v4 = vmul.f32 0.088388346, %v274_v2  ;;  %v599_v21 = vld [vmem:[%s541_s29 + $0x20] sm:$0xff]  ;;  %v602_v22 = vld [vmem:[%s541_s29 + $0x28] sm:$0xff]  ;;  %v385_v32 = vpack.c.bf16 %v601_v30, %v601_v30 }
  0x11   : > { %v266_v13 = vrot.slane %v261_v11, %v265_v9  ;;  %v280_v23 = vpack.c.bf16 %v599_v21, %v599_v21  ;;  %v387_v24 = vpack.c.bf16 %v602_v22, %v602_v22  ;;  %v381_v33 = vld [vmem:[%s724_s23 + $0x8] sm:$0xff] }
  0x12   : > { %616 = vmatpush3.bf16.xpose.msra.mxu0 %v278_v3  ;;  %v276_v5 = vpack.c.bf16 %v275_v4, %v275_v4  ;;  %v382_v36 = vmul.f32 0.088388346, %v381_v33 }
  0x13   : > { %633 = vmatprep.subr.bf16.mxu0 %v667_v0  ;;  %v273_v14 = vsel %vm272_vm2, %v266_v13, -1e+09  ;;  %v337_v25 = vsel %vm335_vm4, %v280_v23, 0  ;;  %v442_v26 = vsel %vm335_vm4, %v387_v24, 0 }
  0x14   : > { %622 = vmatpush3.bf16.msra.mxu1 %v337_v25  ;;  %v383_v37 = vpack.c.bf16 %v382_v36, %v382_v36 }
  0x15   : > { %627 = vmatprep.subr.bf16.mxu1 %v667_v0 }
  0x19   : > { %618 = vmatmul.mubr.bf16.vlgmr.msra.gmra.mxu0 %v276_v5 }
  0x1a   : > { %635 = vmatprep.mubr.msk.bf16.mxu0 %vm668_vm0, %v667_v0  ;;  %634 = vmatpush3.bf16.msra.mxu0 %v442_v26 }
  0xd9   : > { %v315_v15 = vpop.f32.mrf.mxu0 }
  0xda   : > { %v316_v16 = vadd.f32 %v315_v15, %v273_v14 }
  0xdb   : > { %v619_v17 = vpop.f32.mrf.mxu0 }
  0xdc   : > { %v322_v18 = vsel %vm321_vm3, %v316_v16, -inf }
  0xdd   : > { %323 = vmax.xlane.f32.xlu0 %v322_v18  ;;  %v318_v19 = vpop.f32.mrf.mxu0 }
  0xdf   : > { %v620_v20 = vpop.f32.mrf.mxu0 }
 0x166   : > { %v324_v27 = vpop.xlane.xlu0 %323 }
 0x167   : > { %v325_v28 = vsub.f32 %v316_v16, %v324_v27 }
 0x169   : > { %v326_v29 = vmul.f32 1.442695, %v325_v28 }
 0x16b   : > { %651 = vpow2.f32 %v326_v29 }
 0x178   : > { %v652_v31 = vpop.eup %651 }
 0x179   : > { %v328_v34 = vsel %vm321_vm3, %v652_v31, 0.0  ;;  %v331_v35 = vpack.c.bf16 %v652_v31, %v652_v31 }
 0x17a   : > { %329 = vadd.xlane.f32.xlu1 %v328_v34 }
 0x17b   : > { %624 = vmatmul.mubr.msk.bf16.vlgmr.msra.gmra.mxu1 %vm321_vm3, %v331_v35 }
 0x17c   : > { %628 = vmatpush3.bf16.xpose.msra.mxu1 %v385_v32  ;;  %629 = vmatprep.mubr.msk.bf16.mxu1 %vm668_vm0, %v667_v0 }
 0x183   : > { %630 = vmatmul.mubr.bf16.vlgmr.msra.gmra.mxu1 %v383_v37 }
 0x203   : > { %v330_v38 = vpop.xlane.xlu1 %329 }
 0x204   : > { %653 = vrcp.f32 %v330_v38 }
 0x211   : > { %v654_v39 = vpop.eup %653 }
 0x23b   : > { %v373_v40 = vpop.f32.mrf.mxu1 }
 0x23c   : > { %v380_v41 = vmul.f32 %v654_v39, %v373_v40 }
 0x23d   : > { %v625_v42 = vpop.f32.mrf.mxu1 }
 0x23e   : > { %486 = vst [vmem:[%s257_s7] sm:$0xff] %v380_v41 }
 0x23f   : > { %v376_v43 = vpop.f32.mrf.mxu1 }
 0x241   : > { %v626_v44 = vpop.f32.mrf.mxu1 }
 0x243   : > { %v422_v45 = vpop.f32.mrf.mxu1 }
 0x244   : > { %v423_v46 = vadd.f32 %v422_v45, %v273_v14 }
 0x245   : > { %v631_v47 = vpop.f32.mrf.mxu1 }
 0x246   : > { %v428_v48 = vsel %vm321_vm3, %v423_v46, -inf }
 0x247   : > { %429 = vmax.xlane.f32.xlu0 %v428_v48  ;;  %v425_v49 = vpop.f32.mrf.mxu1 }
 0x249   : > { %v632_v50 = vpop.f32.mrf.mxu1 }
 0x2d0   : > { %v430_v51 = vpop.xlane.xlu0 %429 }
 0x2d1   : > { %v431_v52 = vsub.f32 %v423_v46, %v430_v51 }
 0x2d3   : > { %v432_v53 = vmul.f32 1.442695, %v431_v52 }
 0x2d5   : > { %655 = vpow2.f32 %v432_v53 }
 0x2e2   : > { %v656_v54 = vpop.eup %655 }
 0x2e3   : > { %v434_v55 = vsel %vm321_vm3, %v656_v54, 0.0  ;;  %v437_v56 = vpack.c.bf16 %v656_v54, %v656_v54 }
 0x2e4   : > { %435 = vadd.xlane.f32.xlu1 %v434_v55 }
 0x2e5   : > { %636 = vmatmul.mubr.msk.bf16.vlgmr.msra.gmra.mxu0 %vm321_vm3, %v437_v56 }
 0x36d   : > { %v436_v57 = vpop.xlane.xlu1 %435 }
 0x36e   : > { %657 = vrcp.f32 %v436_v57 }
 0x37b   : > { %v658_v58 = vpop.eup %657 }
 0x3a5   : > { %v478_v59 = vpop.f32.mrf.mxu0 }
 0x3a6   : > { %v485_v60 = vmul.f32 %v658_v58, %v478_v59 }
 0x3a7   : > { %v637_v61 = vpop.f32.mrf.mxu0 }
 0x3a8   : > { %487 = vst [vmem:[%s257_s7 + $0x8] sm:$0xff] %v485_v60 }
 0x3a9   : > { %v481_v62 = vpop.f32.mrf.mxu0 }
 0x3ab   : > { %v638_v63 = vpop.f32.mrf.mxu0 }
 0x3ac PF: > { %s14_s15 = sadd.s32 1, %s665_s15  }
 0x3ad   : > { %p11_p4 = scmp.ge.s32.totalorder %s14_s15, 4  }
 0x3af   :  { %13 = sbr.rel (!%p11_p4) target bundleno = 1 (0x1), region = 75 }

// kernel: transformer_decoder_layer.10
= control target key start
LH: loop header
LB: loop body
LE: loop exit
PB: predicated region body
PF: predicated region fallthrough
CT: control target
= control target key end

     0   :  { %v63_v38 = vlaneseq  ;;  %s617_s2 = inlined_call_operand.vmem [shape: bf16[256,256], index: 2, kind: input, shape index: {}]   ;;  %s618_s0 = inlined_call_operand.vmem [shape: f32[16,256], index: 0, kind: input, shape index: {}]   ;;  %s619_s3 = inlined_call_operand.vmem [shape: f32[1,256], index: 3, kind: input, shape index: {}]   ;;  %s620_s1 = inlined_call_operand.vmem [shape: f32[16,256], index: 1, kind: input, shape index: {}]   ;;  %s621_s4 = inlined_call_operand.vmem [shape: f32[1,256], index: 4, kind: input, shape index: {}]   ;;  %s622_s5 = inlined_call_operand.vmem [shape: f32[1,256], index: 5, kind: input, shape index: {}]   ;;  %s623_s6 = inlined_call_operand.vmem [shape: f32[16,256], index: 6, kind: output, shape index: {}]  }
   0x1   :  { %v389_v0 = vld [vmem:[%s617_s2 + $0x74] ss:$8 sps:$4 sm:$0xff]   ;;  %v391_v1 = vld [vmem:[%s617_s2 + $0x70] ss:$8 sps:$4 sm:$0xff]   ;;  %v392_v2 = vld [vmem:[%s617_s2 + $0x64] ss:$8 sps:$4 sm:$0xff]  }
   0x2   :  { %233 = vmatprep.subr.bf16.mxu0 %v389_v0  ;;  %v394_v3 = vld [vmem:[%s617_s2 + $0x60] ss:$8 sps:$4 sm:$0xff]   ;;  %v395_v4 = vld [vmem:[%s617_s2 + $0x54] ss:$8 sps:$4 sm:$0xff]   ;;  %v397_v5 = vld [vmem:[%s617_s2 + $0x50] ss:$8 sps:$4 sm:$0xff]  }
   0x3   :  { %234 = vmatpush1.bf16.msra.mxu0 %v391_v1  ;;  %v398_v6 = vld [vmem:[%s617_s2 + $0x44] ss:$8 sps:$4 sm:$0xff]   ;;  %v400_v7 = vld [vmem:[%s617_s2 + $0x40] ss:$8 sps:$4 sm:$0xff]   ;;  %v401_v8 = vld [vmem:[%s617_s2 + $0x34] ss:$8 sps:$4 sm:$0xff]  }
   0x4   :  { %235 = vmatprep.subr.bf16.mxu0 %v392_v2  ;;  %v403_v9 = vld [vmem:[%s617_s2 + $0x30] ss:$8 sps:$4 sm:$0xff]   ;;  %v404_v10 = vld [vmem:[%s617_s2 + $0x24] ss:$8 sps:$4 sm:$0xff]   ;;  %v406_v11 = vld [vmem:[%s617_s2 + $0x20] ss:$8 sps:$4 sm:$0xff]  }
   0x5   :  { %v407_v12 = vld [vmem:[%s617_s2 + $0x14] ss:$8 sps:$4 sm:$0xff]   ;;  %v24_v13 = vld [vmem:[%s618_s0 + $0x8] sm:$0xff]  ;;  %v409_v16 = vld [vmem:[%s617_s2 + $0x10] ss:$8 sps:$4 sm:$0xff]   ;;  %v64_v39 = vshrl.u32 %v63_v38, 7 }
   0x6   :  { %v26_v14 = vld [vmem:[%s618_s0 + $0x18] sm:$0xff]  ;;  %v410_v17 = vld [vmem:[%s617_s2 + $0x4] ss:$8 sps:$4 sm:$0xff]   ;;  %v412_v18 = vld [vmem:[%s617_s2] ss:$8 sps:$4 sm:$0xff]  }
   0x7   :  { %236 = vmatpush1.bf16.msra.mxu0 %v394_v3  ;;  %v28_v15 = vpack.c.bf16 %v26_v14, %v24_v13  ;;  %v413_v19 = vld [vmem:[%s617_s2 + $0xf4] ss:$8 sps:$4 sm:$0xff]   ;;  %v415_v20 = vld [vmem:[%s617_s2 + $0xf0] ss:$8 sps:$4 sm:$0xff]   ;;  %v416_v21 = vld [vmem:[%s617_s2 + $0xe4] ss:$8 sps:$4 sm:$0xff]  }
   0x8   :  { %237 = vmatprep.subr.bf16.mxu0 %v395_v4  ;;  %v418_v22 = vld [vmem:[%s617_s2 + $0xe0] ss:$8 sps:$4 sm:$0xff]   ;;  %v419_v23 = vld [vmem:[%s617_s2 + $0xd4] ss:$8 sps:$4 sm:$0xff]   ;;  %v421_v24 = vld [vmem:[%s617_s2 + $0xd0] ss:$8 sps:$4 sm:$0xff]  }
   0x9   :  { %265 = vmatprep.mubr.bf16.mxu0 %v28_v15  ;;  %v422_v25 = vld [vmem:[%s617_s2 + $0xc4] ss:$8 sps:$4 sm:$0xff]   ;;  %v424_v26 = vld [vmem:[%s617_s2 + $0xc0] ss:$8 sps:$4 sm:$0xff]   ;;  %v425_v27 = vld [vmem:[%s617_s2 + $0xb4] ss:$8 sps:$4 sm:$0xff]  }
   0xa   :  { %v427_v28 = vld [vmem:[%s617_s2 + $0xb0] ss:$8 sps:$4 sm:$0xff]   ;;  %v428_v29 = vld [vmem:[%s617_s2 + $0xa4] ss:$8 sps:$4 sm:$0xff]   ;;  %v430_v30 = vld [vmem:[%s617_s2 + $0xa0] ss:$8 sps:$4 sm:$0xff]  }
   0xb   :  { %238 = vmatpush1.bf16.msra.mxu0 %v397_v5  ;;  %v431_v31 = vld [vmem:[%s617_s2 + $0x94] ss:$8 sps:$4 sm:$0xff]   ;;  %v433_v32 = vld [vmem:[%s617_s2 + $0x90] ss:$8 sps:$4 sm:$0xff]   ;;  %v434_v33 = vld [vmem:[%s617_s2 + $0x84] ss:$8 sps:$4 sm:$0xff]  }
   0xc   :  { %239 = vmatprep.subr.bf16.mxu0 %v398_v6  ;;  %v436_v34 = vld [vmem:[%s617_s2 + $0x80] ss:$8 sps:$4 sm:$0xff]   ;;  %v25_v36 = vld [vmem:[%s618_s0 + $0x10] sm:$0xff]  ;;  %v65_v40 = vsub.s32 0, %v64_v39  ;;  %v69_v42 = vsub.s32 1, %v64_v39  ;;  %v279_v57 = vld [vmem:[%s620_s1 + $0x18] sm:$0xff] }
   0xd   :  { %v23_v35 = vld [vmem:[%s618_s0] sm:$0xff]  ;;  %v277_v49 = vld [vmem:[%s620_s1 + $0x8] sm:$0xff]  ;;  %v278_v55 = vld [vmem:[%s620_s1 + $0x10] sm:$0xff] }
   0xe   :  { %v27_v37 = vpack.c.bf16 %v25_v36, %v23_v35  ;;  %v61_v41 = vld [vmem:[%s619_s3] sm:$0x3] }
   0xf   :  { %240 = vmatpush1.bf16.msra.mxu0 %v400_v7  ;;  %v66_v43 = vrot.slane %v61_v41, %v65_v40  ;;  %v70_v44 = vrot.slane %v61_v41, %v69_v42  ;;  %v276_v48 = vld [vmem:[%s620_s1] sm:$0xff] }
  0x10   :  { %241 = vmatprep.subr.bf16.mxu0 %v401_v8 }
  0x13   :  { %242 = vmatpush1.bf16.msra.mxu0 %v403_v9 }
  0x14   :  { %243 = vmatprep.subr.bf16.mxu0 %v404_v10 }
  0x17   :  { %244 = vmatpush1.bf16.msra.mxu0 %v406_v11 }
  0x18   :  { %245 = vmatprep.subr.bf16.mxu0 %v407_v12 }
  0x1b   :  { %246 = vmatpush1.bf16.msra.mxu0 %v409_v16 }
  0x1c   :  { %247 = vmatprep.subr.bf16.mxu0 %v410_v17 }
  0x1f   :  { %248 = vmatpush1.bf16.msra.mxu0 %v412_v18 }
  0x20   :  { %249 = vmatprep.subr.bf16.mxu0 %v413_v19  ;;  %v317_v19 = vld [vmem:[%s621_s4] sm:$0x3] }
  0x23   :  { %250 = vmatpush2.bf16.msra.mxu0 %v415_v20  ;;  %v333_v20 = vld [vmem:[%s622_s5] sm:$0x3] }
  0x24   :  { %251 = vmatprep.subr.bf16.mxu0 %v416_v21  ;;  %v322_v21 = vrot.slane %v317_v19, %v65_v40 }
  0x27   :  { %252 = vmatpush2.bf16.msra.mxu0 %v418_v22  ;;  %v326_v22 = vrot.slane %v317_v19, %v69_v42 }
  0x28   :  { %253 = vmatprep.subr.bf16.mxu0 %v419_v23 }
  0x2b   :  { %254 = vmatpush2.bf16.msra.mxu0 %v421_v24  ;;  %v338_v24 = vrot.slane %v333_v20, %v65_v40 }
  0x2c   :  { %255 = vmatprep.subr.bf16.mxu0 %v422_v25  ;;  %v342_v25 = vrot.slane %v333_v20, %v69_v42 }
  0x2f   :  { %256 = vmatpush2.bf16.msra.mxu0 %v424_v26 }
  0x30   :  { %257 = vmatprep.subr.bf16.mxu0 %v425_v27 }
  0x33   :  { %258 = vmatpush2.bf16.msra.mxu0 %v427_v28 }
  0x34   :  { %259 = vmatprep.subr.bf16.mxu0 %v428_v29 }
  0x37   :  { %260 = vmatpush2.bf16.msra.mxu0 %v430_v30 }
  0x38   :  { %261 = vmatprep.subr.bf16.mxu0 %v431_v31 }
  0x3b   :  { %262 = vmatpush2.bf16.msra.mxu0 %v433_v32 }
  0x3c   :  { %263 = vmatprep.subr.bf16.mxu0 %v434_v33 }
  0x3f   :  { %264 = vmatpush2.bf16.msra.mxu0 %v436_v34 }
  0x42   :  { %266 = vmatmul.mubr.bf16.vlgmr.msra.gmra.mxu0 %v27_v37 }
 0x102   :  { %v267_v45 = vpop.f32.mrf.mxu0 }
 0x103   :  { %v268_v46 = vadd.f32 %v267_v45, %v66_v43 }
 0x104   :  { %v269_v47 = vpop.f32.mrf.mxu0 }
 0x105   :  { %v270_v50 = vadd.f32 %v269_v47, %v70_v44  ;;  %v280_v53 = vadd.f32 %v276_v48, %v268_v46 }
 0x106   :  { %v271_v51 = vpop.f32.mrf.mxu0 }
 0x107   :  { %v272_v52 = vadd.f32 %v271_v51, %v66_v43  ;;  %v281_v54 = vadd.f32 %v277_v49, %v270_v50 }
 0x108   :  { %v273_v56 = vpop.f32.mrf.mxu0 }
 0x109   :  { %v274_v58 = vadd.f32 %v273_v56, %v70_v44  ;;  %v284_v59 = vadd.f32 %v281_v54, %v280_v53  ;;  %v282_v60 = vadd.f32 %v278_v55, %v272_v52 }
 0x10b   :  { %v283_v61 = vadd.f32 %v279_v57, %v274_v58  ;;  %285 = vadd.xlane.f32.xlu0 %v284_v59 }
 0x10d   :  { %v287_v62 = vadd.f32 %v283_v61, %v282_v60 }
 0x10f   :  { %288 = vadd.xlane.f32.xlu0 %v287_v62 }
 0x194   :  { %v286_v63 = vpop.xlane.xlu0 %285 }
 0x195   :  { %v291_v0 = vmul.f32 0.00390625, %v286_v63 }
 0x197   :  { %v293_v1 = vsub.f32 %v280_v53, %v291_v0  ;;  %v294_v2 = vsub.f32 %v281_v54, %v291_v0 }
 0x198   :  { %v289_v3 = vpop.xlane.xlu0 %288 }
 0x199   :  { %v292_v4 = vmul.f32 0.00390625, %v289_v3  ;;  %v297_v5 = vmul.f32 %v293_v1, %v293_v1  ;;  %v298_v6 = vmul.f32 %v294_v2, %v294_v2 }
 0x19b   :  { %v295_v7 = vsub.f32 %v282_v60, %v292_v4  ;;  %v296_v8 = vsub.f32 %v283_v61, %v292_v4  ;;  %v301_v9 = vadd.f32 %v298_v6, %v297_v5 }
 0x19d   :  { %302 = vadd.xlane.f32.xlu1 %v301_v9  ;;  %v299_v10 = vmul.f32 %v295_v7, %v295_v7  ;;  %v300_v11 = vmul.f32 %v296_v8, %v296_v8 }
 0x19f   :  { %v304_v12 = vadd.f32 %v300_v11, %v299_v10 }
 0x1a1   :  { %305 = vadd.xlane.f32.xlu1 %v304_v12 }
 0x226   :  { %v303_v13 = vpop.xlane.xlu1 %302 }
 0x227   :  { %v307_v14 = vmul.f32 0.00390625, %v303_v13 }
 0x229   :  { %v309_v15 = vadd.f32 1e-05, %v307_v14 }
 0x22a   :  { %v306_v16 = vpop.xlane.xlu1 %305 }
 0x22b   :  { %437 = vrsqrt.f32 %v309_v15  ;;  %v308_v17 = vmul.f32 0.00390625, %v306_v16 }
 0x22d   :  { %v310_v18 = vadd.f32 1e-05, %v308_v17 }
 0x22f   :  { %439 = vrsqrt.f32 %v310_v18 }
 0x238   :  { %v438_v23 = vpop.eup %437 }
 0x239   :  { %v313_v26 = vmul.f32 %v438_v23, %v293_v1  ;;  %v314_v27 = vmul.f32 %v438_v23, %v294_v2 }
 0x23b   :  { %v329_v28 = vmul.f32 %v322_v21, %v313_v26  ;;  %v330_v29 = vmul.f32 %v326_v22, %v314_v27 }
 0x23c   :  { %v440_v30 = vpop.eup %439 }
 0x23d   :  { %v345_v31 = vadd.f32 %v338_v24, %v329_v28  ;;  %v346_v32 = vadd.f32 %v342_v25, %v330_v29  ;;  %v315_v33 = vmul.f32 %v440_v30, %v295_v7  ;;  %v316_v34 = vmul.f32 %v440_v30, %v296_v8 }
 0x23f   :  { %349 = vst [vmem:[%s623_s6] sm:$0xff] %v345_v31  ;;  %350 = vst [vmem:[%s623_s6 + $0x8] sm:$0xff] %v346_v32  ;;  %v331_v35 = vmul.f32 %v322_v21, %v315_v33  ;;  %v332_v36 = vmul.f32 %v326_v22, %v316_v34 }
 0x241   :  { %v347_v37 = vadd.f32 %v338_v24, %v331_v35  ;;  %v348_v38 = vadd.f32 %v342_v25, %v332_v36 }
 0x243   :  { %351 = vst [vmem:[%s623_s6 + $0x10] sm:$0xff] %v347_v37  ;;  %352 = vst [vmem:[%s623_s6 + $0x18] sm:$0xff] %v348_v38 }

// kernel: transformer_decoder_layer.11
= control target key start
LH: loop header
LB: loop body
LE: loop exit
PB: predicated region body
PF: predicated region fallthrough
CT: control target
= control target key end

     0   :  { %v54_v38 = vlaneseq  ;;  %s498_s1 = inlined_call_operand.vmem [shape: bf16[256,256], index: 1, kind: input, shape index: {}]   ;;  %s499_s0 = inlined_call_operand.vmem [shape: f32[16,256], index: 0, kind: input, shape index: {}]   ;;  %s500_s2 = inlined_call_operand.vmem [shape: f32[1,256], index: 2, kind: input, shape index: {}]   ;;  %s501_s3 = inlined_call_operand.vmem [shape: f32[16,256], index: 3, kind: output, shape index: {}]  }
   0x1   :  { %v307_v0 = vld [vmem:[%s498_s1 + $0x74] ss:$8 sps:$4 sm:$0xff]   ;;  %v309_v1 = vld [vmem:[%s498_s1 + $0x70] ss:$8 sps:$4 sm:$0xff]   ;;  %v310_v2 = vld [vmem:[%s498_s1 + $0x64] ss:$8 sps:$4 sm:$0xff]  }
   0x2   :  { %224 = vmatprep.subr.bf16.mxu0 %v307_v0  ;;  %v312_v3 = vld [vmem:[%s498_s1 + $0x60] ss:$8 sps:$4 sm:$0xff]   ;;  %v313_v4 = vld [vmem:[%s498_s1 + $0x54] ss:$8 sps:$4 sm:$0xff]   ;;  %v315_v5 = vld [vmem:[%s498_s1 + $0x50] ss:$8 sps:$4 sm:$0xff]  }
   0x3   :  { %225 = vmatpush1.bf16.msra.mxu0 %v309_v1  ;;  %v316_v6 = vld [vmem:[%s498_s1 + $0x44] ss:$8 sps:$4 sm:$0xff]   ;;  %v318_v7 = vld [vmem:[%s498_s1 + $0x40] ss:$8 sps:$4 sm:$0xff]   ;;  %v319_v8 = vld [vmem:[%s498_s1 + $0x34] ss:$8 sps:$4 sm:$0xff]  }
   0x4   :  { %226 = vmatprep.subr.bf16.mxu0 %v310_v2  ;;  %v321_v9 = vld [vmem:[%s498_s1 + $0x30] ss:$8 sps:$4 sm:$0xff]   ;;  %v322_v10 = vld [vmem:[%s498_s1 + $0x24] ss:$8 sps:$4 sm:$0xff]   ;;  %v324_v11 = vld [vmem:[%s498_s1 + $0x20] ss:$8 sps:$4 sm:$0xff]  }
   0x5   :  { %v325_v12 = vld [vmem:[%s498_s1 + $0x14] ss:$8 sps:$4 sm:$0xff]   ;;  %v15_v13 = vld [vmem:[%s499_s0 + $0x8] sm:$0xff]  ;;  %v327_v16 = vld [vmem:[%s498_s1 + $0x10] ss:$8 sps:$4 sm:$0xff]   ;;  %v55_v39 = vshrl.u32 %v54_v38, 7 }
   0x6   :  { %v17_v14 = vld [vmem:[%s499_s0 + $0x18] sm:$0xff]  ;;  %v328_v17 = vld [vmem:[%s498_s1 + $0x4] ss:$8 sps:$4 sm:$0xff]   ;;  %v330_v18 = vld [vmem:[%s498_s1] ss:$8 sps:$4 sm:$0xff]  }
   0x7   :  { %227 = vmatpush1.bf16.msra.mxu0 %v312_v3  ;;  %v19_v15 = vpack.c.bf16 %v17_v14, %v15_v13  ;;  %v331_v19 = vld [vmem:[%s498_s1 + $0xf4] ss:$8 sps:$4 sm:$0xff]   ;;  %v333_v20 = vld [vmem:[%s498_s1 + $0xf0] ss:$8 sps:$4 sm:$0xff]   ;;  %v334_v21 = vld [vmem:[%s498_s1 + $0xe4] ss:$8 sps:$4 sm:$0xff]  }
   0x8   :  { %228 = vmatprep.subr.bf16.mxu0 %v313_v4  ;;  %v336_v22 = vld [vmem:[%s498_s1 + $0xe0] ss:$8 sps:$4 sm:$0xff]   ;;  %v337_v23 = vld [vmem:[%s498_s1 + $0xd4] ss:$8 sps:$4 sm:$0xff]   ;;  %v339_v24 = vld [vmem:[%s498_s1 + $0xd0] ss:$8 sps:$4 sm:$0xff]  }
   0x9   :  { %256 = vmatprep.mubr.bf16.mxu0 %v19_v15  ;;  %v340_v25 = vld [vmem:[%s498_s1 + $0xc4] ss:$8 sps:$4 sm:$0xff]   ;;  %v342_v26 = vld [vmem:[%s498_s1 + $0xc0] ss:$8 sps:$4 sm:$0xff]   ;;  %v343_v27 = vld [vmem:[%s498_s1 + $0xb4] ss:$8 sps:$4 sm:$0xff]  }
   0xa   :  { %v345_v28 = vld [vmem:[%s498_s1 + $0xb0] ss:$8 sps:$4 sm:$0xff]   ;;  %v346_v29 = vld [vmem:[%s498_s1 + $0xa4] ss:$8 sps:$4 sm:$0xff]   ;;  %v348_v30 = vld [vmem:[%s498_s1 + $0xa0] ss:$8 sps:$4 sm:$0xff]  }
   0xb   :  { %229 = vmatpush1.bf16.msra.mxu0 %v315_v5  ;;  %v349_v31 = vld [vmem:[%s498_s1 + $0x94] ss:$8 sps:$4 sm:$0xff]   ;;  %v351_v32 = vld [vmem:[%s498_s1 + $0x90] ss:$8 sps:$4 sm:$0xff]   ;;  %v352_v33 = vld [vmem:[%s498_s1 + $0x84] ss:$8 sps:$4 sm:$0xff]  }
   0xc   :  { %230 = vmatprep.subr.bf16.mxu0 %v316_v6  ;;  %v354_v34 = vld [vmem:[%s498_s1 + $0x80] ss:$8 sps:$4 sm:$0xff]   ;;  %v16_v36 = vld [vmem:[%s499_s0 + $0x10] sm:$0xff]  ;;  %v56_v40 = vsub.s32 0, %v55_v39  ;;  %v60_v42 = vsub.s32 1, %v55_v39 }
   0xd   :  { %v14_v35 = vld [vmem:[%s499_s0] sm:$0xff] }
   0xe   :  { %v18_v37 = vpack.c.bf16 %v16_v36, %v14_v35  ;;  %v52_v41 = vld [vmem:[%s500_s2] sm:$0x3] }
   0xf   :  { %231 = vmatpush1.bf16.msra.mxu0 %v318_v7  ;;  %v57_v43 = vrot.slane %v52_v41, %v56_v40  ;;  %v61_v44 = vrot.slane %v52_v41, %v60_v42 }
  0x10   :  { %232 = vmatprep.subr.bf16.mxu0 %v319_v8 }
  0x13   :  { %233 = vmatpush1.bf16.msra.mxu0 %v321_v9 }
  0x14   :  { %234 = vmatprep.subr.bf16.mxu0 %v322_v10 }
  0x17   :  { %235 = vmatpush1.bf16.msra.mxu0 %v324_v11 }
  0x18   :  { %236 = vmatprep.subr.bf16.mxu0 %v325_v12 }
  0x1b   :  { %237 = vmatpush1.bf16.msra.mxu0 %v327_v16 }
  0x1c   :  { %238 = vmatprep.subr.bf16.mxu0 %v328_v17 }
  0x1f   :  { %239 = vmatpush1.bf16.msra.mxu0 %v330_v18 }
  0x20   :  { %240 = vmatprep.subr.bf16.mxu0 %v331_v19 }
  0x23   :  { %241 = vmatpush2.bf16.msra.mxu0 %v333_v20 }
  0x24   :  { %242 = vmatprep.subr.bf16.mxu0 %v334_v21 }
  0x27   :  { %243 = vmatpush2.bf16.msra.mxu0 %v336_v22 }
  0x28   :  { %244 = vmatprep.subr.bf16.mxu0 %v337_v23 }
  0x2b   :  { %245 = vmatpush2.bf16.msra.mxu0 %v339_v24 }
  0x2c   :  { %246 = vmatprep.subr.bf16.mxu0 %v340_v25 }
  0x2f   :  { %247 = vmatpush2.bf16.msra.mxu0 %v342_v26 }
  0x30   :  { %248 = vmatprep.subr.bf16.mxu0 %v343_v27 }
  0x33   :  { %249 = vmatpush2.bf16.msra.mxu0 %v345_v28 }
  0x34   :  { %250 = vmatprep.subr.bf16.mxu0 %v346_v29 }
  0x37   :  { %251 = vmatpush2.bf16.msra.mxu0 %v348_v30 }
  0x38   :  { %252 = vmatprep.subr.bf16.mxu0 %v349_v31 }
  0x3b   :  { %253 = vmatpush2.bf16.msra.mxu0 %v351_v32 }
  0x3c   :  { %254 = vmatprep.subr.bf16.mxu0 %v352_v33 }
  0x3f   :  { %255 = vmatpush2.bf16.msra.mxu0 %v354_v34 }
  0x42   :  { %257 = vmatmul.mubr.bf16.vlgmr.msra.gmra.mxu0 %v18_v37 }
 0x102   :  { %v258_v45 = vpop.f32.mrf.mxu0 }
 0x103   :  { %v259_v46 = vadd.f32 %v258_v45, %v57_v43 }
 0x104   :  { %v260_v47 = vpop.f32.mrf.mxu0 }
 0x105   :  { %267 = vst [vmem:[%s501_s3] sm:$0xff] %v259_v46  ;;  %v261_v48 = vadd.f32 %v260_v47, %v61_v44 }
 0x106   :  { %v262_v49 = vpop.f32.mrf.mxu0 }
 0x107   :  { %268 = vst [vmem:[%s501_s3 + $0x8] sm:$0xff] %v261_v48  ;;  %v263_v50 = vadd.f32 %v262_v49, %v57_v43 }
 0x108   :  { %v264_v51 = vpop.f32.mrf.mxu0 }
 0x109   :  { %269 = vst [vmem:[%s501_s3 + $0x10] sm:$0xff] %v263_v50  ;;  %v265_v52 = vadd.f32 %v264_v51, %v61_v44 }
 0x10b   :  { %270 = vst [vmem:[%s501_s3 + $0x18] sm:$0xff] %v265_v52 }

// kernel: transformer_decoder_layer.8
= control target key start
LH: loop header
LB: loop body
LE: loop exit
PB: predicated region body
PF: predicated region fallthrough
CT: control target
= control target key end

     0   :  { %8 = vsyncpa [#allocation3], 0  ;;  %s1053_s12 = smov [#allocation2]   ;;  %s1140_s0 = inlined_call_operand.vmem [shape: f32[16,256], index: 0, kind: input, shape index: {}]   ;;  %s1141_s1 = inlined_call_operand.hbm [shape: bf16[256,768], index: 1, kind: input, shape index: {}]   ;;  %s1142_s2 = inlined_call_operand.vmem [shape: f32[1,768], index: 2, kind: input, shape index: {}]   ;;  %s1143_s3 = inlined_call_operand.vmem [shape: f32[16,768], index: 3, kind: output, shape index: {}]  }
   0x1   :  { %s16_s13 = sshll.u32 %s1053_s12, 4  ;;  %s17_s13 = int_to_ptr.vmem [resolvable:$true] %s16_s13 }
   0x2   :  { %s1039_s14 = scalar_lea.vmem %s17_s13, 12288  ;;  %p1044_p1 = scmp.lt.s32.totalorder %s17_s13, %s17_s13 }
   0x3   :  { %p1040_p0 = scmp.ne.s32.totalorder %s17_s13, %s1039_s14  ;;  %p1045_p2 = scmp.lt.s32.totalorder %s1039_s14, %s1039_s14 }
   0x5   :  { %p1046_p3 = por %p1045_p2, %p1044_p1 }
   0x7   :  { %p1047_p4 = pnand %p1046_p3, %p1040_p0 }
   0x9   :  { %1050 = shalt.err (!%p1047_p4)
}
   0xa   :  { %s1054_s15 = smov 384   ;;  %s1055_s16 = smov 24  }
   0xb   :  { %22 = dma.hbm_to_vmem [thread:$0]  %s1141_s1, 12288, %s17_s13, [#allocation3], %s1054_s15, %s1054_s15, %s1055_s16  }
   0xc   :  { %1051 = dma.done.wait [#allocation3], 12288  }
   0xd   :  { %1052 = vsyncadd [#allocation3], 4294955008  ;;  %v887_v0 = vld [vmem:[#allocation2 + $0x154] ss:$24 sps:$4 sm:$0xff]   ;;  %v889_v1 = vld [vmem:[#allocation2 + $0x150] ss:$24 sps:$4 sm:$0xff]  }
   0xe   :  { %642 = vmatprep.subr.bf16.mxu0 %v887_v0  ;;  %v890_v2 = vld [vmem:[#allocation2 + $0x124] ss:$24 sps:$4 sm:$0xff]   ;;  %v892_v3 = vld [vmem:[#allocation2 + $0x120] ss:$24 sps:$4 sm:$0xff]   ;;  %v893_v4 = vld [vmem:[#allocation2 + $0xf4] ss:$24 sps:$4 sm:$0xff]  }
   0xf   :  { %643 = vmatpush1.bf16.msra.mxu0 %v889_v1  ;;  %v895_v5 = vld [vmem:[#allocation2 + $0xf0] ss:$24 sps:$4 sm:$0xff]   ;;  %v896_v6 = vld [vmem:[#allocation2 + $0xc4] ss:$24 sps:$4 sm:$0xff]   ;;  %v898_v7 = vld [vmem:[#allocation2 + $0xc0] ss:$24 sps:$4 sm:$0xff]  }
  0x10   :  { %644 = vmatprep.subr.bf16.mxu0 %v890_v2  ;;  %v899_v8 = vld [vmem:[#allocation2 + $0x94] ss:$24 sps:$4 sm:$0xff]   ;;  %v901_v9 = vld [vmem:[#allocation2 + $0x90] ss:$24 sps:$4 sm:$0xff]   ;;  %v902_v10 = vld [vmem:[#allocation2 + $0x64] ss:$24 sps:$4 sm:$0xff]  }
  0x11   :  { %v904_v11 = vld [vmem:[#allocation2 + $0x60] ss:$24 sps:$4 sm:$0xff]   ;;  %v905_v12 = vld [vmem:[#allocation2 + $0x34] ss:$24 sps:$4 sm:$0xff]   ;;  %v907_v15 = vld [vmem:[#allocation2 + $0x30] ss:$24 sps:$4 sm:$0xff]  }
  0x12   :  { %v932_v13 = vld [vmem:[#allocation2 + $0x15c] ss:$24 sps:$4 sm:$0xff]   ;;  %v934_v14 = vld [vmem:[#allocation2 + $0x158] ss:$24 sps:$4 sm:$0xff]   ;;  %v938_v16 = vld [vmem:[#allocation2 + $0x12c] ss:$24 sps:$4 sm:$0xff]  }
  0x13   :  { %645 = vmatpush1.bf16.msra.mxu0 %v892_v3  ;;  %685 = vmatprep.subr.bf16.mxu1 %v932_v13  ;;  %v29_v17 = vld [vmem:[%s1140_s0 + $0x8] sm:$0xff]  ;;  %v908_v18 = vld [vmem:[#allocation2 + $0x4] ss:$24 sps:$4 sm:$0xff]   ;;  %v910_v22 = vld [vmem:[#allocation2] ss:$24 sps:$4 sm:$0xff]  }
  0x14   :  { %646 = vmatprep.subr.bf16.mxu0 %v893_v4  ;;  %686 = vmatpush1.bf16.msra.mxu1 %v934_v14  ;;  %v31_v19 = vld [vmem:[%s1140_s0 + $0x18] sm:$0xff]  ;;  %v940_v20 = vld [vmem:[#allocation2 + $0x128] ss:$24 sps:$4 sm:$0xff]   ;;  %v911_v23 = vld [vmem:[#allocation2 + $0x2d4] ss:$24 sps:$4 sm:$0xff]  }
  0x15   :  { %687 = vmatprep.subr.bf16.mxu1 %v938_v16  ;;  %v1085_v21 = vpack.c.bf16 %v31_v19, %v29_v17  ;;  %v944_v24 = vld [vmem:[#allocation2 + $0xfc] ss:$24 sps:$4 sm:$0xff]   ;;  %v946_v25 = vld [vmem:[#allocation2 + $0xf8] ss:$24 sps:$4 sm:$0xff]   ;;  %v950_v26 = vld [vmem:[#allocation2 + $0xcc] ss:$24 sps:$4 sm:$0xff]  }
  0x16   :  { %v913_v27 = vld [vmem:[#allocation2 + $0x2d0] ss:$24 sps:$4 sm:$0xff]   ;;  %v914_v28 = vld [vmem:[#allocation2 + $0x2a4] ss:$24 sps:$4 sm:$0xff]   ;;  %v916_v31 = vld [vmem:[#allocation2 + $0x2a0] ss:$24 sps:$4 sm:$0xff]  }
  0x17   :  { %647 = vmatpush1.bf16.msra.mxu0 %v895_v5  ;;  %674 = vmatprep.mubr.bf16.mxu0 %v1085_v21  ;;  %v952_v29 = vld [vmem:[#allocation2 + $0xc8] ss:$24 sps:$4 sm:$0xff]   ;;  %v956_v30 = vld [vmem:[#allocation2 + $0x9c] ss:$24 sps:$4 sm:$0xff]   ;;  %v958_v33 = vld [vmem:[#allocation2 + $0x98] ss:$24 sps:$4 sm:$0xff]  }
  0x18   :  { %648 = vmatprep.subr.bf16.mxu0 %v896_v6  ;;  %688 = vmatpush1.bf16.msra.mxu1 %v940_v20  ;;  %v917_v32 = vld [vmem:[#allocation2 + $0x274] ss:$24 sps:$4 sm:$0xff]   ;;  %v919_v35 = vld [vmem:[#allocation2 + $0x270] ss:$24 sps:$4 sm:$0xff]   ;;  %v920_v36 = vld [vmem:[#allocation2 + $0x244] ss:$24 sps:$4 sm:$0xff]  }
  0x19   :  { %689 = vmatprep.subr.bf16.mxu1 %v944_v24  ;;  %717 = vmatprep.mubr.bf16.mxu1 %v1085_v21  ;;  %v962_v34 = vld [vmem:[#allocation2 + $0x6c] ss:$24 sps:$4 sm:$0xff]   ;;  %v964_v37 = vld [vmem:[#allocation2 + $0x68] ss:$24 sps:$4 sm:$0xff]   ;;  %v968_v38 = vld [vmem:[#allocation2 + $0x3c] ss:$24 sps:$4 sm:$0xff]  }
  0x1a   :  { %v922_v39 = vld [vmem:[#allocation2 + $0x240] ss:$24 sps:$4 sm:$0xff]   ;;  %v923_v40 = vld [vmem:[#allocation2 + $0x214] ss:$24 sps:$4 sm:$0xff]   ;;  %v925_v43 = vld [vmem:[#allocation2 + $0x210] ss:$24 sps:$4 sm:$0xff]  }
  0x1b   :  { %649 = vmatpush1.bf16.msra.mxu0 %v898_v7  ;;  %v970_v41 = vld [vmem:[#allocation2 + $0x38] ss:$24 sps:$4 sm:$0xff]   ;;  %v974_v42 = vld [vmem:[#allocation2 + $0xc] ss:$24 sps:$4 sm:$0xff]   ;;  %v976_v45 = vld [vmem:[#allocation2 + $0x8] ss:$24 sps:$4 sm:$0xff]  }
  0x1c   :  { %650 = vmatprep.subr.bf16.mxu0 %v899_v8  ;;  %690 = vmatpush1.bf16.msra.mxu1 %v946_v25  ;;  %v926_v44 = vld [vmem:[#allocation2 + $0x1e4] ss:$24 sps:$4 sm:$0xff]   ;;  %v928_v47 = vld [vmem:[#allocation2 + $0x1e0] ss:$24 sps:$4 sm:$0xff]   ;;  %v929_v48 = vld [vmem:[#allocation2 + $0x1b4] ss:$24 sps:$4 sm:$0xff]  }
  0x1d   :  { %691 = vmatprep.subr.bf16.mxu1 %v950_v26  ;;  %v980_v46 = vld [vmem:[#allocation2 + $0x2dc] ss:$24 sps:$4 sm:$0xff]   ;;  %v982_v49 = vld [vmem:[#allocation2 + $0x2d8] ss:$24 sps:$4 sm:$0xff]   ;;  %v986_v50 = vld [vmem:[#allocation2 + $0x2ac] ss:$24 sps:$4 sm:$0xff]  }
  0x1e   :  { %v931_v51 = vld [vmem:[#allocation2 + $0x1b0] ss:$24 sps:$4 sm:$0xff]   ;;  %v935_v52 = vld [vmem:[#allocation2 + $0x184] ss:$24 sps:$4 sm:$0xff]   ;;  %v937_v55 = vld [vmem:[#allocation2 + $0x180] ss:$24 sps:$4 sm:$0xff]  }
  0x1f   :  { %651 = vmatpush1.bf16.msra.mxu0 %v901_v9  ;;  %v988_v53 = vld [vmem:[#allocation2 + $0x2a8] ss:$24 sps:$4 sm:$0xff]   ;;  %v992_v54 = vld [vmem:[#allocation2 + $0x27c] ss:$24 sps:$4 sm:$0xff]   ;;  %v994_v59 = vld [vmem:[#allocation2 + $0x278] ss:$24 sps:$4 sm:$0xff]  }
  0x20   :  { %652 = vmatprep.subr.bf16.mxu0 %v902_v10  ;;  %692 = vmatpush1.bf16.msra.mxu1 %v952_v29  ;;  %v28_v56 = vld [vmem:[%s1140_s0] sm:$0xff]  ;;  %v30_v57 = vld [vmem:[%s1140_s0 + $0x10] sm:$0xff] }
  0x21   :  { %693 = vmatprep.subr.bf16.mxu1 %v956_v30  ;;  %v943_v58 = vld [vmem:[#allocation2 + $0x164] ss:$24 sps:$4 sm:$0xff]   ;;  %v1095_v61 = vpack.c.bf16 %v30_v57, %v28_v56  ;;  %v941_v62 = vld [vmem:[#allocation2 + $0x160] ss:$24 sps:$4 sm:$0xff]   ;;  %v949_v63 = vld [vmem:[#allocation2 + $0x134] ss:$24 sps:$4 sm:$0xff]  }
  0x22   :  { %v998_v60 = vld [vmem:[#allocation2 + $0x24c] ss:$24 sps:$4 sm:$0xff]   ;;  %v1000_v0 = vld [vmem:[#allocation2 + $0x248] ss:$24 sps:$4 sm:$0xff]   ;;  %v1004_v1 = vld [vmem:[#allocation2 + $0x21c] ss:$24 sps:$4 sm:$0xff]  }
  0x23   :  { %653 = vmatpush1.bf16.msra.mxu0 %v904_v11  ;;  %v947_v2 = vld [vmem:[#allocation2 + $0x130] ss:$24 sps:$4 sm:$0xff]   ;;  %v955_v3 = vld [vmem:[#allocation2 + $0x104] ss:$24 sps:$4 sm:$0xff]   ;;  %v953_v6 = vld [vmem:[#allocation2 + $0x100] ss:$24 sps:$4 sm:$0xff]  }
  0x24   :  { %654 = vmatprep.subr.bf16.mxu0 %v905_v12  ;;  %694 = vmatpush1.bf16.msra.mxu1 %v958_v33  ;;  %v1006_v4 = vld [vmem:[#allocation2 + $0x218] ss:$24 sps:$4 sm:$0xff]   ;;  %v1010_v5 = vld [vmem:[#allocation2 + $0x1ec] ss:$24 sps:$4 sm:$0xff]   ;;  %v1012_v8 = vld [vmem:[#allocation2 + $0x1e8] ss:$24 sps:$4 sm:$0xff]  }
  0x25   :  { %695 = vmatprep.subr.bf16.mxu1 %v962_v34  ;;  %v961_v7 = vld [vmem:[#allocation2 + $0xd4] ss:$24 sps:$4 sm:$0xff]   ;;  %v959_v10 = vld [vmem:[#allocation2 + $0xd0] ss:$24 sps:$4 sm:$0xff]   ;;  %v967_v11 = vld [vmem:[#allocation2 + $0xa4] ss:$24 sps:$4 sm:$0xff]  }
  0x26   :  { %v1016_v9 = vld [vmem:[#allocation2 + $0x1bc] ss:$24 sps:$4 sm:$0xff]   ;;  %v1018_v12 = vld [vmem:[#allocation2 + $0x1b8] ss:$24 sps:$4 sm:$0xff]   ;;  %v1022_v13 = vld [vmem:[#allocation2 + $0x18c] ss:$24 sps:$4 sm:$0xff]  }
  0x27   :  { %655 = vmatpush1.bf16.msra.mxu0 %v907_v15  ;;  %v965_v14 = vld [vmem:[#allocation2 + $0xa0] ss:$24 sps:$4 sm:$0xff]   ;;  %v973_v15 = vld [vmem:[#allocation2 + $0x74] ss:$24 sps:$4 sm:$0xff]   ;;  %v971_v17 = vld [vmem:[#allocation2 + $0x70] ss:$24 sps:$4 sm:$0xff]  }
  0x28   :  { %656 = vmatprep.subr.bf16.mxu0 %v908_v18  ;;  %696 = vmatpush1.bf16.msra.mxu1 %v964_v37  ;;  %v1024_v16 = vld [vmem:[#allocation2 + $0x188] ss:$24 sps:$4 sm:$0xff]   ;;  %v979_v18 = vld [vmem:[#allocation2 + $0x44] ss:$24 sps:$4 sm:$0xff]   ;;  %v985_v20 = vld [vmem:[#allocation2 + $0x14] ss:$24 sps:$4 sm:$0xff]  }
  0x29   :  { %697 = vmatprep.subr.bf16.mxu1 %v968_v38  ;;  %v977_v19 = vld [vmem:[#allocation2 + $0x40] ss:$24 sps:$4 sm:$0xff]   ;;  %v997_v24 = vld [vmem:[#allocation2 + $0x2b4] ss:$24 sps:$4 sm:$0xff]   ;;  %v995_v25 = vld [vmem:[#allocation2 + $0x2b0] ss:$24 sps:$4 sm:$0xff]   ;;  %v132_v38 = vlaneseq }
  0x2a   :  { %v1003_v26 = vld [vmem:[#allocation2 + $0x284] ss:$24 sps:$4 sm:$0xff]   ;;  %v1007_v29 = vld [vmem:[#allocation2 + $0x250] ss:$24 sps:$4 sm:$0xff]  }
  0x2b   :  { %657 = vmatpush1.bf16.msra.mxu0 %v910_v22  ;;  %v991_v22 = vld [vmem:[#allocation2 + $0x2e4] ss:$24 sps:$4 sm:$0xff]   ;;  %v1019_v33 = vld [vmem:[#allocation2 + $0x1f0] ss:$24 sps:$4 sm:$0xff]  }
  0x2c   :  { %658 = vmatprep.subr.bf16.mxu0 %v911_v23  ;;  %698 = vmatpush1.bf16.msra.mxu1 %v970_v41  ;;  %v989_v23 = vld [vmem:[#allocation2 + $0x2e0] ss:$24 sps:$4 sm:$0xff]   ;;  %v1015_v30 = vld [vmem:[#allocation2 + $0x224] ss:$24 sps:$4 sm:$0xff]   ;;  %v1028_v37 = vld [vmem:[#allocation2 + $0x190] ss:$24 sps:$4 sm:$0xff]  }
  0x2d   :  { %699 = vmatprep.subr.bf16.mxu1 %v974_v42  ;;  %v1027_v34 = vld [vmem:[#allocation2 + $0x1c4] ss:$24 sps:$4 sm:$0xff]  }
  0x2e   :  { %v130_v41 = vld [vmem:[%s1142_s2] sm:$0x3f] }
  0x2f   :  { %659 = vmatpush2.bf16.msra.mxu0 %v913_v27  ;;  %v1001_v27 = vld [vmem:[#allocation2 + $0x280] ss:$24 sps:$4 sm:$0xff]  }
  0x30   :  { %660 = vmatprep.subr.bf16.mxu0 %v914_v28  ;;  %700 = vmatpush1.bf16.msra.mxu1 %v976_v45  ;;  %v1009_v28 = vld [vmem:[#allocation2 + $0x254] ss:$24 sps:$4 sm:$0xff]  }
  0x31   :  { %701 = vmatprep.subr.bf16.mxu1 %v980_v46 }
  0x33   :  { %661 = vmatpush2.bf16.msra.mxu0 %v916_v31  ;;  %v1013_v31 = vld [vmem:[#allocation2 + $0x220] ss:$24 sps:$4 sm:$0xff]  }
  0x34   :  { %662 = vmatprep.subr.bf16.mxu0 %v917_v32  ;;  %702 = vmatpush2.bf16.msra.mxu1 %v982_v49  ;;  %v1021_v32 = vld [vmem:[#allocation2 + $0x1f4] ss:$24 sps:$4 sm:$0xff]  }
  0x35   :  { %703 = vmatprep.subr.bf16.mxu1 %v986_v50 }
  0x37   :  { %663 = vmatpush2.bf16.msra.mxu0 %v919_v35  ;;  %v1025_v35 = vld [vmem:[#allocation2 + $0x1c0] ss:$24 sps:$4 sm:$0xff]  }
  0x38   :  { %664 = vmatprep.subr.bf16.mxu0 %v920_v36  ;;  %704 = vmatpush2.bf16.msra.mxu1 %v988_v53  ;;  %v1030_v36 = vld [vmem:[#allocation2 + $0x194] ss:$24 sps:$4 sm:$0xff]  }
  0x39   :  { %705 = vmatprep.subr.bf16.mxu1 %v992_v54 }
  0x3b   :  { %665 = vmatpush2.bf16.msra.mxu0 %v922_v39  ;;  %v133_v39 = vshrl.u32 %v132_v38, 7 }
  0x3c   :  { %666 = vmatprep.subr.bf16.mxu0 %v923_v40  ;;  %706 = vmatpush2.bf16.msra.mxu1 %v994_v59 }
  0x3d   :  { %707 = vmatprep.subr.bf16.mxu1 %v998_v60  ;;  %v134_v40 = vsub.s32 0, %v133_v39  ;;  %v138_v42 = vsub.s32 1, %v133_v39  ;;  %v142_v53 = vsub.s32 2, %v133_v39  ;;  %v146_v54 = vsub.s32 3, %v133_v39 }
  0x3f   :  { %667 = vmatpush2.bf16.msra.mxu0 %v925_v43  ;;  %v135_v43 = vrot.slane %v130_v41, %v134_v40  ;;  %v147_v56 = vrot.slane %v130_v41, %v146_v54 }
  0x40   :  { %668 = vmatprep.subr.bf16.mxu0 %v926_v44  ;;  %708 = vmatpush2.bf16.msra.mxu1 %v1000_v0  ;;  %v139_v44 = vrot.slane %v130_v41, %v138_v42 }
  0x41   :  { %709 = vmatprep.subr.bf16.mxu1 %v1004_v1  ;;  %v150_v1 = vsub.s32 4, %v133_v39 }
  0x43   :  { %669 = vmatpush2.bf16.msra.mxu0 %v928_v47 }
  0x44   :  { %670 = vmatprep.subr.bf16.mxu0 %v929_v48  ;;  %710 = vmatpush2.bf16.msra.mxu1 %v1006_v4 }
  0x45   :  { %711 = vmatprep.subr.bf16.mxu1 %v1010_v5 }
  0x47   :  { %671 = vmatpush2.bf16.msra.mxu0 %v931_v51 }
  0x48   :  { %672 = vmatprep.subr.bf16.mxu0 %v935_v52  ;;  %712 = vmatpush2.bf16.msra.mxu1 %v1012_v8 }
  0x49   :  { %713 = vmatprep.subr.bf16.mxu1 %v1016_v9 }
  0x4b   :  { %673 = vmatpush2.bf16.msra.mxu0 %v937_v55  ;;  %v143_v55 = vrot.slane %v130_v41, %v142_v53 }
  0x4c   :  { %728 = vmatprep.subr.bf16.mxu0 %v943_v58  ;;  %714 = vmatpush2.bf16.msra.mxu1 %v1018_v12 }
  0x4d   :  { %715 = vmatprep.subr.bf16.mxu1 %v1022_v13 }
  0x4e   :  { %675 = vmatmul.mubr.bf16.vlgmr.msra.gmra.mxu0 %v1095_v61 }
  0x4f   :  { %729 = vmatpush1.bf16.msra.mxu0 %v941_v62  ;;  %760 = vmatprep.mubr.bf16.mxu0 %v1085_v21  ;;  %v983_v21 = vld [vmem:[#allocation2 + $0x10] ss:$24 sps:$4 sm:$0xff]  }
  0x50   :  { %730 = vmatprep.subr.bf16.mxu0 %v949_v63  ;;  %716 = vmatpush2.bf16.msra.mxu1 %v1024_v16 }
  0x53   :  { %731 = vmatpush1.bf16.msra.mxu0 %v947_v2  ;;  %718 = vmatmul.mubr.bf16.vlgmr.msra.gmra.mxu1 %v1095_v61  ;;  %v154_v2 = vsub.s32 5, %v133_v39 }
  0x54   :  { %732 = vmatprep.subr.bf16.mxu0 %v955_v3  ;;  %v151_v3 = vrot.slane %v130_v41, %v150_v1 }
  0x55   :  { %v155_v4 = vrot.slane %v130_v41, %v154_v2 }
  0x57   :  { %733 = vmatpush1.bf16.msra.mxu0 %v953_v6 }
  0x58   :  { %734 = vmatprep.subr.bf16.mxu0 %v961_v7 }
  0x5b   :  { %735 = vmatpush1.bf16.msra.mxu0 %v959_v10 }
  0x5c   :  { %736 = vmatprep.subr.bf16.mxu0 %v967_v11 }
  0x5f   :  { %737 = vmatpush1.bf16.msra.mxu0 %v965_v14 }
  0x60   :  { %738 = vmatprep.subr.bf16.mxu0 %v973_v15 }
  0x63   :  { %739 = vmatpush1.bf16.msra.mxu0 %v971_v17 }
  0x64   :  { %740 = vmatprep.subr.bf16.mxu0 %v979_v18 }
  0x67   :  { %741 = vmatpush1.bf16.msra.mxu0 %v977_v19 }
  0x68   :  { %742 = vmatprep.subr.bf16.mxu0 %v985_v20 }
  0x6b   :  { %743 = vmatpush1.bf16.msra.mxu0 %v983_v21 }
  0x6c   :  { %744 = vmatprep.subr.bf16.mxu0 %v991_v22 }
  0x6f   :  { %745 = vmatpush2.bf16.msra.mxu0 %v989_v23 }
  0x70   :  { %746 = vmatprep.subr.bf16.mxu0 %v997_v24 }
  0x73   :  { %747 = vmatpush2.bf16.msra.mxu0 %v995_v25 }
  0x74   :  { %748 = vmatprep.subr.bf16.mxu0 %v1003_v26 }
  0x77   :  { %749 = vmatpush2.bf16.msra.mxu0 %v1001_v27 }
  0x78   :  { %750 = vmatprep.subr.bf16.mxu0 %v1009_v28 }
  0x7b   :  { %751 = vmatpush2.bf16.msra.mxu0 %v1007_v29 }
  0x7c   :  { %752 = vmatprep.subr.bf16.mxu0 %v1015_v30 }
  0x7f   :  { %753 = vmatpush2.bf16.msra.mxu0 %v1013_v31 }
  0x80   :  { %754 = vmatprep.subr.bf16.mxu0 %v1021_v32 }
  0x83   :  { %755 = vmatpush2.bf16.msra.mxu0 %v1019_v33 }
  0x84   :  { %756 = vmatprep.subr.bf16.mxu0 %v1027_v34 }
  0x87   :  { %757 = vmatpush2.bf16.msra.mxu0 %v1025_v35 }
  0x88   :  { %758 = vmatprep.subr.bf16.mxu0 %v1030_v36 }
  0x8b   :  { %759 = vmatpush2.bf16.msra.mxu0 %v1028_v37 }
  0x8e   :  { %761 = vmatmul.mubr.bf16.vlgmr.msra.gmra.mxu0 %v1095_v61 }
 0x10e   :  { %v676_v45 = vpop.f32.mrf.mxu0 }
 0x10f   :  { %v677_v46 = vadd.f32 %v676_v45, %v135_v43 }
 0x110   :  { %v678_v47 = vpop.f32.mrf.mxu0 }
 0x111   :  { %771 = vst [vmem:[%s1143_s3] sm:$0xff] %v677_v46  ;;  %v679_v48 = vadd.f32 %v678_v47, %v139_v44 }
 0x112   :  { %v680_v49 = vpop.f32.mrf.mxu0 }
 0x113   :  { %772 = vst [vmem:[%s1143_s3 + $0x8] sm:$0xff] %v679_v48  ;;  %v681_v50 = vadd.f32 %v680_v49, %v135_v43  ;;  %v719_v57 = vpop.f32.mrf.mxu1 }
 0x114   :  { %v682_v51 = vpop.f32.mrf.mxu0  ;;  %v720_v58 = vadd.f32 %v719_v57, %v143_v55 }
 0x115   :  { %777 = vst [vmem:[%s1143_s3 + $0x30] sm:$0xff] %v681_v50  ;;  %v683_v52 = vadd.f32 %v682_v51, %v139_v44  ;;  %v721_v59 = vpop.f32.mrf.mxu1 }
 0x116   :  { %773 = vst [vmem:[%s1143_s3 + $0x10] sm:$0xff] %v720_v58  ;;  %v722_v60 = vadd.f32 %v721_v59, %v147_v56 }
 0x117   :  { %778 = vst [vmem:[%s1143_s3 + $0x38] sm:$0xff] %v683_v52  ;;  %v723_v61 = vpop.f32.mrf.mxu1 }
 0x118   :  { %774 = vst [vmem:[%s1143_s3 + $0x18] sm:$0xff] %v722_v60  ;;  %v724_v62 = vadd.f32 %v723_v61, %v143_v55 }
 0x119   :  { %v725_v63 = vpop.f32.mrf.mxu1 }
 0x11a   :  { %779 = vst [vmem:[%s1143_s3 + $0x40] sm:$0xff] %v724_v62  ;;  %v726_v0 = vadd.f32 %v725_v63, %v147_v56 }
 0x11c   :  { %780 = vst [vmem:[%s1143_s3 + $0x48] sm:$0xff] %v726_v0 }
 0x14e   :  { %v762_v5 = vpop.f32.mrf.mxu0 }
 0x14f   :  { %v763_v6 = vadd.f32 %v762_v5, %v151_v3 }
 0x150   :  { %v764_v7 = vpop.f32.mrf.mxu0 }
 0x151   :  { %775 = vst [vmem:[%s1143_s3 + $0x20] sm:$0xff] %v763_v6  ;;  %v765_v8 = vadd.f32 %v764_v7, %v155_v4 }
 0x152   :  { %v766_v9 = vpop.f32.mrf.mxu0 }
 0x153   :  { %776 = vst [vmem:[%s1143_s3 + $0x28] sm:$0xff] %v765_v8  ;;  %v767_v10 = vadd.f32 %v766_v9, %v151_v3 }
 0x154   :  { %v768_v11 = vpop.f32.mrf.mxu0 }
 0x155   :  { %781 = vst [vmem:[%s1143_s3 + $0x50] sm:$0xff] %v767_v10  ;;  %v769_v12 = vadd.f32 %v768_v11, %v155_v4 }
 0x157   :  { %782 = vst [vmem:[%s1143_s3 + $0x58] sm:$0xff] %v769_v12 }
 0x158   :  { %787 = vsyncpa [#allocation3], 1 }

// kernel: transformer_decoder_layer.13
= control target key start
LH: loop header
LB: loop body
LE: loop exit
PB: predicated region body
PF: predicated region fallthrough
CT: control target
= control target key end

     0   :  { %s683_s15 = smov 0   ;;  %s740_s0 = inlined_call_operand.vmem [shape: f32[2,8,256], index: 0, kind: input, shape index: {}]   ;;  %s741_s1 = inlined_call_operand.vmem [shape: f32[2,8,512], index: 1, kind: input, shape index: {}, may-alias: {1,2}]   ;;  %s742_s2 = inlined_call_operand.vmem [shape: f32[2,8,512], index: 2, kind: input, shape index: {}, may-alias: {1,2}]   ;;  %s743_s3 = inlined_call_operand.vmem [shape: f32[2,1,8], index: 3, kind: input, shape index: {}]   ;;  %s744_s4 = inlined_call_operand.vmem [shape: f32[2,8,256], index: 4, kind: output, shape index: {}]  }
   0x1 LB: > { %s573_s16 = sadd.s32 4294967295, %s653_s15   ;;  %p577_p0 = scmp.ge.s32.totalorder %s653_s15, 1  ;;  %s653_s15 = sphi %s683_s15, %s14_s15  }
   0x2   : > { %p191_p1 = scmp.lt.s32.totalorder %s653_s15, 3 }
   0x4   : > { %p192_p2 = pnand %p577_p0, %p191_p1 }
   0x5   : > { %p231_p3 = scmp.lt.s32.totalorder (!%p192_p2), %s573_s16, 1 }
   0x6   : > { %195 = sbr.rel (%p192_p2) target bundleno = 939 (0x3ab), region = 36 }
   0xb   : > { %v655_v0 = vmov 0.0   ;;  %vm656_vm0 = vmmov 0   ;;  %s746_s16 = smov (!%p231_p3, %s573_s16), 1  ;;  %v260_v6 = vlaneseq  ;;  %v657_v10 = vmov -1e+09  }
   0xc   : > { %604 = vmatprep.subr.bf16.mxu0 %v655_v0  ;;  %606 = vmatprep.mubr.msk.bf16.mxu0 %vm656_vm0, %v655_v0  ;;  %s593_s17 = sshll.u32 %s746_s16, 5  ;;  %s592_s18 = sshll.u32 %s746_s16, 4  ;;  %vm312_vm2 = vcmask 64512   ;;  %vm326_vm3 = vcmask 1043456  }
   0xd   : > { %610 = vmatprep.subr.bf16.mxu1 %v655_v0  ;;  %612 = vmatprep.mubr.msk.bf16.mxu1 %vm656_vm0, %v655_v0  ;;  %s702_s21 = scalar_lea.vmem %s741_s1, %s593_s17  ;;  %s709_s24 = scalar_lea.vmem %s740_s0, %s592_s18  ;;  %v261_v8 = vshrl.u32 %v260_v6, 7 }
   0xe   : > { %v268_v1 = vld [vmem:[%s702_s21] sm:$0xff]  ;;  %s249_s27 = scalar_lea.vmem %s743_s3, %s746_s16  ;;  %s526_s30 = scalar_lea.vmem %s742_s2, %s593_s17  ;;  %v375_v28 = vld [vmem:[%s702_s21 + $0x8] sm:$0xff] }
   0xf   : > { %v265_v2 = vld [vmem:[%s709_s24] sm:$0xff]  ;;  %v269_v3 = vpack.c.bf16 %v268_v1, %v268_v1  ;;  %v262_v9 = vsub.s32 0, %v261_v8  ;;  %v586_v19 = vld [vmem:[%s526_s30 + $0x10] sm:$0xff]  ;;  %v588_v20 = vld [vmem:[%s526_s30 + $0x18] sm:$0xff]  ;;  %v376_v30 = vpack.c.bf16 %v375_v28, %v375_v28  ;;  %s254_s7 = scalar_lea.vmem %s744_s4, %s592_s18 }
  0x10   : > { %v266_v4 = vmul.f32 0.088388346, %v265_v2  ;;  %v256_v7 = vld [vmem:[%s249_s27] sm:$0x1]  ;;  %v271_v21 = vpack.c.bf16 %v586_v19, %v586_v19  ;;  %v378_v22 = vpack.c.bf16 %v588_v20, %v588_v20  ;;  %v372_v31 = vld [vmem:[%s709_s24 + $0x8] sm:$0xff] }
  0x11   : > { %605 = vmatpush3.bf16.xpose.msra.mxu0 %v269_v3  ;;  %vm257_vm1 = vcmp.gt.f32.partialorder %v256_v7, 0.5  ;;  %v373_v34 = vmul.f32 0.088388346, %v372_v31 }
  0x12   : > { %622 = vmatprep.subr.bf16.mxu0 %v655_v0  ;;  %v267_v5 = vpack.c.bf16 %v266_v4, %v266_v4  ;;  %v258_v11 = vsel %vm257_vm1, 0.0, %v657_v10  ;;  %v328_v23 = vsel %vm326_vm3, %v271_v21, 0  ;;  %v433_v24 = vsel %vm326_vm3, %v378_v22, 0 }
  0x13   : > { %v263_v12 = vrot.slane %v258_v11, %v262_v9  ;;  %611 = vmatpush3.bf16.msra.mxu1 %v328_v23  ;;  %v374_v35 = vpack.c.bf16 %v373_v34, %v373_v34 }
  0x14   : > { %616 = vmatprep.subr.bf16.mxu1 %v655_v0 }
  0x18   : > { %607 = vmatmul.mubr.bf16.vlgmr.msra.gmra.mxu0 %v267_v5 }
  0x19   : > { %624 = vmatprep.mubr.msk.bf16.mxu0 %vm656_vm0, %v655_v0  ;;  %623 = vmatpush3.bf16.msra.mxu0 %v433_v24 }
  0xd8   : > { %v306_v13 = vpop.f32.mrf.mxu0 }
  0xd9   : > { %v307_v14 = vadd.f32 %v306_v13, %v263_v12 }
  0xda   : > { %v608_v15 = vpop.f32.mrf.mxu0 }
  0xdb   : > { %v313_v16 = vsel %vm312_vm2, %v307_v14, -inf }
  0xdc   : > { %314 = vmax.xlane.f32.xlu0 %v313_v16  ;;  %v309_v17 = vpop.f32.mrf.mxu0 }
  0xde   : > { %v609_v18 = vpop.f32.mrf.mxu0 }
 0x165   : > { %v315_v25 = vpop.xlane.xlu0 %314 }
 0x166   : > { %v316_v26 = vsub.f32 %v307_v14, %v315_v25 }
 0x168   : > { %v317_v27 = vmul.f32 1.442695, %v316_v26 }
 0x16a   : > { %639 = vpow2.f32 %v317_v27 }
 0x177   : > { %v640_v29 = vpop.eup %639 }
 0x178   : > { %v319_v32 = vsel %vm312_vm2, %v640_v29, 0.0  ;;  %v322_v33 = vpack.c.bf16 %v640_v29, %v640_v29 }
 0x179   : > { %320 = vadd.xlane.f32.xlu1 %v319_v32 }
 0x17a   : > { %613 = vmatmul.mubr.msk.bf16.vlgmr.msra.gmra.mxu1 %vm312_vm2, %v322_v33 }
 0x17b   : > { %617 = vmatpush3.bf16.xpose.msra.mxu1 %v376_v30  ;;  %618 = vmatprep.mubr.msk.bf16.mxu1 %vm656_vm0, %v655_v0 }
 0x182   : > { %619 = vmatmul.mubr.bf16.vlgmr.msra.gmra.mxu1 %v374_v35 }
 0x202   : > { %v321_v36 = vpop.xlane.xlu1 %320 }
 0x203   : > { %641 = vrcp.f32 %v321_v36 }
 0x210   : > { %v642_v37 = vpop.eup %641 }
 0x23a   : > { %v364_v38 = vpop.f32.mrf.mxu1 }
 0x23b   : > { %v371_v39 = vmul.f32 %v642_v37, %v364_v38 }
 0x23c   : > { %v614_v40 = vpop.f32.mrf.mxu1 }
 0x23d   : > { %477 = vst [vmem:[%s254_s7] sm:$0xff] %v371_v39 }
 0x23e   : > { %v367_v41 = vpop.f32.mrf.mxu1 }
 0x240   : > { %v615_v42 = vpop.f32.mrf.mxu1 }
 0x242   : > { %v413_v43 = vpop.f32.mrf.mxu1 }
 0x243   : > { %v414_v44 = vadd.f32 %v413_v43, %v263_v12 }
 0x244   : > { %v620_v45 = vpop.f32.mrf.mxu1 }
 0x245   : > { %v419_v46 = vsel %vm312_vm2, %v414_v44, -inf }
 0x246   : > { %420 = vmax.xlane.f32.xlu0 %v419_v46  ;;  %v416_v47 = vpop.f32.mrf.mxu1 }
 0x248   : > { %v621_v48 = vpop.f32.mrf.mxu1 }
 0x2cf   : > { %v421_v49 = vpop.xlane.xlu0 %420 }
 0x2d0   : > { %v422_v50 = vsub.f32 %v414_v44, %v421_v49 }
 0x2d2   : > { %v423_v51 = vmul.f32 1.442695, %v422_v50 }
 0x2d4   : > { %643 = vpow2.f32 %v423_v51 }
 0x2e1   : > { %v644_v52 = vpop.eup %643 }
 0x2e2   : > { %v425_v53 = vsel %vm312_vm2, %v644_v52, 0.0  ;;  %v428_v54 = vpack.c.bf16 %v644_v52, %v644_v52 }
 0x2e3   : > { %426 = vadd.xlane.f32.xlu1 %v425_v53 }
 0x2e4   : > { %625 = vmatmul.mubr.msk.bf16.vlgmr.msra.gmra.mxu0 %vm312_vm2, %v428_v54 }
 0x36c   : > { %v427_v55 = vpop.xlane.xlu1 %426 }
 0x36d   : > { %645 = vrcp.f32 %v427_v55 }
 0x37a   : > { %v646_v56 = vpop.eup %645 }
 0x3a4   : > { %v469_v57 = vpop.f32.mrf.mxu0 }
 0x3a5   : > { %v476_v58 = vmul.f32 %v646_v56, %v469_v57 }
 0x3a6   : > { %v626_v59 = vpop.f32.mrf.mxu0 }
 0x3a7   : > { %478 = vst [vmem:[%s254_s7 + $0x8] sm:$0xff] %v476_v58 }
 0x3a8   : > { %v472_v60 = vpop.f32.mrf.mxu0 }
 0x3aa   : > { %v627_v61 = vpop.f32.mrf.mxu0 }
 0x3ab PF: > { %s14_s15 = sadd.s32 1, %s653_s15  }
 0x3ac   : > { %p11_p4 = scmp.ge.s32.totalorder %s14_s15, 4  }
 0x3ae   :  { %13 = sbr.rel (!%p11_p4) target bundleno = 1 (0x1), region = 75 }

// kernel: transformer_decoder_layer.12
= control target key start
LH: loop header
LB: loop body
LE: loop exit
PB: predicated region body
PF: predicated region fallthrough
CT: control target
= control target key end

     0   :  { %s935_s1 = inlined_call_operand.vmem [shape: bf16[256,512], index: 1, kind: input, shape index: {}]   ;;  %s936_s0 = inlined_call_operand.vmem [shape: f32[16,256], index: 0, kind: input, shape index: {}]   ;;  %s937_s2 = inlined_call_operand.vmem [shape: f32[1,512], index: 2, kind: input, shape index: {}]   ;;  %s938_s3 = inlined_call_operand.vmem [shape: f32[16,512], index: 3, kind: output, shape index: {}]  }
   0x1   :  { %v588_v0 = vld [vmem:[%s935_s1 + $0xe4] ss:$16 sps:$4 sm:$0xff]   ;;  %v590_v1 = vld [vmem:[%s935_s1 + $0xec] ss:$16 sps:$4 sm:$0xff]   ;;  %v592_v2 = vld [vmem:[%s935_s1 + $0xe0] ss:$16 sps:$4 sm:$0xff]  }
   0x2   :  { %426 = vmatprep.subr.bf16.mxu0 %v588_v0  ;;  %v593_v3 = vld [vmem:[%s935_s1 + $0xe8] ss:$16 sps:$4 sm:$0xff]   ;;  %469 = vmatprep.subr.bf16.mxu1 %v590_v1  ;;  %v594_v4 = vld [vmem:[%s935_s1 + $0xc4] ss:$16 sps:$4 sm:$0xff]   ;;  %v596_v5 = vld [vmem:[%s935_s1 + $0xcc] ss:$16 sps:$4 sm:$0xff]  }
   0x3   :  { %427 = vmatpush1.bf16.msra.mxu0 %v592_v2  ;;  %470 = vmatpush1.bf16.msra.mxu1 %v593_v3  ;;  %v598_v6 = vld [vmem:[%s935_s1 + $0xc0] ss:$16 sps:$4 sm:$0xff]   ;;  %v599_v7 = vld [vmem:[%s935_s1 + $0xc8] ss:$16 sps:$4 sm:$0xff]   ;;  %v600_v8 = vld [vmem:[%s935_s1 + $0xa4] ss:$16 sps:$4 sm:$0xff]  }
   0x4   :  { %428 = vmatprep.subr.bf16.mxu0 %v594_v4  ;;  %471 = vmatprep.subr.bf16.mxu1 %v596_v5  ;;  %v602_v9 = vld [vmem:[%s935_s1 + $0xac] ss:$16 sps:$4 sm:$0xff]   ;;  %v604_v10 = vld [vmem:[%s935_s1 + $0xa0] ss:$16 sps:$4 sm:$0xff]   ;;  %v605_v11 = vld [vmem:[%s935_s1 + $0xa8] ss:$16 sps:$4 sm:$0xff]  }
   0x5   :  { %v606_v12 = vld [vmem:[%s935_s1 + $0x84] ss:$16 sps:$4 sm:$0xff]   ;;  %v608_v13 = vld [vmem:[%s935_s1 + $0x8c] ss:$16 sps:$4 sm:$0xff]   ;;  %v610_v14 = vld [vmem:[%s935_s1 + $0x80] ss:$16 sps:$4 sm:$0xff]  }
   0x6   :  { %v611_v15 = vld [vmem:[%s935_s1 + $0x88] ss:$16 sps:$4 sm:$0xff]   ;;  %v612_v16 = vld [vmem:[%s935_s1 + $0x64] ss:$16 sps:$4 sm:$0xff]   ;;  %v614_v17 = vld [vmem:[%s935_s1 + $0x6c] ss:$16 sps:$4 sm:$0xff]  }
   0x7   :  { %429 = vmatpush1.bf16.msra.mxu0 %v598_v6  ;;  %472 = vmatpush1.bf16.msra.mxu1 %v599_v7  ;;  %v616_v18 = vld [vmem:[%s935_s1 + $0x60] ss:$16 sps:$4 sm:$0xff]   ;;  %v617_v19 = vld [vmem:[%s935_s1 + $0x68] ss:$16 sps:$4 sm:$0xff]   ;;  %v618_v20 = vld [vmem:[%s935_s1 + $0x44] ss:$16 sps:$4 sm:$0xff]   ;;  %v86_v6 = vlaneseq }
   0x8   :  { %430 = vmatprep.subr.bf16.mxu0 %v600_v8  ;;  %473 = vmatprep.subr.bf16.mxu1 %v602_v9  ;;  %v620_v21 = vld [vmem:[%s935_s1 + $0x4c] ss:$16 sps:$4 sm:$0xff]   ;;  %v622_v22 = vld [vmem:[%s935_s1 + $0x40] ss:$16 sps:$4 sm:$0xff]   ;;  %v623_v23 = vld [vmem:[%s935_s1 + $0x48] ss:$16 sps:$4 sm:$0xff]  }
   0x9   :  { %v624_v24 = vld [vmem:[%s935_s1 + $0x24] ss:$16 sps:$4 sm:$0xff]   ;;  %v626_v25 = vld [vmem:[%s935_s1 + $0x2c] ss:$16 sps:$4 sm:$0xff]   ;;  %v628_v26 = vld [vmem:[%s935_s1 + $0x20] ss:$16 sps:$4 sm:$0xff]  }
   0xa   :  { %v629_v27 = vld [vmem:[%s935_s1 + $0x28] ss:$16 sps:$4 sm:$0xff]   ;;  %v630_v28 = vld [vmem:[%s935_s1 + $0x4] ss:$16 sps:$4 sm:$0xff]   ;;  %v632_v29 = vld [vmem:[%s935_s1 + $0xc] ss:$16 sps:$4 sm:$0xff]  }
   0xb   :  { %431 = vmatpush1.bf16.msra.mxu0 %v604_v10  ;;  %474 = vmatpush1.bf16.msra.mxu1 %v605_v11  ;;  %v634_v30 = vld [vmem:[%s935_s1] ss:$16 sps:$4 sm:$0xff]   ;;  %v635_v31 = vld [vmem:[%s935_s1 + $0x8] ss:$16 sps:$4 sm:$0xff]   ;;  %v636_v32 = vld [vmem:[%s935_s1 + $0x1e4] ss:$16 sps:$4 sm:$0xff]  }
   0xc   :  { %432 = vmatprep.subr.bf16.mxu0 %v606_v12  ;;  %475 = vmatprep.subr.bf16.mxu1 %v608_v13  ;;  %v638_v33 = vld [vmem:[%s935_s1 + $0x1ec] ss:$16 sps:$4 sm:$0xff]   ;;  %v640_v34 = vld [vmem:[%s935_s1 + $0x1e0] ss:$16 sps:$4 sm:$0xff]   ;;  %v641_v35 = vld [vmem:[%s935_s1 + $0x1e8] ss:$16 sps:$4 sm:$0xff]  }
   0xd   :  { %v642_v36 = vld [vmem:[%s935_s1 + $0x1c4] ss:$16 sps:$4 sm:$0xff]   ;;  %v644_v37 = vld [vmem:[%s935_s1 + $0x1cc] ss:$16 sps:$4 sm:$0xff]   ;;  %v646_v38 = vld [vmem:[%s935_s1 + $0x1c0] ss:$16 sps:$4 sm:$0xff]  }
   0xe   :  { %v647_v39 = vld [vmem:[%s935_s1 + $0x1c8] ss:$16 sps:$4 sm:$0xff]   ;;  %v648_v40 = vld [vmem:[%s935_s1 + $0x1a4] ss:$16 sps:$4 sm:$0xff]   ;;  %v650_v41 = vld [vmem:[%s935_s1 + $0x1ac] ss:$16 sps:$4 sm:$0xff]  }
   0xf   :  { %433 = vmatpush1.bf16.msra.mxu0 %v610_v14  ;;  %476 = vmatpush1.bf16.msra.mxu1 %v611_v15  ;;  %v652_v42 = vld [vmem:[%s935_s1 + $0x1a0] ss:$16 sps:$4 sm:$0xff]   ;;  %v653_v43 = vld [vmem:[%s935_s1 + $0x1a8] ss:$16 sps:$4 sm:$0xff]   ;;  %v654_v44 = vld [vmem:[%s935_s1 + $0x184] ss:$16 sps:$4 sm:$0xff]  }
  0x10   :  { %434 = vmatprep.subr.bf16.mxu0 %v612_v16  ;;  %477 = vmatprep.subr.bf16.mxu1 %v614_v17  ;;  %v656_v45 = vld [vmem:[%s935_s1 + $0x18c] ss:$16 sps:$4 sm:$0xff]   ;;  %v658_v48 = vld [vmem:[%s935_s1 + $0x180] ss:$16 sps:$4 sm:$0xff]   ;;  %v659_v49 = vld [vmem:[%s935_s1 + $0x188] ss:$16 sps:$4 sm:$0xff]  }
  0x11   :  { %v15_v46 = vld [vmem:[%s936_s0 + $0x8] sm:$0xff]  ;;  %v17_v47 = vld [vmem:[%s936_s0 + $0x18] sm:$0xff]  ;;  %v660_v51 = vld [vmem:[%s935_s1 + $0x164] ss:$16 sps:$4 sm:$0xff]   ;;  %v87_v7 = vshrl.u32 %v86_v6, 7 }
  0x12   :  { %v19_v50 = vpack.c.bf16 %v17_v47, %v15_v46  ;;  %v662_v52 = vld [vmem:[%s935_s1 + $0x16c] ss:$16 sps:$4 sm:$0xff]   ;;  %v664_v53 = vld [vmem:[%s935_s1 + $0x160] ss:$16 sps:$4 sm:$0xff]   ;;  %v665_v54 = vld [vmem:[%s935_s1 + $0x168] ss:$16 sps:$4 sm:$0xff]  }
  0x13   :  { %435 = vmatpush1.bf16.msra.mxu0 %v616_v18  ;;  %478 = vmatpush1.bf16.msra.mxu1 %v617_v19  ;;  %v666_v55 = vld [vmem:[%s935_s1 + $0x144] ss:$16 sps:$4 sm:$0xff]   ;;  %v668_v56 = vld [vmem:[%s935_s1 + $0x14c] ss:$16 sps:$4 sm:$0xff]   ;;  %v670_v57 = vld [vmem:[%s935_s1 + $0x140] ss:$16 sps:$4 sm:$0xff]  }
  0x14   :  { %436 = vmatprep.subr.bf16.mxu0 %v618_v20  ;;  %479 = vmatprep.subr.bf16.mxu1 %v620_v21  ;;  %v671_v58 = vld [vmem:[%s935_s1 + $0x148] ss:$16 sps:$4 sm:$0xff]   ;;  %v672_v59 = vld [vmem:[%s935_s1 + $0x124] ss:$16 sps:$4 sm:$0xff]   ;;  %v674_v60 = vld [vmem:[%s935_s1 + $0x12c] ss:$16 sps:$4 sm:$0xff]  }
  0x15   :  { %458 = vmatprep.mubr.bf16.mxu0 %v19_v50  ;;  %501 = vmatprep.mubr.bf16.mxu1 %v19_v50  ;;  %v676_v61 = vld [vmem:[%s935_s1 + $0x120] ss:$16 sps:$4 sm:$0xff]   ;;  %v677_v62 = vld [vmem:[%s935_s1 + $0x128] ss:$16 sps:$4 sm:$0xff]   ;;  %v678_v63 = vld [vmem:[%s935_s1 + $0x104] ss:$16 sps:$4 sm:$0xff]  }
  0x16   :  { %v680_v0 = vld [vmem:[%s935_s1 + $0x10c] ss:$16 sps:$4 sm:$0xff]   ;;  %v682_v1 = vld [vmem:[%s935_s1 + $0x100] ss:$16 sps:$4 sm:$0xff]   ;;  %v683_v2 = vld [vmem:[%s935_s1 + $0x108] ss:$16 sps:$4 sm:$0xff]  }
  0x17   :  { %437 = vmatpush1.bf16.msra.mxu0 %v622_v22  ;;  %480 = vmatpush1.bf16.msra.mxu1 %v623_v23  ;;  %v14_v3 = vld [vmem:[%s936_s0] sm:$0xff]  ;;  %v16_v4 = vld [vmem:[%s936_s0 + $0x10] sm:$0xff]  ;;  %v88_v8 = vsub.s32 0, %v87_v7  ;;  %v96_v9 = vsub.s32 2, %v87_v7  ;;  %v92_v11 = vsub.s32 1, %v87_v7  ;;  %v100_v12 = vsub.s32 3, %v87_v7 }
  0x18   :  { %438 = vmatprep.subr.bf16.mxu0 %v624_v24  ;;  %481 = vmatprep.subr.bf16.mxu1 %v626_v25  ;;  %v18_v5 = vpack.c.bf16 %v16_v4, %v14_v3  ;;  %v84_v10 = vld [vmem:[%s937_s2] sm:$0xf] }
  0x19   :  { %v89_v13 = vrot.slane %v84_v10, %v88_v8  ;;  %v97_v14 = vrot.slane %v84_v10, %v96_v9  ;;  %v93_v15 = vrot.slane %v84_v10, %v92_v11  ;;  %v101_v16 = vrot.slane %v84_v10, %v100_v12 }
  0x1b   :  { %439 = vmatpush1.bf16.msra.mxu0 %v628_v26  ;;  %482 = vmatpush1.bf16.msra.mxu1 %v629_v27 }
  0x1c   :  { %440 = vmatprep.subr.bf16.mxu0 %v630_v28  ;;  %483 = vmatprep.subr.bf16.mxu1 %v632_v29 }
  0x1f   :  { %441 = vmatpush1.bf16.msra.mxu0 %v634_v30  ;;  %484 = vmatpush1.bf16.msra.mxu1 %v635_v31 }
  0x20   :  { %442 = vmatprep.subr.bf16.mxu0 %v636_v32  ;;  %485 = vmatprep.subr.bf16.mxu1 %v638_v33 }
  0x23   :  { %443 = vmatpush2.bf16.msra.mxu0 %v640_v34  ;;  %486 = vmatpush2.bf16.msra.mxu1 %v641_v35 }
  0x24   :  { %444 = vmatprep.subr.bf16.mxu0 %v642_v36  ;;  %487 = vmatprep.subr.bf16.mxu1 %v644_v37 }
  0x27   :  { %445 = vmatpush2.bf16.msra.mxu0 %v646_v38  ;;  %488 = vmatpush2.bf16.msra.mxu1 %v647_v39 }
  0x28   :  { %446 = vmatprep.subr.bf16.mxu0 %v648_v40  ;;  %489 = vmatprep.subr.bf16.mxu1 %v650_v41 }
  0x2b   :  { %447 = vmatpush2.bf16.msra.mxu0 %v652_v42  ;;  %490 = vmatpush2.bf16.msra.mxu1 %v653_v43 }
  0x2c   :  { %448 = vmatprep.subr.bf16.mxu0 %v654_v44  ;;  %491 = vmatprep.subr.bf16.mxu1 %v656_v45 }
  0x2f   :  { %449 = vmatpush2.bf16.msra.mxu0 %v658_v48  ;;  %492 = vmatpush2.bf16.msra.mxu1 %v659_v49 }
  0x30   :  { %450 = vmatprep.subr.bf16.mxu0 %v660_v51  ;;  %493 = vmatprep.subr.bf16.mxu1 %v662_v52 }
  0x33   :  { %451 = vmatpush2.bf16.msra.mxu0 %v664_v53  ;;  %494 = vmatpush2.bf16.msra.mxu1 %v665_v54 }
  0x34   :  { %452 = vmatprep.subr.bf16.mxu0 %v666_v55  ;;  %495 = vmatprep.subr.bf16.mxu1 %v668_v56 }
  0x37   :  { %453 = vmatpush2.bf16.msra.mxu0 %v670_v57  ;;  %496 = vmatpush2.bf16.msra.mxu1 %v671_v58 }
  0x38   :  { %454 = vmatprep.subr.bf16.mxu0 %v672_v59  ;;  %497 = vmatprep.subr.bf16.mxu1 %v674_v60 }
  0x3b   :  { %455 = vmatpush2.bf16.msra.mxu0 %v676_v61  ;;  %498 = vmatpush2.bf16.msra.mxu1 %v677_v62 }
  0x3c   :  { %456 = vmatprep.subr.bf16.mxu0 %v678_v63  ;;  %499 = vmatprep.subr.bf16.mxu1 %v680_v0 }
  0x3f   :  { %457 = vmatpush2.bf16.msra.mxu0 %v682_v1  ;;  %500 = vmatpush2.bf16.msra.mxu1 %v683_v2 }
  0x42   :  { %459 = vmatmul.mubr.bf16.vlgmr.msra.gmra.mxu0 %v18_v5  ;;  %502 = vmatmul.mubr.bf16.vlgmr.msra.gmra.mxu1 %v18_v5 }
 0x102   :  { %v460_v17 = vpop.f32.mrf.mxu0  ;;  %v503_v18 = vpop.f32.mrf.mxu1 }
 0x103   :  { %v461_v19 = vadd.f32 %v460_v17, %v89_v13  ;;  %v504_v20 = vadd.f32 %v503_v18, %v97_v14 }
 0x104   :  { %v462_v21 = vpop.f32.mrf.mxu0  ;;  %v505_v22 = vpop.f32.mrf.mxu1 }
 0x105   :  { %512 = vst [vmem:[%s938_s3] sm:$0xff] %v461_v19  ;;  %514 = vst [vmem:[%s938_s3 + $0x10] sm:$0xff] %v504_v20  ;;  %v463_v23 = vadd.f32 %v462_v21, %v93_v15  ;;  %v506_v24 = vadd.f32 %v505_v22, %v101_v16 }
 0x106   :  { %v464_v25 = vpop.f32.mrf.mxu0  ;;  %v507_v26 = vpop.f32.mrf.mxu1 }
 0x107   :  { %513 = vst [vmem:[%s938_s3 + $0x8] sm:$0xff] %v463_v23  ;;  %515 = vst [vmem:[%s938_s3 + $0x18] sm:$0xff] %v506_v24  ;;  %v465_v27 = vadd.f32 %v464_v25, %v89_v13  ;;  %v508_v28 = vadd.f32 %v507_v26, %v97_v14 }
 0x108   :  { %v466_v29 = vpop.f32.mrf.mxu0  ;;  %v509_v30 = vpop.f32.mrf.mxu1 }
 0x109   :  { %516 = vst [vmem:[%s938_s3 + $0x20] sm:$0xff] %v465_v27  ;;  %518 = vst [vmem:[%s938_s3 + $0x30] sm:$0xff] %v508_v28  ;;  %v467_v31 = vadd.f32 %v466_v29, %v93_v15  ;;  %v510_v32 = vadd.f32 %v509_v30, %v101_v16 }
 0x10b   :  { %517 = vst [vmem:[%s938_s3 + $0x28] sm:$0xff] %v467_v31  ;;  %519 = vst [vmem:[%s938_s3 + $0x38] sm:$0xff] %v510_v32 }

// kernel: transformer_decoder_layer.15
= control target key start
LH: loop header
LB: loop body
LE: loop exit
PB: predicated region body
PF: predicated region fallthrough
CT: control target
= control target key end

     0   :  { %s1939_s0 = inlined_call_operand.vmem [shape: f32[16,256], index: 0, kind: input, shape index: {}]   ;;  %s1940_s1 = inlined_call_operand.vmem [shape: bf16[256,512], index: 1, kind: input, shape index: {}]   ;;  %s1941_s2 = inlined_call_operand.vmem [shape: f32[1,512], index: 2, kind: input, shape index: {}]   ;;  %s1942_s3 = inlined_call_operand.vmem [shape: bf16[512,256], index: 3, kind: input, shape index: {}]   ;;  %s1943_s4 = inlined_call_operand.vmem [shape: f32[1,256], index: 4, kind: input, shape index: {}]   ;;  %s1944_s5 = inlined_call_operand.vmem [shape: f32[1,256], index: 5, kind: input, shape index: {}]   ;;  %s1945_s6 = inlined_call_operand.vmem [shape: f32[1,256], index: 6, kind: input, shape index: {}]   ;;  %s1946_s7 = inlined_call_operand.hbm [shape: f32[16,256], index: 7, kind: output, shape index: {}]  }
   0x1   :  { %v1239_v0 = vld [vmem:[%s1940_s1 + $0xe4] ss:$16 sps:$4 sm:$0xff]   ;;  %v1241_v1 = vld [vmem:[%s1940_s1 + $0xec] ss:$16 sps:$4 sm:$0xff]   ;;  %v1243_v2 = vld [vmem:[%s1940_s1 + $0xe0] ss:$16 sps:$4 sm:$0xff]  }
   0x2   :  { %439 = vmatprep.subr.bf16.mxu0 %v1239_v0  ;;  %v1244_v3 = vld [vmem:[%s1940_s1 + $0xe8] ss:$16 sps:$4 sm:$0xff]   ;;  %482 = vmatprep.subr.bf16.mxu1 %v1241_v1  ;;  %v1245_v4 = vld [vmem:[%s1940_s1 + $0xc4] ss:$16 sps:$4 sm:$0xff]   ;;  %v1247_v5 = vld [vmem:[%s1940_s1 + $0xcc] ss:$16 sps:$4 sm:$0xff]  }
   0x3   :  { %440 = vmatpush1.bf16.msra.mxu0 %v1243_v2  ;;  %483 = vmatpush1.bf16.msra.mxu1 %v1244_v3  ;;  %v1249_v6 = vld [vmem:[%s1940_s1 + $0xc0] ss:$16 sps:$4 sm:$0xff]   ;;  %v1250_v7 = vld [vmem:[%s1940_s1 + $0xc8] ss:$16 sps:$4 sm:$0xff]   ;;  %v1251_v8 = vld [vmem:[%s1940_s1 + $0xa4] ss:$16 sps:$4 sm:$0xff]  }
   0x4   :  { %441 = vmatprep.subr.bf16.mxu0 %v1245_v4  ;;  %484 = vmatprep.subr.bf16.mxu1 %v1247_v5  ;;  %v1253_v9 = vld [vmem:[%s1940_s1 + $0xac] ss:$16 sps:$4 sm:$0xff]   ;;  %v1255_v10 = vld [vmem:[%s1940_s1 + $0xa0] ss:$16 sps:$4 sm:$0xff]   ;;  %v1256_v11 = vld [vmem:[%s1940_s1 + $0xa8] ss:$16 sps:$4 sm:$0xff]  }
   0x5   :  { %v1257_v12 = vld [vmem:[%s1940_s1 + $0x84] ss:$16 sps:$4 sm:$0xff]   ;;  %v1259_v13 = vld [vmem:[%s1940_s1 + $0x8c] ss:$16 sps:$4 sm:$0xff]   ;;  %v1261_v14 = vld [vmem:[%s1940_s1 + $0x80] ss:$16 sps:$4 sm:$0xff]  }
   0x6   :  { %v1262_v15 = vld [vmem:[%s1940_s1 + $0x88] ss:$16 sps:$4 sm:$0xff]   ;;  %v1263_v16 = vld [vmem:[%s1940_s1 + $0x64] ss:$16 sps:$4 sm:$0xff]   ;;  %v1265_v17 = vld [vmem:[%s1940_s1 + $0x6c] ss:$16 sps:$4 sm:$0xff]  }
   0x7   :  { %442 = vmatpush1.bf16.msra.mxu0 %v1249_v6  ;;  %485 = vmatpush1.bf16.msra.mxu1 %v1250_v7  ;;  %v1267_v18 = vld [vmem:[%s1940_s1 + $0x60] ss:$16 sps:$4 sm:$0xff]   ;;  %v1268_v19 = vld [vmem:[%s1940_s1 + $0x68] ss:$16 sps:$4 sm:$0xff]   ;;  %v1269_v20 = vld [vmem:[%s1940_s1 + $0x44] ss:$16 sps:$4 sm:$0xff]  }
   0x8   :  { %443 = vmatprep.subr.bf16.mxu0 %v1251_v8  ;;  %486 = vmatprep.subr.bf16.mxu1 %v1253_v9  ;;  %v1271_v21 = vld [vmem:[%s1940_s1 + $0x4c] ss:$16 sps:$4 sm:$0xff]   ;;  %v1273_v22 = vld [vmem:[%s1940_s1 + $0x40] ss:$16 sps:$4 sm:$0xff]   ;;  %v1274_v23 = vld [vmem:[%s1940_s1 + $0x48] ss:$16 sps:$4 sm:$0xff]  }
   0x9   :  { %v1275_v24 = vld [vmem:[%s1940_s1 + $0x24] ss:$16 sps:$4 sm:$0xff]   ;;  %v1277_v25 = vld [vmem:[%s1940_s1 + $0x2c] ss:$16 sps:$4 sm:$0xff]   ;;  %v1279_v26 = vld [vmem:[%s1940_s1 + $0x20] ss:$16 sps:$4 sm:$0xff]  }
   0xa   :  { %v1280_v27 = vld [vmem:[%s1940_s1 + $0x28] ss:$16 sps:$4 sm:$0xff]   ;;  %v1281_v28 = vld [vmem:[%s1940_s1 + $0x4] ss:$16 sps:$4 sm:$0xff]   ;;  %v1283_v29 = vld [vmem:[%s1940_s1 + $0xc] ss:$16 sps:$4 sm:$0xff]  }
   0xb   :  { %444 = vmatpush1.bf16.msra.mxu0 %v1255_v10  ;;  %487 = vmatpush1.bf16.msra.mxu1 %v1256_v11  ;;  %v1285_v30 = vld [vmem:[%s1940_s1] ss:$16 sps:$4 sm:$0xff]   ;;  %v1286_v31 = vld [vmem:[%s1940_s1 + $0x8] ss:$16 sps:$4 sm:$0xff]   ;;  %v1287_v32 = vld [vmem:[%s1940_s1 + $0x1e4] ss:$16 sps:$4 sm:$0xff]  }
   0xc   :  { %445 = vmatprep.subr.bf16.mxu0 %v1257_v12  ;;  %488 = vmatprep.subr.bf16.mxu1 %v1259_v13  ;;  %v1289_v33 = vld [vmem:[%s1940_s1 + $0x1ec] ss:$16 sps:$4 sm:$0xff]   ;;  %v1291_v34 = vld [vmem:[%s1940_s1 + $0x1e0] ss:$16 sps:$4 sm:$0xff]   ;;  %v1292_v35 = vld [vmem:[%s1940_s1 + $0x1e8] ss:$16 sps:$4 sm:$0xff]  }
   0xd   :  { %v1293_v36 = vld [vmem:[%s1940_s1 + $0x1c4] ss:$16 sps:$4 sm:$0xff]   ;;  %v1295_v37 = vld [vmem:[%s1940_s1 + $0x1cc] ss:$16 sps:$4 sm:$0xff]   ;;  %v1297_v38 = vld [vmem:[%s1940_s1 + $0x1c0] ss:$16 sps:$4 sm:$0xff]  }
   0xe   :  { %v1298_v39 = vld [vmem:[%s1940_s1 + $0x1c8] ss:$16 sps:$4 sm:$0xff]   ;;  %v1299_v40 = vld [vmem:[%s1940_s1 + $0x1a4] ss:$16 sps:$4 sm:$0xff]   ;;  %v1301_v41 = vld [vmem:[%s1940_s1 + $0x1ac] ss:$16 sps:$4 sm:$0xff]  }
   0xf   :  { %446 = vmatpush1.bf16.msra.mxu0 %v1261_v14  ;;  %489 = vmatpush1.bf16.msra.mxu1 %v1262_v15  ;;  %v1303_v42 = vld [vmem:[%s1940_s1 + $0x1a0] ss:$16 sps:$4 sm:$0xff]   ;;  %v1304_v43 = vld [vmem:[%s1940_s1 + $0x1a8] ss:$16 sps:$4 sm:$0xff]   ;;  %v1305_v44 = vld [vmem:[%s1940_s1 + $0x184] ss:$16 sps:$4 sm:$0xff]  }
  0x10   :  { %447 = vmatprep.subr.bf16.mxu0 %v1263_v16  ;;  %490 = vmatprep.subr.bf16.mxu1 %v1265_v17  ;;  %v1307_v45 = vld [vmem:[%s1940_s1 + $0x18c] ss:$16 sps:$4 sm:$0xff]   ;;  %v1309_v47 = vld [vmem:[%s1940_s1 + $0x180] ss:$16 sps:$4 sm:$0xff]   ;;  %v1310_v48 = vld [vmem:[%s1940_s1 + $0x188] ss:$16 sps:$4 sm:$0xff]  }
  0x11   :  { %v1641_v46 = vld [vmem:[%s1939_s0 + $0x8] sm:$0xff]  ;;  %v1652_v49 = vld [vmem:[%s1939_s0 + $0x18] sm:$0xff]  ;;  %v1311_v50 = vld [vmem:[%s1940_s1 + $0x164] ss:$16 sps:$4 sm:$0xff]  }
  0x12   :  { %v32_v51 = vpack.c.bf16 %v1652_v49, %v1641_v46  ;;  %v1313_v52 = vld [vmem:[%s1940_s1 + $0x16c] ss:$16 sps:$4 sm:$0xff]   ;;  %v1315_v53 = vld [vmem:[%s1940_s1 + $0x160] ss:$16 sps:$4 sm:$0xff]   ;;  %v1316_v54 = vld [vmem:[%s1940_s1 + $0x168] ss:$16 sps:$4 sm:$0xff]  }
  0x13   :  { %448 = vmatpush1.bf16.msra.mxu0 %v1267_v18  ;;  %491 = vmatpush1.bf16.msra.mxu1 %v1268_v19  ;;  %v1317_v55 = vld [vmem:[%s1940_s1 + $0x144] ss:$16 sps:$4 sm:$0xff]   ;;  %v1319_v56 = vld [vmem:[%s1940_s1 + $0x14c] ss:$16 sps:$4 sm:$0xff]   ;;  %v1321_v57 = vld [vmem:[%s1940_s1 + $0x140] ss:$16 sps:$4 sm:$0xff]  }
  0x14   :  { %449 = vmatprep.subr.bf16.mxu0 %v1269_v20  ;;  %492 = vmatprep.subr.bf16.mxu1 %v1271_v21  ;;  %v1322_v58 = vld [vmem:[%s1940_s1 + $0x148] ss:$16 sps:$4 sm:$0xff]   ;;  %v1323_v59 = vld [vmem:[%s1940_s1 + $0x124] ss:$16 sps:$4 sm:$0xff]   ;;  %v1325_v60 = vld [vmem:[%s1940_s1 + $0x12c] ss:$16 sps:$4 sm:$0xff]  }
  0x15   :  { %471 = vmatprep.mubr.bf16.mxu0 %v32_v51  ;;  %514 = vmatprep.mubr.bf16.mxu1 %v32_v51  ;;  %v1327_v61 = vld [vmem:[%s1940_s1 + $0x120] ss:$16 sps:$4 sm:$0xff]   ;;  %v1328_v62 = vld [vmem:[%s1940_s1 + $0x128] ss:$16 sps:$4 sm:$0xff]   ;;  %v1329_v63 = vld [vmem:[%s1940_s1 + $0x104] ss:$16 sps:$4 sm:$0xff]  }
  0x16   :  { %v1331_v0 = vld [vmem:[%s1940_s1 + $0x10c] ss:$16 sps:$4 sm:$0xff]   ;;  %v1333_v1 = vld [vmem:[%s1940_s1 + $0x100] ss:$16 sps:$4 sm:$0xff]   ;;  %v1334_v2 = vld [vmem:[%s1940_s1 + $0x108] ss:$16 sps:$4 sm:$0xff]  }
  0x17   :  { %450 = vmatpush1.bf16.msra.mxu0 %v1273_v22  ;;  %493 = vmatpush1.bf16.msra.mxu1 %v1274_v23  ;;  %v1707_v3 = vld [vmem:[%s1939_s0] sm:$0xff]  ;;  %v1712_v4 = vld [vmem:[%s1939_s0 + $0x10] sm:$0xff] }
  0x18   :  { %451 = vmatprep.subr.bf16.mxu0 %v1275_v24  ;;  %494 = vmatprep.subr.bf16.mxu1 %v1277_v25  ;;  %v1337_v5 = vld [vmem:[%s1942_s3 + $0x74] ss:$8 sps:$4 sm:$0xff]   ;;  %v31_v7 = vpack.c.bf16 %v1712_v4, %v1707_v3  ;;  %v1335_v8 = vld [vmem:[%s1942_s3 + $0x70] ss:$8 sps:$4 sm:$0xff]   ;;  %v1343_v10 = vld [vmem:[%s1942_s3 + $0x64] ss:$8 sps:$4 sm:$0xff]  }
  0x19   :  { %v1340_v6 = vld [vmem:[%s1942_s3 + $0x174] ss:$8 sps:$4 sm:$0xff]   ;;  %v1338_v9 = vld [vmem:[%s1942_s3 + $0x170] ss:$8 sps:$4 sm:$0xff]   ;;  %v1346_v11 = vld [vmem:[%s1942_s3 + $0x164] ss:$8 sps:$4 sm:$0xff]  }
  0x1a   :  { %v1341_v12 = vld [vmem:[%s1942_s3 + $0x60] ss:$8 sps:$4 sm:$0xff]   ;;  %v1349_v14 = vld [vmem:[%s1942_s3 + $0x54] ss:$8 sps:$4 sm:$0xff]   ;;  %v1347_v16 = vld [vmem:[%s1942_s3 + $0x50] ss:$8 sps:$4 sm:$0xff]  }
  0x1b   :  { %452 = vmatpush1.bf16.msra.mxu0 %v1279_v26  ;;  %495 = vmatpush1.bf16.msra.mxu1 %v1280_v27  ;;  %v1344_v13 = vld [vmem:[%s1942_s3 + $0x160] ss:$8 sps:$4 sm:$0xff]   ;;  %v1352_v15 = vld [vmem:[%s1942_s3 + $0x154] ss:$8 sps:$4 sm:$0xff]   ;;  %v1350_v17 = vld [vmem:[%s1942_s3 + $0x150] ss:$8 sps:$4 sm:$0xff]  }
  0x1c   :  { %453 = vmatprep.subr.bf16.mxu0 %v1281_v28  ;;  %496 = vmatprep.subr.bf16.mxu1 %v1283_v29  ;;  %v1355_v18 = vld [vmem:[%s1942_s3 + $0x44] ss:$8 sps:$4 sm:$0xff]   ;;  %v1353_v20 = vld [vmem:[%s1942_s3 + $0x40] ss:$8 sps:$4 sm:$0xff]   ;;  %v1361_v22 = vld [vmem:[%s1942_s3 + $0x34] ss:$8 sps:$4 sm:$0xff]  }
  0x1d   :  { %v1358_v19 = vld [vmem:[%s1942_s3 + $0x144] ss:$8 sps:$4 sm:$0xff]   ;;  %v1356_v21 = vld [vmem:[%s1942_s3 + $0x140] ss:$8 sps:$4 sm:$0xff]   ;;  %v1364_v23 = vld [vmem:[%s1942_s3 + $0x134] ss:$8 sps:$4 sm:$0xff]  }
  0x1e   :  { %v1359_v24 = vld [vmem:[%s1942_s3 + $0x30] ss:$8 sps:$4 sm:$0xff]   ;;  %v1367_v26 = vld [vmem:[%s1942_s3 + $0x24] ss:$8 sps:$4 sm:$0xff]  }
  0x1f   :  { %454 = vmatpush1.bf16.msra.mxu0 %v1285_v30  ;;  %497 = vmatpush1.bf16.msra.mxu1 %v1286_v31  ;;  %v1362_v25 = vld [vmem:[%s1942_s3 + $0x130] ss:$8 sps:$4 sm:$0xff]   ;;  %v1370_v27 = vld [vmem:[%s1942_s3 + $0x124] ss:$8 sps:$4 sm:$0xff]  }
  0x20   :  { %455 = vmatprep.subr.bf16.mxu0 %v1287_v32  ;;  %498 = vmatprep.subr.bf16.mxu1 %v1289_v33 }
  0x23   :  { %456 = vmatpush2.bf16.msra.mxu0 %v1291_v34  ;;  %499 = vmatpush2.bf16.msra.mxu1 %v1292_v35 }
  0x24   :  { %457 = vmatprep.subr.bf16.mxu0 %v1293_v36  ;;  %500 = vmatprep.subr.bf16.mxu1 %v1295_v37 }
  0x27   :  { %458 = vmatpush2.bf16.msra.mxu0 %v1297_v38  ;;  %501 = vmatpush2.bf16.msra.mxu1 %v1298_v39 }
  0x28   :  { %459 = vmatprep.subr.bf16.mxu0 %v1299_v40  ;;  %502 = vmatprep.subr.bf16.mxu1 %v1301_v41 }
  0x2b   :  { %460 = vmatpush2.bf16.msra.mxu0 %v1303_v42  ;;  %503 = vmatpush2.bf16.msra.mxu1 %v1304_v43 }
  0x2c   :  { %461 = vmatprep.subr.bf16.mxu0 %v1305_v44  ;;  %504 = vmatprep.subr.bf16.mxu1 %v1307_v45 }
  0x2f   :  { %462 = vmatpush2.bf16.msra.mxu0 %v1309_v47  ;;  %505 = vmatpush2.bf16.msra.mxu1 %v1310_v48 }
  0x30   :  { %463 = vmatprep.subr.bf16.mxu0 %v1311_v50  ;;  %506 = vmatprep.subr.bf16.mxu1 %v1313_v52 }
  0x33   :  { %464 = vmatpush2.bf16.msra.mxu0 %v1315_v53  ;;  %507 = vmatpush2.bf16.msra.mxu1 %v1316_v54 }
  0x34   :  { %465 = vmatprep.subr.bf16.mxu0 %v1317_v55  ;;  %508 = vmatprep.subr.bf16.mxu1 %v1319_v56 }
  0x37   :  { %466 = vmatpush2.bf16.msra.mxu0 %v1321_v57  ;;  %509 = vmatpush2.bf16.msra.mxu1 %v1322_v58 }
  0x38   :  { %467 = vmatprep.subr.bf16.mxu0 %v1323_v59  ;;  %510 = vmatprep.subr.bf16.mxu1 %v1325_v60 }
  0x3b   :  { %468 = vmatpush2.bf16.msra.mxu0 %v1327_v61  ;;  %511 = vmatpush2.bf16.msra.mxu1 %v1328_v62 }
  0x3c   :  { %469 = vmatprep.subr.bf16.mxu0 %v1329_v63  ;;  %512 = vmatprep.subr.bf16.mxu1 %v1331_v0 }
  0x3f   :  { %470 = vmatpush2.bf16.msra.mxu0 %v1333_v1  ;;  %513 = vmatpush2.bf16.msra.mxu1 %v1334_v2 }
  0x40   :  { %933 = vmatprep.subr.bf16.mxu0 %v1337_v5  ;;  %976 = vmatprep.subr.bf16.mxu1 %v1340_v6 }
  0x42   :  { %472 = vmatmul.mubr.bf16.vlgmr.msra.gmra.mxu0 %v31_v7  ;;  %515 = vmatmul.mubr.bf16.vlgmr.msra.gmra.mxu1 %v31_v7 }
  0x43   :  { %934 = vmatpush1.bf16.msra.mxu0 %v1335_v8  ;;  %977 = vmatpush1.bf16.msra.mxu1 %v1338_v9 }
  0x44   :  { %935 = vmatprep.subr.bf16.mxu0 %v1343_v10  ;;  %978 = vmatprep.subr.bf16.mxu1 %v1346_v11 }
  0x47   :  { %936 = vmatpush1.bf16.msra.mxu0 %v1341_v12  ;;  %979 = vmatpush1.bf16.msra.mxu1 %v1344_v13 }
  0x48   :  { %937 = vmatprep.subr.bf16.mxu0 %v1349_v14  ;;  %980 = vmatprep.subr.bf16.mxu1 %v1352_v15 }
  0x4b   :  { %938 = vmatpush1.bf16.msra.mxu0 %v1347_v16  ;;  %981 = vmatpush1.bf16.msra.mxu1 %v1350_v17 }
  0x4c   :  { %939 = vmatprep.subr.bf16.mxu0 %v1355_v18  ;;  %982 = vmatprep.subr.bf16.mxu1 %v1358_v19 }
  0x4f   :  { %940 = vmatpush1.bf16.msra.mxu0 %v1353_v20  ;;  %983 = vmatpush1.bf16.msra.mxu1 %v1356_v21 }
  0x50   :  { %941 = vmatprep.subr.bf16.mxu0 %v1361_v22  ;;  %984 = vmatprep.subr.bf16.mxu1 %v1364_v23 }
  0x51   :  { %12 = vsyncpa [#allocation3], 0  ;;  %v1365_v28 = vld [vmem:[%s1942_s3 + $0x20] ss:$8 sps:$4 sm:$0xff]   ;;  %v1373_v30 = vld [vmem:[%s1942_s3 + $0x14] ss:$8 sps:$4 sm:$0xff]   ;;  %v99_v10 = vlaneseq }
  0x52   :  { %v1368_v29 = vld [vmem:[%s1942_s3 + $0x120] ss:$8 sps:$4 sm:$0xff]   ;;  %v1376_v31 = vld [vmem:[%s1942_s3 + $0x114] ss:$8 sps:$4 sm:$0xff]   ;;  %v1371_v32 = vld [vmem:[%s1942_s3 + $0x10] ss:$8 sps:$4 sm:$0xff]  }
  0x53   :  { %942 = vmatpush1.bf16.msra.mxu0 %v1359_v24  ;;  %985 = vmatpush1.bf16.msra.mxu1 %v1362_v25  ;;  %v1374_v33 = vld [vmem:[%s1942_s3 + $0x110] ss:$8 sps:$4 sm:$0xff]   ;;  %v1379_v34 = vld [vmem:[%s1942_s3 + $0x4] ss:$8 sps:$4 sm:$0xff]   ;;  %v1377_v36 = vld [vmem:[%s1942_s3] ss:$8 sps:$4 sm:$0xff]  }
  0x54   :  { %943 = vmatprep.subr.bf16.mxu0 %v1367_v26  ;;  %986 = vmatprep.subr.bf16.mxu1 %v1370_v27  ;;  %v1382_v35 = vld [vmem:[%s1942_s3 + $0x104] ss:$8 sps:$4 sm:$0xff]   ;;  %v1380_v37 = vld [vmem:[%s1942_s3 + $0x100] ss:$8 sps:$4 sm:$0xff]   ;;  %v1385_v38 = vld [vmem:[%s1942_s3 + $0xf4] ss:$8 sps:$4 sm:$0xff]  }
  0x55   :  { %v1388_v39 = vld [vmem:[%s1942_s3 + $0x1f4] ss:$8 sps:$4 sm:$0xff]   ;;  %v1383_v40 = vld [vmem:[%s1942_s3 + $0xf0] ss:$8 sps:$4 sm:$0xff]   ;;  %v1391_v42 = vld [vmem:[%s1942_s3 + $0xe4] ss:$8 sps:$4 sm:$0xff]  }
  0x56   :  { %v1386_v41 = vld [vmem:[%s1942_s3 + $0x1f0] ss:$8 sps:$4 sm:$0xff]   ;;  %v1394_v43 = vld [vmem:[%s1942_s3 + $0x1e4] ss:$8 sps:$4 sm:$0xff]   ;;  %v1389_v44 = vld [vmem:[%s1942_s3 + $0xe0] ss:$8 sps:$4 sm:$0xff]  }
  0x57   :  { %944 = vmatpush1.bf16.msra.mxu0 %v1365_v28  ;;  %987 = vmatpush1.bf16.msra.mxu1 %v1368_v29  ;;  %v1392_v45 = vld [vmem:[%s1942_s3 + $0x1e0] ss:$8 sps:$4 sm:$0xff]   ;;  %v1397_v47 = vld [vmem:[%s1942_s3 + $0xd4] ss:$8 sps:$4 sm:$0xff]   ;;  %v1395_v50 = vld [vmem:[%s1942_s3 + $0xd0] ss:$8 sps:$4 sm:$0xff]  }
  0x58   :  { %945 = vmatprep.subr.bf16.mxu0 %v1373_v30  ;;  %988 = vmatprep.subr.bf16.mxu1 %v1376_v31  ;;  %v1400_v48 = vld [vmem:[%s1942_s3 + $0x1d4] ss:$8 sps:$4 sm:$0xff]   ;;  %v1398_v51 = vld [vmem:[%s1942_s3 + $0x1d0] ss:$8 sps:$4 sm:$0xff]   ;;  %v1403_v52 = vld [vmem:[%s1942_s3 + $0xc4] ss:$8 sps:$4 sm:$0xff]  }
  0x59   :  { %v1406_v53 = vld [vmem:[%s1942_s3 + $0x1c4] ss:$8 sps:$4 sm:$0xff]   ;;  %v1401_v54 = vld [vmem:[%s1942_s3 + $0xc0] ss:$8 sps:$4 sm:$0xff]   ;;  %v1409_v56 = vld [vmem:[%s1942_s3 + $0xb4] ss:$8 sps:$4 sm:$0xff]  }
  0x5a   :  { %v1404_v55 = vld [vmem:[%s1942_s3 + $0x1c0] ss:$8 sps:$4 sm:$0xff]   ;;  %v1412_v57 = vld [vmem:[%s1942_s3 + $0x1b4] ss:$8 sps:$4 sm:$0xff]   ;;  %v1407_v58 = vld [vmem:[%s1942_s3 + $0xb0] ss:$8 sps:$4 sm:$0xff]  }
  0x5b   :  { %946 = vmatpush1.bf16.msra.mxu0 %v1371_v32  ;;  %989 = vmatpush1.bf16.msra.mxu1 %v1374_v33  ;;  %v1410_v59 = vld [vmem:[%s1942_s3 + $0x1b0] ss:$8 sps:$4 sm:$0xff]   ;;  %v1415_v60 = vld [vmem:[%s1942_s3 + $0xa4] ss:$8 sps:$4 sm:$0xff]   ;;  %v1413_v62 = vld [vmem:[%s1942_s3 + $0xa0] ss:$8 sps:$4 sm:$0xff]  }
  0x5c   :  { %947 = vmatprep.subr.bf16.mxu0 %v1379_v34  ;;  %990 = vmatprep.subr.bf16.mxu1 %v1382_v35  ;;  %v1418_v61 = vld [vmem:[%s1942_s3 + $0x1a4] ss:$8 sps:$4 sm:$0xff]   ;;  %v1416_v63 = vld [vmem:[%s1942_s3 + $0x1a0] ss:$8 sps:$4 sm:$0xff]   ;;  %v1421_v0 = vld [vmem:[%s1942_s3 + $0x94] ss:$8 sps:$4 sm:$0xff]  }
  0x5d   :  { %v1424_v1 = vld [vmem:[%s1942_s3 + $0x194] ss:$8 sps:$4 sm:$0xff]   ;;  %v1419_v2 = vld [vmem:[%s1942_s3 + $0x90] ss:$8 sps:$4 sm:$0xff]   ;;  %v1427_v6 = vld [vmem:[%s1942_s3 + $0x84] ss:$8 sps:$4 sm:$0xff]  }
  0x5e   :  { %v1422_v5 = vld [vmem:[%s1942_s3 + $0x190] ss:$8 sps:$4 sm:$0xff]   ;;  %v1430_v7 = vld [vmem:[%s1942_s3 + $0x184] ss:$8 sps:$4 sm:$0xff]   ;;  %v1425_v8 = vld [vmem:[%s1942_s3 + $0x80] ss:$8 sps:$4 sm:$0xff]  }
  0x5f   :  { %948 = vmatpush1.bf16.msra.mxu0 %v1377_v36  ;;  %991 = vmatpush1.bf16.msra.mxu1 %v1380_v37  ;;  %v1428_v9 = vld [vmem:[%s1942_s3 + $0x180] ss:$8 sps:$4 sm:$0xff]   ;;  %v100_v11 = vshrl.u32 %v99_v10, 7 }
  0x60   :  { %949 = vmatprep.subr.bf16.mxu0 %v1385_v38  ;;  %992 = vmatprep.subr.bf16.mxu1 %v1388_v39  ;;  %v97_v16 = vld [vmem:[%s1941_s2] sm:$0xf] }
  0x61   :  { %v1908_v12 = vsub.s32 1, %v100_v11  ;;  %v113_v13 = vsub.s32 3, %v100_v11  ;;  %v1910_v14 = vsub.s32 0, %v100_v11  ;;  %v109_v15 = vsub.s32 2, %v100_v11 }
  0x63   :  { %950 = vmatpush2.bf16.msra.mxu0 %v1383_v40  ;;  %993 = vmatpush2.bf16.msra.mxu1 %v1386_v41  ;;  %v106_v19 = vrot.slane %v97_v16, %v1908_v12  ;;  %v114_v20 = vrot.slane %v97_v16, %v113_v13  ;;  %v102_v21 = vrot.slane %v97_v16, %v1910_v14 }
  0x64   :  { %951 = vmatprep.subr.bf16.mxu0 %v1391_v42  ;;  %994 = vmatprep.subr.bf16.mxu1 %v1394_v43  ;;  %v110_v22 = vrot.slane %v97_v16, %v109_v15 }
  0x67   :  { %952 = vmatpush2.bf16.msra.mxu0 %v1389_v44  ;;  %995 = vmatpush2.bf16.msra.mxu1 %v1392_v45 }
  0x68   :  { %953 = vmatprep.subr.bf16.mxu0 %v1397_v47  ;;  %996 = vmatprep.subr.bf16.mxu1 %v1400_v48 }
  0x6b   :  { %954 = vmatpush2.bf16.msra.mxu0 %v1395_v50  ;;  %997 = vmatpush2.bf16.msra.mxu1 %v1398_v51  ;;  %v601_v51 = vld [vmem:[%s1943_s4] sm:$0x3] }
  0x6c   :  { %955 = vmatprep.subr.bf16.mxu0 %v1403_v52  ;;  %998 = vmatprep.subr.bf16.mxu1 %v1406_v53  ;;  %v606_v52 = vrot.slane %v601_v51, %v1910_v14  ;;  %v610_v53 = vrot.slane %v601_v51, %v1908_v12 }
  0x6f   :  { %956 = vmatpush2.bf16.msra.mxu0 %v1401_v54  ;;  %999 = vmatpush2.bf16.msra.mxu1 %v1404_v55 }
  0x70   :  { %957 = vmatprep.subr.bf16.mxu0 %v1409_v56  ;;  %1000 = vmatprep.subr.bf16.mxu1 %v1412_v57 }
  0x73   :  { %958 = vmatpush2.bf16.msra.mxu0 %v1407_v58  ;;  %1001 = vmatpush2.bf16.msra.mxu1 %v1410_v59 }
  0x74   :  { %959 = vmatprep.subr.bf16.mxu0 %v1415_v60  ;;  %1002 = vmatprep.subr.bf16.mxu1 %v1418_v61 }
  0x77   :  { %960 = vmatpush2.bf16.msra.mxu0 %v1413_v62  ;;  %1003 = vmatpush2.bf16.msra.mxu1 %v1416_v63 }
  0x78   :  { %961 = vmatprep.subr.bf16.mxu0 %v1421_v0  ;;  %1004 = vmatprep.subr.bf16.mxu1 %v1424_v1 }
  0x7b   :  { %962 = vmatpush2.bf16.msra.mxu0 %v1419_v2  ;;  %1005 = vmatpush2.bf16.msra.mxu1 %v1422_v5 }
  0x7c   :  { %963 = vmatprep.subr.bf16.mxu0 %v1427_v6  ;;  %1006 = vmatprep.subr.bf16.mxu1 %v1430_v7 }
  0x7f   :  { %964 = vmatpush2.bf16.msra.mxu0 %v1425_v8  ;;  %1007 = vmatpush2.bf16.msra.mxu1 %v1428_v9 }
 0x102   :  { %v473_v17 = vpop.f32.mrf.mxu0  ;;  %v516_v18 = vpop.f32.mrf.mxu1 }
 0x103   :  { %v474_v31 = vadd.f32 %v473_v17, %v102_v21  ;;  %v517_v32 = vadd.f32 %v516_v18, %v110_v22 }
 0x104   :  { %v475_v23 = vpop.f32.mrf.mxu0  ;;  %v518_v24 = vpop.f32.mrf.mxu1 }
 0x105   :  { %v476_v27 = vadd.f32 %v475_v23, %v106_v19  ;;  %v519_v28 = vadd.f32 %v518_v24, %v114_v20  ;;  %v525_v43 = vmax.f32 %v474_v31, 0.0  ;;  %v527_v44 = vmax.f32 %v517_v32, 0.0  ;;  %v1056_v32 = vld [vmem:[%s1944_s5] sm:$0x3]  ;;  %s1457_s5 = smov [#allocation2]  }
 0x106   :  { %v477_v25 = vpop.f32.mrf.mxu0  ;;  %v520_v26 = vpop.f32.mrf.mxu1 }
 0x107   :  { %v478_v29 = vadd.f32 %v477_v25, %v102_v21  ;;  %v521_v30 = vadd.f32 %v520_v26, %v110_v22  ;;  %v526_v39 = vmax.f32 %v476_v27, 0.0  ;;  %v528_v40 = vmax.f32 %v519_v28, 0.0 }
 0x108   :  { %v479_v33 = vpop.f32.mrf.mxu0  ;;  %v522_v34 = vpop.f32.mrf.mxu1 }
 0x109   :  { %v480_v35 = vadd.f32 %v479_v33, %v106_v19  ;;  %v523_v36 = vadd.f32 %v522_v34, %v114_v20  ;;  %v529_v37 = vmax.f32 %v478_v29, 0.0  ;;  %v531_v38 = vmax.f32 %v521_v30, 0.0  ;;  %v1072_v33 = vld [vmem:[%s1945_s6] sm:$0x3]  ;;  %s1097_s6 = sshll.u32 %s1457_s5, 4  ;;  %s1098_s6 = int_to_ptr.vmem [resolvable:$true] %s1097_s6 }
 0x10a   :  { %v1061_v34 = vrot.slane %v1056_v32, %v1910_v14  ;;  %s1435_s28 = scalar_lea.vmem %s1098_s6, 512  ;;  %p1440_p1 = scmp.lt.s32.totalorder %s1098_s6, %s1098_s6 }
 0x10b   :  { %v530_v41 = vmax.f32 %v480_v35, 0.0  ;;  %v532_v42 = vmax.f32 %v523_v36, 0.0  ;;  %v533_v48 = vpack.c.bf16 %v529_v37, %v525_v43  ;;  %v535_v50 = vpack.c.bf16 %v531_v38, %v527_v44  ;;  %p1436_p0 = scmp.ne.s32.totalorder %s1098_s6, %s1435_s28  ;;  %p1441_p2 = scmp.lt.s32.totalorder %s1435_s28, %s1435_s28 }
 0x10c   :  { %v1065_v35 = vrot.slane %v1056_v32, %v1908_v12 }
 0x10d   :  { %v534_v45 = vpack.c.bf16 %v530_v41, %v526_v39  ;;  %v536_v47 = vpack.c.bf16 %v532_v42, %v528_v40  ;;  %v1077_v39 = vrot.slane %v1072_v33, %v1910_v14  ;;  %v1081_v40 = vrot.slane %v1072_v33, %v1908_v12  ;;  %p1442_p3 = por %p1441_p2, %p1440_p1 }
 0x10f   :  { %965 = vmatprep.mubr.bf16.mxu0 %v534_v45  ;;  %1008 = vmatprep.mubr.bf16.mxu1 %v536_v47  ;;  %p1443_p4 = pnand %p1442_p3, %p1436_p0 }
 0x110   :  { %966 = vmatmul.mubr.bf16.vlgmr.msra.gmra.mxu0 %v533_v48  ;;  %1009 = vmatmul.mubr.bf16.vlgmr.msra.gmra.mxu1 %v535_v50 }
 0x1d0   :  { %v967_v54 = vpop.f32.mrf.mxu0  ;;  %v1010_v55 = vpop.f32.mrf.mxu1 }
 0x1d1   :  { %v968_v56 = vadd.f32 %v967_v54, %v606_v52 }
 0x1d2   :  { %v969_v57 = vpop.f32.mrf.mxu0  ;;  %v1012_v58 = vpop.f32.mrf.mxu1 }
 0x1d3   :  { %v1011_v59 = vadd.f32 %v1010_v55, %v968_v56  ;;  %v970_v60 = vadd.f32 %v969_v57, %v610_v53 }
 0x1d4   :  { %v971_v61 = vpop.f32.mrf.mxu0  ;;  %v1014_v62 = vpop.f32.mrf.mxu1 }
 0x1d5   :  { %v1013_v63 = vadd.f32 %v1012_v58, %v970_v60  ;;  %v972_v0 = vadd.f32 %v971_v61, %v606_v52  ;;  %v1019_v6 = vadd.f32 %v1011_v59, %v1707_v3 }
 0x1d6   :  { %v973_v1 = vpop.f32.mrf.mxu0  ;;  %v1016_v8 = vpop.f32.mrf.mxu1 }
 0x1d7   :  { %v1015_v2 = vadd.f32 %v1014_v62, %v972_v0  ;;  %v974_v5 = vadd.f32 %v973_v1, %v610_v53  ;;  %v1020_v7 = vadd.f32 %v1013_v63, %v1641_v46 }
 0x1d9   :  { %v1017_v9 = vadd.f32 %v1016_v8, %v974_v5  ;;  %v1023_v10 = vadd.f32 %v1020_v7, %v1019_v6  ;;  %v1021_v11 = vadd.f32 %v1015_v2, %v1712_v4 }
 0x1db   :  { %v1022_v13 = vadd.f32 %v1017_v9, %v1652_v49  ;;  %1024 = vadd.xlane.f32.xlu0 %v1023_v10 }
 0x1dd   :  { %v1026_v15 = vadd.f32 %v1022_v13, %v1021_v11 }
 0x1df   :  { %1027 = vadd.xlane.f32.xlu0 %v1026_v15 }
 0x264   :  { %v1025_v16 = vpop.xlane.xlu0 %1024 }
 0x265   :  { %v1030_v17 = vmul.f32 0.00390625, %v1025_v16 }
 0x267   :  { %v1032_v18 = vsub.f32 %v1019_v6, %v1030_v17  ;;  %v1033_v19 = vsub.f32 %v1020_v7, %v1030_v17 }
 0x268   :  { %v1028_v20 = vpop.xlane.xlu0 %1027 }
 0x269   :  { %v1031_v21 = vmul.f32 0.00390625, %v1028_v20  ;;  %v1036_v22 = vmul.f32 %v1032_v18, %v1032_v18  ;;  %v1037_v3 = vmul.f32 %v1033_v19, %v1033_v19 }
 0x26b   :  { %v1034_v23 = vsub.f32 %v1021_v11, %v1031_v21  ;;  %v1035_v46 = vsub.f32 %v1022_v13, %v1031_v21  ;;  %v1040_v24 = vadd.f32 %v1037_v3, %v1036_v22 }
 0x26d   :  { %1041 = vadd.xlane.f32.xlu1 %v1040_v24  ;;  %v1038_v25 = vmul.f32 %v1034_v23, %v1034_v23  ;;  %v1039_v26 = vmul.f32 %v1035_v46, %v1035_v46 }
 0x26f   :  { %v1043_v4 = vadd.f32 %v1039_v26, %v1038_v25 }
 0x271   :  { %1044 = vadd.xlane.f32.xlu1 %v1043_v4 }
 0x2f6   :  { %v1042_v49 = vpop.xlane.xlu1 %1041 }
 0x2f7   :  { %v1046_v27 = vmul.f32 0.00390625, %v1042_v49 }
 0x2f9   :  { %v1048_v28 = vadd.f32 1e-05, %v1046_v27 }
 0x2fa   :  { %v1045_v29 = vpop.xlane.xlu1 %1044 }
 0x2fb   :  { %1431 = vrsqrt.f32 %v1048_v28  ;;  %v1047_v30 = vmul.f32 0.00390625, %v1045_v29 }
 0x2fd   :  { %v1049_v31 = vadd.f32 1e-05, %v1047_v30 }
 0x2ff   :  { %1433 = vrsqrt.f32 %v1049_v31 }
 0x308   :  { %v1432_v36 = vpop.eup %1431 }
 0x309   :  { %v1052_v37 = vmul.f32 %v1432_v36, %v1032_v18  ;;  %v1053_v38 = vmul.f32 %v1432_v36, %v1033_v19 }
 0x30b   :  { %v1068_v41 = vmul.f32 %v1061_v34, %v1052_v37  ;;  %v1069_v42 = vmul.f32 %v1065_v35, %v1053_v38 }
 0x30c   :  { %v1434_v43 = vpop.eup %1433 }
 0x30d   :  { %v1054_v44 = vmul.f32 %v1434_v43, %v1034_v23  ;;  %v1055_v45 = vmul.f32 %v1434_v43, %v1035_v46  ;;  %v1084_v47 = vadd.f32 %v1077_v39, %v1068_v41  ;;  %v1085_v48 = vadd.f32 %v1081_v40, %v1069_v42 }
 0x30f   :  { %v1070_v50 = vmul.f32 %v1061_v34, %v1054_v44  ;;  %v1071_v51 = vmul.f32 %v1065_v35, %v1055_v45  ;;  %1088 = vst [vmem:[#allocation2] sm:$0xff] %v1084_v47  ;;  %1089 = vst [vmem:[#allocation2 + $0x8] sm:$0xff] %v1085_v48 }
 0x311   :  { %v1086_v52 = vadd.f32 %v1077_v39, %v1070_v50  ;;  %v1087_v53 = vadd.f32 %v1081_v40, %v1071_v51 }
 0x313   :  { %1090 = vst [vmem:[#allocation2 + $0x10] sm:$0xff] %v1086_v52  ;;  %1091 = vst [vmem:[#allocation2 + $0x18] sm:$0xff] %v1087_v53 }
 0x314   :  { %1446 = shalt.err (!%p1443_p4)
}
 0x315   :  { %s1458_s29 = smov 256   ;;  %s1459_s30 = smov 16  }
 0x316   :  { %1103 = dma.vmem_to_hbm [thread:$0]  %s1098_s6, 512, %s1946_s7, [#allocation3], %s1458_s29, %s1458_s29, %s1459_s30  }
 0x317   :  { %1455 = dma.done.wait [#allocation3], 512  }
 0x318   :  { %1456 = vsyncadd [#allocation3], 4294966784 }
 0x319   :  { %1107 = vsyncpa [#allocation3], 1 }

</bundles_post_ra>
